<compile_context>
chip_gen: v7x
topology: tpu7x:2x2x1
jax: 0.10.0
libtpu: 0.0.40
codegen_flags: <defaults>
</compile_context>

<pallas_src>
import jax
import jax.numpy as jnp
import numpy as np
from jax import lax
from jax.experimental import pallas as pl
from jax.experimental.pallas import tpu as pltpu

# ---- shapes implied by the PyTorch module -----------------------------------
# fc1 expects 11712 = 16 * 3 * 4 * 61 features  =>  input volume (4, 6, 120):
#   Conv3d(k=2, pad=2): 7, 9, 123 ;  MaxPool3d(2): 3, 4, 61
D, H, W = 4, 6, 120
C_OUT = 16
DP, HP, WP = D + 4, H + 4, W + 4                          # padded input 8,10,124
PD, PH, PW = (DP - 1) // 2, (HP - 1) // 2, (WP - 1) // 2  # pooled 3, 4, 61
LANE = 128
HID = 128
PW_PAD = 64                                   # pooled W axis padded to 64 lanes
FPC = PD * PH * PW_PAD                        # 768 features per channel (padded)
FLAT = C_OUT * PD * PH * PW                   # 11712 (PyTorch flatten size)
FLAT_PAD = C_OUT * FPC                        # 12288 = 96 * 128
NS = 27                                       # parity slabs (3*3*3)
NS_PAD = 32                                   # slab axis padded for the conv dot
NPH = 8                                       # pool phases (2*2*2)
NK = 2                                        # fc1 reduction chunks
TK = FLAT_PAD // NK                           # 6144
CH_PER_CHUNK = C_OUT // NK                    # 8 channels per fc1 chunk
N_FBLK = FPC // LANE                          # 6 lane blocks per channel
assert (PD, PH, PW) == (3, 4, 61) and FLAT == 11712
assert FLAT_PAD == 12288 and TK % LANE == 0 and NK * TK == FLAT_PAD


def fused_kernel(slabs_ref, wall_ref, bias_ref, w1_ref, b1_ref, w2_ref, b2_ref,
                 o_ref, h_ref, acc_ref):
    """Fused Conv3d(1->16,k=2,pad=2)+bias+MaxPool3d(2) -> fc1 -> relu -> fc2
    -> relu -> sigmoid.  Grid axis k = fc1 reduction chunks (NK=2).

    slabs_ref : (NS_PAD, FPC) f32  parity slabs of the padded input:
                slabs[sd*9+sh*3+sw, (pd*PH+ph)*PW_PAD+pw] = xpad[2pd+sd,2ph+sh,2pw+sw]
                (zero for pw >= PW and for the padded slab rows).
    wall_ref  : (NPH*C_OUT, NS_PAD) f32  conv taps so that
                (wall @ slabs)[phase*16+ch, f] = conv output of phase/channel.
    bias_ref  : (C_OUT, 1) f32  conv bias.
    w1_ref    : (TK, HID) f32  fc1 weight chunk, MXU-native (K, N) layout.
    b1_ref/w2_ref : (1, HID) ; b2_ref : (1, 1) ; o_ref : (1, 1).
    h_ref     : (NK, 1, TK) f32 scratch  -- flattened pooled features, chunked.
    acc_ref   : (1, HID) f32 scratch     -- fc1 accumulator.
    """
    k = pl.program_id(0)

    @pl.when(k == 0)
    def _prologue():
        acc_ref[...] = jnp.zeros_like(acc_ref)
        wall = wall_ref[...]                       # (128, 32)
        bias = bias_ref[...]                       # (16, 1)
        # Process the per-channel feature axis in 6 lane blocks of 128 so that
        # only ~30 vregs are live at any point (no spills).
        for b in range(N_FBLK):
            slab_blk = slabs_ref[:, b * LANE:(b + 1) * LANE]        # (32, 128)
            # All 8 pool phases x 16 channels at once: rows = phase*16 + ch.
            conv_blk = jnp.dot(wall, slab_blk,
                               preferred_element_type=jnp.float32)  # (128, 128)
            pooled = conv_blk[0:C_OUT, :]
            for p in range(1, NPH):
                pooled = jnp.maximum(pooled,
                                     conv_blk[p * C_OUT:(p + 1) * C_OUT, :])
            pooled = pooled + bias        # per-channel bias commutes with max
            # Scatter each channel row to its lane-dense slot in h.
            for ch in range(C_OUT):
                chunk, pos = divmod(ch, CH_PER_CHUNK)
                start = pos * FPC + b * LANE
                h_ref[chunk, :, start:start + LANE] = pooled[ch:ch + 1, :]

    # fc1, K-chunked: both operands already in MXU-native layout; the chunk
    # k+1 weight DMA overlaps this matmul (and the step-0 conv above).
    acc_ref[...] += jnp.dot(h_ref[k], w1_ref[...],
                            preferred_element_type=jnp.float32)

    @pl.when(k == pl.num_programs(0) - 1)
    def _epilogue():
        z1 = acc_ref[...] + b1_ref[...]
        a1 = jnp.maximum(z1, 0.0)
        z2 = jnp.sum(a1 * w2_ref[...], axis=-1, keepdims=True) + b2_ref[...]
        a2 = jnp.maximum(z2, 0.0)
        o_ref[...] = 1.0 / (1.0 + jnp.exp(-a2))


def pack_params(conv_w, conv_b, fc1_w, fc1_b, fc2_w, fc2_b):
    """One-time, host-side (outside jit) parameter packing."""
    cw = np.asarray(conv_w, np.float32).reshape(C_OUT, 2, 2, 2)
    # wall[p*16+ch, s], p = a*4+b*2+c (pool phase), s = sd*9+sh*3+sw (slab):
    # the conv output at pool offset (a,b,c) uses slab (a+kd, b+kh, c+kw)
    # with weight w[ch, kd, kh, kw]; at most one tap maps to a given (p, s).
    wall = np.zeros((NPH * C_OUT, NS_PAD), np.float32)
    for a in range(2):
        for b in range(2):
            for c in range(2):
                p = a * 4 + b * 2 + c
                for kd in range(2):
                    for kh in range(2):
                        for kw in range(2):
                            s = (a + kd) * 9 + (b + kh) * 3 + (c + kw)
                            wall[p * C_OUT:(p + 1) * C_OUT, s] = cw[:, kd, kh, kw]
    bias_col = np.asarray(conv_b, np.float32).reshape(C_OUT, 1)

    # fc1_w (HID, 11712) -> MXU-native (K, N) = (12288, 128); K permuted to the
    # kernel's lane-dense order k = ch*768 + (pd*4+ph)*64 + pw and zero-padded
    # over pw in [61, 64).
    w1 = np.asarray(fc1_w, np.float32).reshape(HID, C_OUT, PD, PH, PW)
    w1 = np.pad(w1, ((0, 0), (0, 0), (0, 0), (0, 0), (0, PW_PAD - PW)))
    w1 = np.transpose(w1, (1, 2, 3, 4, 0)).reshape(FLAT_PAD, HID)

    fc1_b_r = np.asarray(fc1_b, np.float32).reshape(1, HID)
    fc2_w_r = np.asarray(fc2_w, np.float32).reshape(1, HID)
    fc2_b_r = np.asarray(fc2_b, np.float32).reshape(1, 1)
    return tuple(jnp.asarray(a) for a in
                 (wall, bias_col, w1, fc1_b_r, fc2_w_r, fc2_b_r))


def forward(x, wall, bias_col, w1, b1, w2, b2):
    # Tiny XLA glue on the 11 KB input: pad and extract the 27 stride-2 parity
    # slabs, pre-flattened to the kernel's lane-dense (pd, ph, pw64) order.
    xpad = jnp.pad(x, ((2, 2), (2, 2), (2, 2)))                  # (8, 10, 124)
    rows = []
    for sd in range(3):
        for sh in range(3):
            for sw in range(3):
                sl = lax.slice(xpad, (sd, sh, sw),
                               (sd + 2 * PD - 1, sh + 2 * PH - 1,
                                sw + 2 * PW - 1), (2, 2, 2))     # (3, 4, 61)
                sl = jnp.pad(sl, ((0, 0), (0, 0), (0, PW_PAD - PW)))
                rows.append(sl.reshape(1, FPC))
    slabs = jnp.concatenate(rows, axis=0)                        # (27, 768)
    slabs = jnp.pad(slabs, ((0, NS_PAD - NS), (0, 0)))           # (32, 768)

    out = pl.pallas_call(
        fused_kernel,
        out_shape=jax.ShapeDtypeStruct((1, 1), jnp.float32),
        grid=(NK,),
        in_specs=[
            pl.BlockSpec((NS_PAD, FPC), lambda k: (0, 0)),         # slabs (resident)
            pl.BlockSpec((NPH * C_OUT, NS_PAD), lambda k: (0, 0)), # conv tap matrix
            pl.BlockSpec((C_OUT, 1), lambda k: (0, 0)),            # conv bias
            pl.BlockSpec((TK, HID), lambda k: (k, 0)),             # fc1_w chunk (streamed)
            pl.BlockSpec((1, HID), lambda k: (0, 0)),              # fc1_b (resident)
            pl.BlockSpec((1, HID), lambda k: (0, 0)),              # fc2_w (resident)
            pl.BlockSpec((1, 1), lambda k: (0, 0)),                # fc2_b (resident)
        ],
        out_specs=pl.BlockSpec((1, 1), lambda k: (0, 0)),
        scratch_shapes=[pltpu.VMEM((NK, 1, TK), jnp.float32),      # pooled features
                        pltpu.VMEM((1, HID), jnp.float32)],        # fc1 accumulator
        compiler_params=pltpu.CompilerParams(
            dimension_semantics=("arbitrary",)),
    )(slabs, wall, bias_col, w1, b1, w2, b2)
    return out


def reference(x, conv_w, conv_b, fc1_w, fc1_b, fc2_w, fc2_b):
    """Pure-JAX reference matching the PyTorch forward."""
    xin = x[None, None]                                  # (1, 1, D, H, W)
    conv = lax.conv_general_dilated(
        xin, conv_w, window_strides=(1, 1, 1),
        padding=((2, 2), (2, 2), (2, 2)),
        dimension_numbers=("NCDHW", "OIDHW", "NCDHW"),
        precision=lax.Precision.HIGHEST)
    conv = conv + conv_b[None, :, None, None, None]
    pooled = lax.reduce_window(conv, -jnp.inf, lax.max,
                               (1, 1, 2, 2, 2), (1, 1, 2, 2, 2), "VALID")
    flat = pooled.reshape(1, -1)
    h1 = jnp.maximum(
        jnp.dot(flat, fc1_w.T, precision=lax.Precision.HIGHEST) + fc1_b[None], 0.0)
    h2 = jnp.maximum(
        jnp.dot(h1, fc2_w.T, precision=lax.Precision.HIGHEST) + fc2_b[None], 0.0)
    return jax.nn.sigmoid(h2)


if __name__ == "__main__":
    key = jax.random.PRNGKey(0)
    ks = jax.random.split(key, 7)
    x = jax.random.normal(ks[0], (D, H, W), jnp.float32)
    conv_w = 0.1 * jax.random.normal(ks[1], (C_OUT, 1, 2, 2, 2), jnp.float32)
    conv_b = 0.1 * jax.random.normal(ks[2], (C_OUT,), jnp.float32)
    fc1_w = 0.01 * jax.random.normal(ks[3], (HID, FLAT), jnp.float32)
    fc1_b = 0.01 * jax.random.normal(ks[4], (HID,), jnp.float32)
    fc2_w = 0.1 * jax.random.normal(ks[5], (1, HID), jnp.float32)
    fc2_b = 0.1 * jax.random.normal(ks[6], (1,), jnp.float32)

    packed = pack_params(conv_w, conv_b, fc1_w, fc1_b, fc2_w, fc2_b)
    out = jax.jit(forward)(x, *packed)
    out = jax.block_until_ready(out)

    ref = reference(x, conv_w, conv_b, fc1_w, fc1_b, fc2_w, fc2_b)
    np.testing.assert_allclose(np.asarray(out), np.asarray(ref),
                               rtol=1e-3, atol=1e-3)
    print("KERNEL_OK")
</pallas_src>

<mosaic_0001>
module attributes {stable_mosaic.version = 11 : i64} {
  func.func @fused_kernel(%arg0: i32, %arg1: memref<32x768xf32, #tpu.memory_space<vmem>>, %arg2: memref<128x32xf32, #tpu.memory_space<vmem>>, %arg3: memref<16x1xf32, #tpu.memory_space<vmem>>, %arg4: memref<6144x128xf32, #tpu.memory_space<vmem>>, %arg5: memref<1x128xf32, #tpu.memory_space<vmem>>, %arg6: memref<1x128xf32, #tpu.memory_space<vmem>>, %arg7: memref<1x1xf32, #tpu.memory_space<vmem>>, %arg8: memref<1x1xf32, #tpu.memory_space<vmem>>, %arg9: memref<2x1x6144xf32, #tpu.memory_space<vmem>>, %arg10: memref<1x128xf32, #tpu.memory_space<vmem>>) attributes {dimension_semantics = [#tpu.dimension_semantics<arbitrary>], iteration_bounds = array<i64: 2>, scalar_prefetch = 0 : i64, scratch_operands = 2 : i64, tpu.core_type = #tpu.core_type<tc>, window_params = [{pipeline_mode = #tpu.pipeline_mode<synchronous>, transform_indices = @transform_0, window_bounds = array<i64: 32, 768>}, {pipeline_mode = #tpu.pipeline_mode<synchronous>, transform_indices = @transform_1, window_bounds = array<i64: 128, 32>}, {pipeline_mode = #tpu.pipeline_mode<synchronous>, transform_indices = @transform_2, window_bounds = array<i64: 16, 1>}, {transform_indices = @transform_3, window_bounds = array<i64: 6144, 128>}, {pipeline_mode = #tpu.pipeline_mode<synchronous>, transform_indices = @transform_4, window_bounds = array<i64: 1, 128>}, {pipeline_mode = #tpu.pipeline_mode<synchronous>, transform_indices = @transform_5, window_bounds = array<i64: 1, 128>}, {pipeline_mode = #tpu.pipeline_mode<synchronous>, transform_indices = @transform_6, window_bounds = array<i64: 1, 1>}, {pipeline_mode = #tpu.pipeline_mode<synchronous>, transform_indices = @transform_7, window_bounds = array<i64: 1, 1>}]} {
    %c0_i32 = arith.constant 0 : i32
    %0 = arith.cmpi eq, %arg0, %c0_i32 : i32
    %1 = arith.extui %0 : i1 to i32
    %c0_i32_0 = arith.constant 0 : i32
    %2 = arith.cmpi ne, %1, %c0_i32_0 : i32
    scf.if %2 {
      %cst_9 = arith.constant 0.000000e+00 : f32
      %14 = vector.broadcast %cst_9 : f32 to vector<1x128xf32>
      %c0_10 = arith.constant 0 : index
      %c0_11 = arith.constant 0 : index
      %15 = vector.load %arg10[%c0_10, %c0_11] : memref<1x128xf32, #tpu.memory_space<vmem>>, vector<1x128xf32>
      tpu.vector_store %arg10[%c0_10, %c0_11], %14 {strides = array<i32>} : memref<1x128xf32, #tpu.memory_space<vmem>>, vector<1x128xf32>,
      %c0_12 = arith.constant 0 : index
      %c0_13 = arith.constant 0 : index
      %16 = vector.load %arg2[%c0_12, %c0_13] : memref<128x32xf32, #tpu.memory_space<vmem>>, vector<128x32xf32>
      %c0_14 = arith.constant 0 : index
      %c0_15 = arith.constant 0 : index
      %17 = vector.load %arg3[%c0_14, %c0_15] : memref<16x1xf32, #tpu.memory_space<vmem>>, vector<16x1xf32>
      %c0_16 = arith.constant 0 : index
      %c0_17 = arith.constant 0 : index
      %18 = vector.load %arg1[%c0_16, %c0_17] : memref<32x768xf32, #tpu.memory_space<vmem>>, vector<32x128xf32>
      %cst_18 = arith.constant dense<0.000000e+00> : vector<128x128xf32>
      %19 = tpu.matmul %16, %18, %cst_18 {dimension_numbers = #tpu.dot_dimension_numbers<[1], [0], [0], [1], [0, 0, 1, 1], [], []>} : vector<128x32xf32>, vector<32x128xf32>, vector<128x128xf32> -> vector<128x128xf32>
      %20 = vector.extract_strided_slice %19 {offsets = [0, 0], sizes = [16, 128], strides = [1, 1]} : vector<128x128xf32> to vector<16x128xf32>
      %21 = vector.extract_strided_slice %19 {offsets = [16, 0], sizes = [16, 128], strides = [1, 1]} : vector<128x128xf32> to vector<16x128xf32>
      %22 = arith.maximumf %20, %21 : vector<16x128xf32>
      %23 = vector.extract_strided_slice %19 {offsets = [32, 0], sizes = [16, 128], strides = [1, 1]} : vector<128x128xf32> to vector<16x128xf32>
      %24 = arith.maximumf %22, %23 : vector<16x128xf32>
      %25 = vector.extract_strided_slice %19 {offsets = [48, 0], sizes = [16, 128], strides = [1, 1]} : vector<128x128xf32> to vector<16x128xf32>
      %26 = arith.maximumf %24, %25 : vector<16x128xf32>
      %27 = vector.extract_strided_slice %19 {offsets = [64, 0], sizes = [16, 128], strides = [1, 1]} : vector<128x128xf32> to vector<16x128xf32>
      %28 = arith.maximumf %26, %27 : vector<16x128xf32>
      %29 = vector.extract_strided_slice %19 {offsets = [80, 0], sizes = [16, 128], strides = [1, 1]} : vector<128x128xf32> to vector<16x128xf32>
      %30 = arith.maximumf %28, %29 : vector<16x128xf32>
      %31 = vector.extract_strided_slice %19 {offsets = [96, 0], sizes = [16, 128], strides = [1, 1]} : vector<128x128xf32> to vector<16x128xf32>
      %32 = arith.maximumf %30, %31 : vector<16x128xf32>
      %33 = vector.extract_strided_slice %19 {offsets = [112, 0], sizes = [16, 128], strides = [1, 1]} : vector<128x128xf32> to vector<16x128xf32>
      %34 = arith.maximumf %32, %33 : vector<16x128xf32>
      %35 = vector.broadcast %17 : vector<16x1xf32> to vector<16x128xf32>
      %36 = arith.addf %34, %35 : vector<16x128xf32>
      %37 = vector.extract_strided_slice %36 {offsets = [0, 0], sizes = [1, 128], strides = [1, 1]} : vector<16x128xf32> to vector<1x128xf32>
      %c0_19 = arith.constant 0 : index
      %c0_20 = arith.constant 0 : index
      %c0_21 = arith.constant 0 : index
      %38 = vector.load %arg9[%c0_19, %c0_20, %c0_21] : memref<2x1x6144xf32, #tpu.memory_space<vmem>>, vector<1x1x128xf32>
      %39 = vector.shape_cast %38 : vector<1x1x128xf32> to vector<1x128xf32>
      %40 = vector.shape_cast %37 : vector<1x128xf32> to vector<1x1x128xf32>
      tpu.vector_store %arg9[%c0_19, %c0_20, %c0_21], %40 {strides = array<i32>} : memref<2x1x6144xf32, #tpu.memory_space<vmem>>, vector<1x1x128xf32>,
      %41 = vector.extract_strided_slice %36 {offsets = [1, 0], sizes = [1, 128], strides = [1, 1]} : vector<16x128xf32> to vector<1x128xf32>
      %c0_22 = arith.constant 0 : index
      %c0_23 = arith.constant 0 : index
      %c768 = arith.constant 768 : index
      %42 = vector.load %arg9[%c0_22, %c0_23, %c768] : memref<2x1x6144xf32, #tpu.memory_space<vmem>>, vector<1x1x128xf32>
      %43 = vector.shape_cast %42 : vector<1x1x128xf32> to vector<1x128xf32>
      %44 = vector.shape_cast %41 : vector<1x128xf32> to vector<1x1x128xf32>
      tpu.vector_store %arg9[%c0_22, %c0_23, %c768], %44 {strides = array<i32>} : memref<2x1x6144xf32, #tpu.memory_space<vmem>>, vector<1x1x128xf32>,
      %45 = vector.extract_strided_slice %36 {offsets = [2, 0], sizes = [1, 128], strides = [1, 1]} : vector<16x128xf32> to vector<1x128xf32>
      %c0_24 = arith.constant 0 : index
      %c0_25 = arith.constant 0 : index
      %c1536 = arith.constant 1536 : index
      %46 = vector.load %arg9[%c0_24, %c0_25, %c1536] : memref<2x1x6144xf32, #tpu.memory_space<vmem>>, vector<1x1x128xf32>
      %47 = vector.shape_cast %46 : vector<1x1x128xf32> to vector<1x128xf32>
      %48 = vector.shape_cast %45 : vector<1x128xf32> to vector<1x1x128xf32>
      tpu.vector_store %arg9[%c0_24, %c0_25, %c1536], %48 {strides = array<i32>} : memref<2x1x6144xf32, #tpu.memory_space<vmem>>, vector<1x1x128xf32>,
      %49 = vector.extract_strided_slice %36 {offsets = [3, 0], sizes = [1, 128], strides = [1, 1]} : vector<16x128xf32> to vector<1x128xf32>
      %c0_26 = arith.constant 0 : index
      %c0_27 = arith.constant 0 : index
      %c2304 = arith.constant 2304 : index
      %50 = vector.load %arg9[%c0_26, %c0_27, %c2304] : memref<2x1x6144xf32, #tpu.memory_space<vmem>>, vector<1x1x128xf32>
      %51 = vector.shape_cast %50 : vector<1x1x128xf32> to vector<1x128xf32>
      %52 = vector.shape_cast %49 : vector<1x128xf32> to vector<1x1x128xf32>
      tpu.vector_store %arg9[%c0_26, %c0_27, %c2304], %52 {strides = array<i32>} : memref<2x1x6144xf32, #tpu.memory_space<vmem>>, vector<1x1x128xf32>,
      %53 = vector.extract_strided_slice %36 {offsets = [4, 0], sizes = [1, 128], strides = [1, 1]} : vector<16x128xf32> to vector<1x128xf32>
      %c0_28 = arith.constant 0 : index
      %c0_29 = arith.constant 0 : index
      %c3072 = arith.constant 3072 : index
      %54 = vector.load %arg9[%c0_28, %c0_29, %c3072] : memref<2x1x6144xf32, #tpu.memory_space<vmem>>, vector<1x1x128xf32>
      %55 = vector.shape_cast %54 : vector<1x1x128xf32> to vector<1x128xf32>
      %56 = vector.shape_cast %53 : vector<1x128xf32> to vector<1x1x128xf32>
      tpu.vector_store %arg9[%c0_28, %c0_29, %c3072], %56 {strides = array<i32>} : memref<2x1x6144xf32, #tpu.memory_space<vmem>>, vector<1x1x128xf32>,
      %57 = vector.extract_strided_slice %36 {offsets = [5, 0], sizes = [1, 128], strides = [1, 1]} : vector<16x128xf32> to vector<1x128xf32>
      %c0_30 = arith.constant 0 : index
      %c0_31 = arith.constant 0 : index
      %c3840 = arith.constant 3840 : index
      %58 = vector.load %arg9[%c0_30, %c0_31, %c3840] : memref<2x1x6144xf32, #tpu.memory_space<vmem>>, vector<1x1x128xf32>
      %59 = vector.shape_cast %58 : vector<1x1x128xf32> to vector<1x128xf32>
      %60 = vector.shape_cast %57 : vector<1x128xf32> to vector<1x1x128xf32>
      tpu.vector_store %arg9[%c0_30, %c0_31, %c3840], %60 {strides = array<i32>} : memref<2x1x6144xf32, #tpu.memory_space<vmem>>, vector<1x1x128xf32>,
      %61 = vector.extract_strided_slice %36 {offsets = [6, 0], sizes = [1, 128], strides = [1, 1]} : vector<16x128xf32> to vector<1x128xf32>
      %c0_32 = arith.constant 0 : index
      %c0_33 = arith.constant 0 : index
      %c4608 = arith.constant 4608 : index
      %62 = vector.load %arg9[%c0_32, %c0_33, %c4608] : memref<2x1x6144xf32, #tpu.memory_space<vmem>>, vector<1x1x128xf32>
      %63 = vector.shape_cast %62 : vector<1x1x128xf32> to vector<1x128xf32>
      %64 = vector.shape_cast %61 : vector<1x128xf32> to vector<1x1x128xf32>
      tpu.vector_store %arg9[%c0_32, %c0_33, %c4608], %64 {strides = array<i32>} : memref<2x1x6144xf32, #tpu.memory_space<vmem>>, vector<1x1x128xf32>,
      %65 = vector.extract_strided_slice %36 {offsets = [7, 0], sizes = [1, 128], strides = [1, 1]} : vector<16x128xf32> to vector<1x128xf32>
      %c0_34 = arith.constant 0 : index
      %c0_35 = arith.constant 0 : index
      %c5376 = arith.constant 5376 : index
      %66 = vector.load %arg9[%c0_34, %c0_35, %c5376] : memref<2x1x6144xf32, #tpu.memory_space<vmem>>, vector<1x1x128xf32>
      %67 = vector.shape_cast %66 : vector<1x1x128xf32> to vector<1x128xf32>
      %68 = vector.shape_cast %65 : vector<1x128xf32> to vector<1x1x128xf32>
      tpu.vector_store %arg9[%c0_34, %c0_35, %c5376], %68 {strides = array<i32>} : memref<2x1x6144xf32, #tpu.memory_space<vmem>>, vector<1x1x128xf32>,
      %69 = vector.extract_strided_slice %36 {offsets = [8, 0], sizes = [1, 128], strides = [1, 1]} : vector<16x128xf32> to vector<1x128xf32>
      %c1 = arith.constant 1 : index
      %c0_36 = arith.constant 0 : index
      %c0_37 = arith.constant 0 : index
      %70 = vector.load %arg9[%c1, %c0_36, %c0_37] : memref<2x1x6144xf32, #tpu.memory_space<vmem>>, vector<1x1x128xf32>
      %71 = vector.shape_cast %70 : vector<1x1x128xf32> to vector<1x128xf32>
      %72 = vector.shape_cast %69 : vector<1x128xf32> to vector<1x1x128xf32>
      tpu.vector_store %arg9[%c1, %c0_36, %c0_37], %72 {strides = array<i32>} : memref<2x1x6144xf32, #tpu.memory_space<vmem>>, vector<1x1x128xf32>,
      %73 = vector.extract_strided_slice %36 {offsets = [9, 0], sizes = [1, 128], strides = [1, 1]} : vector<16x128xf32> to vector<1x128xf32>
      %c1_38 = arith.constant 1 : index
      %c0_39 = arith.constant 0 : index
      %c768_40 = arith.constant 768 : index
      %74 = vector.load %arg9[%c1_38, %c0_39, %c768_40] : memref<2x1x6144xf32, #tpu.memory_space<vmem>>, vector<1x1x128xf32>
      %75 = vector.shape_cast %74 : vector<1x1x128xf32> to vector<1x128xf32>
      %76 = vector.shape_cast %73 : vector<1x128xf32> to vector<1x1x128xf32>
      tpu.vector_store %arg9[%c1_38, %c0_39, %c768_40], %76 {strides = array<i32>} : memref<2x1x6144xf32, #tpu.memory_space<vmem>>, vector<1x1x128xf32>,
      %77 = vector.extract_strided_slice %36 {offsets = [10, 0], sizes = [1, 128], strides = [1, 1]} : vector<16x128xf32> to vector<1x128xf32>
      %c1_41 = arith.constant 1 : index
      %c0_42 = arith.constant 0 : index
      %c1536_43 = arith.constant 1536 : index
      %78 = vector.load %arg9[%c1_41, %c0_42, %c1536_43] : memref<2x1x6144xf32, #tpu.memory_space<vmem>>, vector<1x1x128xf32>
      %79 = vector.shape_cast %78 : vector<1x1x128xf32> to vector<1x128xf32>
      %80 = vector.shape_cast %77 : vector<1x128xf32> to vector<1x1x128xf32>
      tpu.vector_store %arg9[%c1_41, %c0_42, %c1536_43], %80 {strides = array<i32>} : memref<2x1x6144xf32, #tpu.memory_space<vmem>>, vector<1x1x128xf32>,
      %81 = vector.extract_strided_slice %36 {offsets = [11, 0], sizes = [1, 128], strides = [1, 1]} : vector<16x128xf32> to vector<1x128xf32>
      %c1_44 = arith.constant 1 : index
      %c0_45 = arith.constant 0 : index
      %c2304_46 = arith.constant 2304 : index
      %82 = vector.load %arg9[%c1_44, %c0_45, %c2304_46] : memref<2x1x6144xf32, #tpu.memory_space<vmem>>, vector<1x1x128xf32>
      %83 = vector.shape_cast %82 : vector<1x1x128xf32> to vector<1x128xf32>
      %84 = vector.shape_cast %81 : vector<1x128xf32> to vector<1x1x128xf32>
      tpu.vector_store %arg9[%c1_44, %c0_45, %c2304_46], %84 {strides = array<i32>} : memref<2x1x6144xf32, #tpu.memory_space<vmem>>, vector<1x1x128xf32>,
      %85 = vector.extract_strided_slice %36 {offsets = [12, 0], sizes = [1, 128], strides = [1, 1]} : vector<16x128xf32> to vector<1x128xf32>
      %c1_47 = arith.constant 1 : index
      %c0_48 = arith.constant 0 : index
      %c3072_49 = arith.constant 3072 : index
      %86 = vector.load %arg9[%c1_47, %c0_48, %c3072_49] : memref<2x1x6144xf32, #tpu.memory_space<vmem>>, vector<1x1x128xf32>
      %87 = vector.shape_cast %86 : vector<1x1x128xf32> to vector<1x128xf32>
      %88 = vector.shape_cast %85 : vector<1x128xf32> to vector<1x1x128xf32>
      tpu.vector_store %arg9[%c1_47, %c0_48, %c3072_49], %88 {strides = array<i32>} : memref<2x1x6144xf32, #tpu.memory_space<vmem>>, vector<1x1x128xf32>,
      %89 = vector.extract_strided_slice %36 {offsets = [13, 0], sizes = [1, 128], strides = [1, 1]} : vector<16x128xf32> to vector<1x128xf32>
      %c1_50 = arith.constant 1 : index
      %c0_51 = arith.constant 0 : index
      %c3840_52 = arith.constant 3840 : index
      %90 = vector.load %arg9[%c1_50, %c0_51, %c3840_52] : memref<2x1x6144xf32, #tpu.memory_space<vmem>>, vector<1x1x128xf32>
      %91 = vector.shape_cast %90 : vector<1x1x128xf32> to vector<1x128xf32>
      %92 = vector.shape_cast %89 : vector<1x128xf32> to vector<1x1x128xf32>
      tpu.vector_store %arg9[%c1_50, %c0_51, %c3840_52], %92 {strides = array<i32>} : memref<2x1x6144xf32, #tpu.memory_space<vmem>>, vector<1x1x128xf32>,
      %93 = vector.extract_strided_slice %36 {offsets = [14, 0], sizes = [1, 128], strides = [1, 1]} : vector<16x128xf32> to vector<1x128xf32>
      %c1_53 = arith.constant 1 : index
      %c0_54 = arith.constant 0 : index
      %c4608_55 = arith.constant 4608 : index
      %94 = vector.load %arg9[%c1_53, %c0_54, %c4608_55] : memref<2x1x6144xf32, #tpu.memory_space<vmem>>, vector<1x1x128xf32>
      %95 = vector.shape_cast %94 : vector<1x1x128xf32> to vector<1x128xf32>
      %96 = vector.shape_cast %93 : vector<1x128xf32> to vector<1x1x128xf32>
      tpu.vector_store %arg9[%c1_53, %c0_54, %c4608_55], %96 {strides = array<i32>} : memref<2x1x6144xf32, #tpu.memory_space<vmem>>, vector<1x1x128xf32>,
      %97 = vector.extract_strided_slice %36 {offsets = [15, 0], sizes = [1, 128], strides = [1, 1]} : vector<16x128xf32> to vector<1x128xf32>
      %c1_56 = arith.constant 1 : index
      %c0_57 = arith.constant 0 : index
      %c5376_58 = arith.constant 5376 : index
      %98 = vector.load %arg9[%c1_56, %c0_57, %c5376_58] : memref<2x1x6144xf32, #tpu.memory_space<vmem>>, vector<1x1x128xf32>
      %99 = vector.shape_cast %98 : vector<1x1x128xf32> to vector<1x128xf32>
      %100 = vector.shape_cast %97 : vector<1x128xf32> to vector<1x1x128xf32>
      tpu.vector_store %arg9[%c1_56, %c0_57, %c5376_58], %100 {strides = array<i32>} : memref<2x1x6144xf32, #tpu.memory_space<vmem>>, vector<1x1x128xf32>,
      %c0_59 = arith.constant 0 : index
      %c128 = arith.constant 128 : index
      %101 = vector.load %arg1[%c0_59, %c128] : memref<32x768xf32, #tpu.memory_space<vmem>>, vector<32x128xf32>
      %cst_60 = arith.constant dense<0.000000e+00> : vector<128x128xf32>
      %102 = tpu.matmul %16, %101, %cst_60 {dimension_numbers = #tpu.dot_dimension_numbers<[1], [0], [0], [1], [0, 0, 1, 1], [], []>} : vector<128x32xf32>, vector<32x128xf32>, vector<128x128xf32> -> vector<128x128xf32>
      %103 = vector.extract_strided_slice %102 {offsets = [0, 0], sizes = [16, 128], strides = [1, 1]} : vector<128x128xf32> to vector<16x128xf32>
      %104 = vector.extract_strided_slice %102 {offsets = [16, 0], sizes = [16, 128], strides = [1, 1]} : vector<128x128xf32> to vector<16x128xf32>
      %105 = arith.maximumf %103, %104 : vector<16x128xf32>
      %106 = vector.extract_strided_slice %102 {offsets = [32, 0], sizes = [16, 128], strides = [1, 1]} : vector<128x128xf32> to vector<16x128xf32>
      %107 = arith.maximumf %105, %106 : vector<16x128xf32>
      %108 = vector.extract_strided_slice %102 {offsets = [48, 0], sizes = [16, 128], strides = [1, 1]} : vector<128x128xf32> to vector<16x128xf32>
      %109 = arith.maximumf %107, %108 : vector<16x128xf32>
      %110 = vector.extract_strided_slice %102 {offsets = [64, 0], sizes = [16, 128], strides = [1, 1]} : vector<128x128xf32> to vector<16x128xf32>
      %111 = arith.maximumf %109, %110 : vector<16x128xf32>
      %112 = vector.extract_strided_slice %102 {offsets = [80, 0], sizes = [16, 128], strides = [1, 1]} : vector<128x128xf32> to vector<16x128xf32>
      %113 = arith.maximumf %111, %112 : vector<16x128xf32>
      %114 = vector.extract_strided_slice %102 {offsets = [96, 0], sizes = [16, 128], strides = [1, 1]} : vector<128x128xf32> to vector<16x128xf32>
      %115 = arith.maximumf %113, %114 : vector<16x128xf32>
      %116 = vector.extract_strided_slice %102 {offsets = [112, 0], sizes = [16, 128], strides = [1, 1]} : vector<128x128xf32> to vector<16x128xf32>
      %117 = arith.maximumf %115, %116 : vector<16x128xf32>
      %118 = vector.broadcast %17 : vector<16x1xf32> to vector<16x128xf32>
      %119 = arith.addf %117, %118 : vector<16x128xf32>
      %120 = vector.extract_strided_slice %119 {offsets = [0, 0], sizes = [1, 128], strides = [1, 1]} : vector<16x128xf32> to vector<1x128xf32>
      %c0_61 = arith.constant 0 : index
      %c0_62 = arith.constant 0 : index
      %c128_63 = arith.constant 128 : index
      %121 = vector.load %arg9[%c0_61, %c0_62, %c128_63] : memref<2x1x6144xf32, #tpu.memory_space<vmem>>, vector<1x1x128xf32>
      %122 = vector.shape_cast %121 : vector<1x1x128xf32> to vector<1x128xf32>
      %123 = vector.shape_cast %120 : vector<1x128xf32> to vector<1x1x128xf32>
      tpu.vector_store %arg9[%c0_61, %c0_62, %c128_63], %123 {strides = array<i32>} : memref<2x1x6144xf32, #tpu.memory_space<vmem>>, vector<1x1x128xf32>,
      %124 = vector.extract_strided_slice %119 {offsets = [1, 0], sizes = [1, 128], strides = [1, 1]} : vector<16x128xf32> to vector<1x128xf32>
      %c0_64 = arith.constant 0 : index
      %c0_65 = arith.constant 0 : index
      %c896 = arith.constant 896 : index
      %125 = vector.load %arg9[%c0_64, %c0_65, %c896] : memref<2x1x6144xf32, #tpu.memory_space<vmem>>, vector<1x1x128xf32>
      %126 = vector.shape_cast %125 : vector<1x1x128xf32> to vector<1x128xf32>
      %127 = vector.shape_cast %124 : vector<1x128xf32> to vector<1x1x128xf32>
      tpu.vector_store %arg9[%c0_64, %c0_65, %c896], %127 {strides = array<i32>} : memref<2x1x6144xf32, #tpu.memory_space<vmem>>, vector<1x1x128xf32>,
      %128 = vector.extract_strided_slice %119 {offsets = [2, 0], sizes = [1, 128], strides = [1, 1]} : vector<16x128xf32> to vector<1x128xf32>
      %c0_66 = arith.constant 0 : index
      %c0_67 = arith.constant 0 : index
      %c1664 = arith.constant 1664 : index
      %129 = vector.load %arg9[%c0_66, %c0_67, %c1664] : memref<2x1x6144xf32, #tpu.memory_space<vmem>>, vector<1x1x128xf32>
      %130 = vector.shape_cast %129 : vector<1x1x128xf32> to vector<1x128xf32>
      %131 = vector.shape_cast %128 : vector<1x128xf32> to vector<1x1x128xf32>
      tpu.vector_store %arg9[%c0_66, %c0_67, %c1664], %131 {strides = array<i32>} : memref<2x1x6144xf32, #tpu.memory_space<vmem>>, vector<1x1x128xf32>,
      %132 = vector.extract_strided_slice %119 {offsets = [3, 0], sizes = [1, 128], strides = [1, 1]} : vector<16x128xf32> to vector<1x128xf32>
      %c0_68 = arith.constant 0 : index
      %c0_69 = arith.constant 0 : index
      %c2432 = arith.constant 2432 : index
      %133 = vector.load %arg9[%c0_68, %c0_69, %c2432] : memref<2x1x6144xf32, #tpu.memory_space<vmem>>, vector<1x1x128xf32>
      %134 = vector.shape_cast %133 : vector<1x1x128xf32> to vector<1x128xf32>
      %135 = vector.shape_cast %132 : vector<1x128xf32> to vector<1x1x128xf32>
      tpu.vector_store %arg9[%c0_68, %c0_69, %c2432], %135 {strides = array<i32>} : memref<2x1x6144xf32, #tpu.memory_space<vmem>>, vector<1x1x128xf32>,
      %136 = vector.extract_strided_slice %119 {offsets = [4, 0], sizes = [1, 128], strides = [1, 1]} : vector<16x128xf32> to vector<1x128xf32>
      %c0_70 = arith.constant 0 : index
      %c0_71 = arith.constant 0 : index
      %c3200 = arith.constant 3200 : index
      %137 = vector.load %arg9[%c0_70, %c0_71, %c3200] : memref<2x1x6144xf32, #tpu.memory_space<vmem>>, vector<1x1x128xf32>
      %138 = vector.shape_cast %137 : vector<1x1x128xf32> to vector<1x128xf32>
      %139 = vector.shape_cast %136 : vector<1x128xf32> to vector<1x1x128xf32>
      tpu.vector_store %arg9[%c0_70, %c0_71, %c3200], %139 {strides = array<i32>} : memref<2x1x6144xf32, #tpu.memory_space<vmem>>, vector<1x1x128xf32>,
      %140 = vector.extract_strided_slice %119 {offsets = [5, 0], sizes = [1, 128], strides = [1, 1]} : vector<16x128xf32> to vector<1x128xf32>
      %c0_72 = arith.constant 0 : index
      %c0_73 = arith.constant 0 : index
      %c3968 = arith.constant 3968 : index
      %141 = vector.load %arg9[%c0_72, %c0_73, %c3968] : memref<2x1x6144xf32, #tpu.memory_space<vmem>>, vector<1x1x128xf32>
      %142 = vector.shape_cast %141 : vector<1x1x128xf32> to vector<1x128xf32>
      %143 = vector.shape_cast %140 : vector<1x128xf32> to vector<1x1x128xf32>
      tpu.vector_store %arg9[%c0_72, %c0_73, %c3968], %143 {strides = array<i32>} : memref<2x1x6144xf32, #tpu.memory_space<vmem>>, vector<1x1x128xf32>,
      %144 = vector.extract_strided_slice %119 {offsets = [6, 0], sizes = [1, 128], strides = [1, 1]} : vector<16x128xf32> to vector<1x128xf32>
      %c0_74 = arith.constant 0 : index
      %c0_75 = arith.constant 0 : index
      %c4736 = arith.constant 4736 : index
      %145 = vector.load %arg9[%c0_74, %c0_75, %c4736] : memref<2x1x6144xf32, #tpu.memory_space<vmem>>, vector<1x1x128xf32>
      %146 = vector.shape_cast %145 : vector<1x1x128xf32> to vector<1x128xf32>
      %147 = vector.shape_cast %144 : vector<1x128xf32> to vector<1x1x128xf32>
      tpu.vector_store %arg9[%c0_74, %c0_75, %c4736], %147 {strides = array<i32>} : memref<2x1x6144xf32, #tpu.memory_space<vmem>>, vector<1x1x128xf32>,
      %148 = vector.extract_strided_slice %119 {offsets = [7, 0], sizes = [1, 128], strides = [1, 1]} : vector<16x128xf32> to vector<1x128xf32>
      %c0_76 = arith.constant 0 : index
      %c0_77 = arith.constant 0 : index
      %c5504 = arith.constant 5504 : index
      %149 = vector.load %arg9[%c0_76, %c0_77, %c5504] : memref<2x1x6144xf32, #tpu.memory_space<vmem>>, vector<1x1x128xf32>
      %150 = vector.shape_cast %149 : vector<1x1x128xf32> to vector<1x128xf32>
      %151 = vector.shape_cast %148 : vector<1x128xf32> to vector<1x1x128xf32>
      tpu.vector_store %arg9[%c0_76, %c0_77, %c5504], %151 {strides = array<i32>} : memref<2x1x6144xf32, #tpu.memory_space<vmem>>, vector<1x1x128xf32>,
      %152 = vector.extract_strided_slice %119 {offsets = [8, 0], sizes = [1, 128], strides = [1, 1]} : vector<16x128xf32> to vector<1x128xf32>
      %c1_78 = arith.constant 1 : index
      %c0_79 = arith.constant 0 : index
      %c128_80 = arith.constant 128 : index
      %153 = vector.load %arg9[%c1_78, %c0_79, %c128_80] : memref<2x1x6144xf32, #tpu.memory_space<vmem>>, vector<1x1x128xf32>
      %154 = vector.shape_cast %153 : vector<1x1x128xf32> to vector<1x128xf32>
      %155 = vector.shape_cast %152 : vector<1x128xf32> to vector<1x1x128xf32>
      tpu.vector_store %arg9[%c1_78, %c0_79, %c128_80], %155 {strides = array<i32>} : memref<2x1x6144xf32, #tpu.memory_space<vmem>>, vector<1x1x128xf32>,
      %156 = vector.extract_strided_slice %119 {offsets = [9, 0], sizes = [1, 128], strides = [1, 1]} : vector<16x128xf32> to vector<1x128xf32>
      %c1_81 = arith.constant 1 : index
      %c0_82 = arith.constant 0 : index
      %c896_83 = arith.constant 896 : index
      %157 = vector.load %arg9[%c1_81, %c0_82, %c896_83] : memref<2x1x6144xf32, #tpu.memory_space<vmem>>, vector<1x1x128xf32>
      %158 = vector.shape_cast %157 : vector<1x1x128xf32> to vector<1x128xf32>
      %159 = vector.shape_cast %156 : vector<1x128xf32> to vector<1x1x128xf32>
      tpu.vector_store %arg9[%c1_81, %c0_82, %c896_83], %159 {strides = array<i32>} : memref<2x1x6144xf32, #tpu.memory_space<vmem>>, vector<1x1x128xf32>,
      %160 = vector.extract_strided_slice %119 {offsets = [10, 0], sizes = [1, 128], strides = [1, 1]} : vector<16x128xf32> to vector<1x128xf32>
      %c1_84 = arith.constant 1 : index
      %c0_85 = arith.constant 0 : index
      %c1664_86 = arith.constant 1664 : index
      %161 = vector.load %arg9[%c1_84, %c0_85, %c1664_86] : memref<2x1x6144xf32, #tpu.memory_space<vmem>>, vector<1x1x128xf32>
      %162 = vector.shape_cast %161 : vector<1x1x128xf32> to vector<1x128xf32>
      %163 = vector.shape_cast %160 : vector<1x128xf32> to vector<1x1x128xf32>
      tpu.vector_store %arg9[%c1_84, %c0_85, %c1664_86], %163 {strides = array<i32>} : memref<2x1x6144xf32, #tpu.memory_space<vmem>>, vector<1x1x128xf32>,
      %164 = vector.extract_strided_slice %119 {offsets = [11, 0], sizes = [1, 128], strides = [1, 1]} : vector<16x128xf32> to vector<1x128xf32>
      %c1_87 = arith.constant 1 : index
      %c0_88 = arith.constant 0 : index
      %c2432_89 = arith.constant 2432 : index
      %165 = vector.load %arg9[%c1_87, %c0_88, %c2432_89] : memref<2x1x6144xf32, #tpu.memory_space<vmem>>, vector<1x1x128xf32>
      %166 = vector.shape_cast %165 : vector<1x1x128xf32> to vector<1x128xf32>
      %167 = vector.shape_cast %164 : vector<1x128xf32> to vector<1x1x128xf32>
      tpu.vector_store %arg9[%c1_87, %c0_88, %c2432_89], %167 {strides = array<i32>} : memref<2x1x6144xf32, #tpu.memory_space<vmem>>, vector<1x1x128xf32>,
      %168 = vector.extract_strided_slice %119 {offsets = [12, 0], sizes = [1, 128], strides = [1, 1]} : vector<16x128xf32> to vector<1x128xf32>
      %c1_90 = arith.constant 1 : index
      %c0_91 = arith.constant 0 : index
      %c3200_92 = arith.constant 3200 : index
      %169 = vector.load %arg9[%c1_90, %c0_91, %c3200_92] : memref<2x1x6144xf32, #tpu.memory_space<vmem>>, vector<1x1x128xf32>
      %170 = vector.shape_cast %169 : vector<1x1x128xf32> to vector<1x128xf32>
      %171 = vector.shape_cast %168 : vector<1x128xf32> to vector<1x1x128xf32>
      tpu.vector_store %arg9[%c1_90, %c0_91, %c3200_92], %171 {strides = array<i32>} : memref<2x1x6144xf32, #tpu.memory_space<vmem>>, vector<1x1x128xf32>,
      %172 = vector.extract_strided_slice %119 {offsets = [13, 0], sizes = [1, 128], strides = [1, 1]} : vector<16x128xf32> to vector<1x128xf32>
      %c1_93 = arith.constant 1 : index
      %c0_94 = arith.constant 0 : index
      %c3968_95 = arith.constant 3968 : index
      %173 = vector.load %arg9[%c1_93, %c0_94, %c3968_95] : memref<2x1x6144xf32, #tpu.memory_space<vmem>>, vector<1x1x128xf32>
      %174 = vector.shape_cast %173 : vector<1x1x128xf32> to vector<1x128xf32>
      %175 = vector.shape_cast %172 : vector<1x128xf32> to vector<1x1x128xf32>
      tpu.vector_store %arg9[%c1_93, %c0_94, %c3968_95], %175 {strides = array<i32>} : memref<2x1x6144xf32, #tpu.memory_space<vmem>>, vector<1x1x128xf32>,
      %176 = vector.extract_strided_slice %119 {offsets = [14, 0], sizes = [1, 128], strides = [1, 1]} : vector<16x128xf32> to vector<1x128xf32>
      %c1_96 = arith.constant 1 : index
      %c0_97 = arith.constant 0 : index
      %c4736_98 = arith.constant 4736 : index
      %177 = vector.load %arg9[%c1_96, %c0_97, %c4736_98] : memref<2x1x6144xf32, #tpu.memory_space<vmem>>, vector<1x1x128xf32>
      %178 = vector.shape_cast %177 : vector<1x1x128xf32> to vector<1x128xf32>
      %179 = vector.shape_cast %176 : vector<1x128xf32> to vector<1x1x128xf32>
      tpu.vector_store %arg9[%c1_96, %c0_97, %c4736_98], %179 {strides = array<i32>} : memref<2x1x6144xf32, #tpu.memory_space<vmem>>, vector<1x1x128xf32>,
      %180 = vector.extract_strided_slice %119 {offsets = [15, 0], sizes = [1, 128], strides = [1, 1]} : vector<16x128xf32> to vector<1x128xf32>
      %c1_99 = arith.constant 1 : index
      %c0_100 = arith.constant 0 : index
      %c5504_101 = arith.constant 5504 : index
      %181 = vector.load %arg9[%c1_99, %c0_100, %c5504_101] : memref<2x1x6144xf32, #tpu.memory_space<vmem>>, vector<1x1x128xf32>
      %182 = vector.shape_cast %181 : vector<1x1x128xf32> to vector<1x128xf32>
      %183 = vector.shape_cast %180 : vector<1x128xf32> to vector<1x1x128xf32>
      tpu.vector_store %arg9[%c1_99, %c0_100, %c5504_101], %183 {strides = array<i32>} : memref<2x1x6144xf32, #tpu.memory_space<vmem>>, vector<1x1x128xf32>,
      %c0_102 = arith.constant 0 : index
      %c256 = arith.constant 256 : index
      %184 = vector.load %arg1[%c0_102, %c256] : memref<32x768xf32, #tpu.memory_space<vmem>>, vector<32x128xf32>
      %cst_103 = arith.constant dense<0.000000e+00> : vector<128x128xf32>
      %185 = tpu.matmul %16, %184, %cst_103 {dimension_numbers = #tpu.dot_dimension_numbers<[1], [0], [0], [1], [0, 0, 1, 1], [], []>} : vector<128x32xf32>, vector<32x128xf32>, vector<128x128xf32> -> vector<128x128xf32>
      %186 = vector.extract_strided_slice %185 {offsets = [0, 0], sizes = [16, 128], strides = [1, 1]} : vector<128x128xf32> to vector<16x128xf32>
      %187 = vector.extract_strided_slice %185 {offsets = [16, 0], sizes = [16, 128], strides = [1, 1]} : vector<128x128xf32> to vector<16x128xf32>
      %188 = arith.maximumf %186, %187 : vector<16x128xf32>
      %189 = vector.extract_strided_slice %185 {offsets = [32, 0], sizes = [16, 128], strides = [1, 1]} : vector<128x128xf32> to vector<16x128xf32>
      %190 = arith.maximumf %188, %189 : vector<16x128xf32>
      %191 = vector.extract_strided_slice %185 {offsets = [48, 0], sizes = [16, 128], strides = [1, 1]} : vector<128x128xf32> to vector<16x128xf32>
      %192 = arith.maximumf %190, %191 : vector<16x128xf32>
      %193 = vector.extract_strided_slice %185 {offsets = [64, 0], sizes = [16, 128], strides = [1, 1]} : vector<128x128xf32> to vector<16x128xf32>
      %194 = arith.maximumf %192, %193 : vector<16x128xf32>
      %195 = vector.extract_strided_slice %185 {offsets = [80, 0], sizes = [16, 128], strides = [1, 1]} : vector<128x128xf32> to vector<16x128xf32>
      %196 = arith.maximumf %194, %195 : vector<16x128xf32>
      %197 = vector.extract_strided_slice %185 {offsets = [96, 0], sizes = [16, 128], strides = [1, 1]} : vector<128x128xf32> to vector<16x128xf32>
      %198 = arith.maximumf %196, %197 : vector<16x128xf32>
      %199 = vector.extract_strided_slice %185 {offsets = [112, 0], sizes = [16, 128], strides = [1, 1]} : vector<128x128xf32> to vector<16x128xf32>
      %200 = arith.maximumf %198, %199 : vector<16x128xf32>
      %201 = vector.broadcast %17 : vector<16x1xf32> to vector<16x128xf32>
      %202 = arith.addf %200, %201 : vector<16x128xf32>
      %203 = vector.extract_strided_slice %202 {offsets = [0, 0], sizes = [1, 128], strides = [1, 1]} : vector<16x128xf32> to vector<1x128xf32>
      %c0_104 = arith.constant 0 : index
      %c0_105 = arith.constant 0 : index
      %c256_106 = arith.constant 256 : index
      %204 = vector.load %arg9[%c0_104, %c0_105, %c256_106] : memref<2x1x6144xf32, #tpu.memory_space<vmem>>, vector<1x1x128xf32>
      %205 = vector.shape_cast %204 : vector<1x1x128xf32> to vector<1x128xf32>
      %206 = vector.shape_cast %203 : vector<1x128xf32> to vector<1x1x128xf32>
      tpu.vector_store %arg9[%c0_104, %c0_105, %c256_106], %206 {strides = array<i32>} : memref<2x1x6144xf32, #tpu.memory_space<vmem>>, vector<1x1x128xf32>,
      %207 = vector.extract_strided_slice %202 {offsets = [1, 0], sizes = [1, 128], strides = [1, 1]} : vector<16x128xf32> to vector<1x128xf32>
      %c0_107 = arith.constant 0 : index
      %c0_108 = arith.constant 0 : index
      %c1024 = arith.constant 1024 : index
      %208 = vector.load %arg9[%c0_107, %c0_108, %c1024] : memref<2x1x6144xf32, #tpu.memory_space<vmem>>, vector<1x1x128xf32>
      %209 = vector.shape_cast %208 : vector<1x1x128xf32> to vector<1x128xf32>
      %210 = vector.shape_cast %207 : vector<1x128xf32> to vector<1x1x128xf32>
      tpu.vector_store %arg9[%c0_107, %c0_108, %c1024], %210 {strides = array<i32>} : memref<2x1x6144xf32, #tpu.memory_space<vmem>>, vector<1x1x128xf32>,
      %211 = vector.extract_strided_slice %202 {offsets = [2, 0], sizes = [1, 128], strides = [1, 1]} : vector<16x128xf32> to vector<1x128xf32>
      %c0_109 = arith.constant 0 : index
      %c0_110 = arith.constant 0 : index
      %c1792 = arith.constant 1792 : index
      %212 = vector.load %arg9[%c0_109, %c0_110, %c1792] : memref<2x1x6144xf32, #tpu.memory_space<vmem>>, vector<1x1x128xf32>
      %213 = vector.shape_cast %212 : vector<1x1x128xf32> to vector<1x128xf32>
      %214 = vector.shape_cast %211 : vector<1x128xf32> to vector<1x1x128xf32>
      tpu.vector_store %arg9[%c0_109, %c0_110, %c1792], %214 {strides = array<i32>} : memref<2x1x6144xf32, #tpu.memory_space<vmem>>, vector<1x1x128xf32>,
      %215 = vector.extract_strided_slice %202 {offsets = [3, 0], sizes = [1, 128], strides = [1, 1]} : vector<16x128xf32> to vector<1x128xf32>
      %c0_111 = arith.constant 0 : index
      %c0_112 = arith.constant 0 : index
      %c2560 = arith.constant 2560 : index
      %216 = vector.load %arg9[%c0_111, %c0_112, %c2560] : memref<2x1x6144xf32, #tpu.memory_space<vmem>>, vector<1x1x128xf32>
      %217 = vector.shape_cast %216 : vector<1x1x128xf32> to vector<1x128xf32>
      %218 = vector.shape_cast %215 : vector<1x128xf32> to vector<1x1x128xf32>
      tpu.vector_store %arg9[%c0_111, %c0_112, %c2560], %218 {strides = array<i32>} : memref<2x1x6144xf32, #tpu.memory_space<vmem>>, vector<1x1x128xf32>,
      %219 = vector.extract_strided_slice %202 {offsets = [4, 0], sizes = [1, 128], strides = [1, 1]} : vector<16x128xf32> to vector<1x128xf32>
      %c0_113 = arith.constant 0 : index
      %c0_114 = arith.constant 0 : index
      %c3328 = arith.constant 3328 : index
      %220 = vector.load %arg9[%c0_113, %c0_114, %c3328] : memref<2x1x6144xf32, #tpu.memory_space<vmem>>, vector<1x1x128xf32>
      %221 = vector.shape_cast %220 : vector<1x1x128xf32> to vector<1x128xf32>
      %222 = vector.shape_cast %219 : vector<1x128xf32> to vector<1x1x128xf32>
      tpu.vector_store %arg9[%c0_113, %c0_114, %c3328], %222 {strides = array<i32>} : memref<2x1x6144xf32, #tpu.memory_space<vmem>>, vector<1x1x128xf32>,
      %223 = vector.extract_strided_slice %202 {offsets = [5, 0], sizes = [1, 128], strides = [1, 1]} : vector<16x128xf32> to vector<1x128xf32>
      %c0_115 = arith.constant 0 : index
      %c0_116 = arith.constant 0 : index
      %c4096 = arith.constant 4096 : index
      %224 = vector.load %arg9[%c0_115, %c0_116, %c4096] : memref<2x1x6144xf32, #tpu.memory_space<vmem>>, vector<1x1x128xf32>
      %225 = vector.shape_cast %224 : vector<1x1x128xf32> to vector<1x128xf32>
      %226 = vector.shape_cast %223 : vector<1x128xf32> to vector<1x1x128xf32>
      tpu.vector_store %arg9[%c0_115, %c0_116, %c4096], %226 {strides = array<i32>} : memref<2x1x6144xf32, #tpu.memory_space<vmem>>, vector<1x1x128xf32>,
      %227 = vector.extract_strided_slice %202 {offsets = [6, 0], sizes = [1, 128], strides = [1, 1]} : vector<16x128xf32> to vector<1x128xf32>
      %c0_117 = arith.constant 0 : index
      %c0_118 = arith.constant 0 : index
      %c4864 = arith.constant 4864 : index
      %228 = vector.load %arg9[%c0_117, %c0_118, %c4864] : memref<2x1x6144xf32, #tpu.memory_space<vmem>>, vector<1x1x128xf32>
      %229 = vector.shape_cast %228 : vector<1x1x128xf32> to vector<1x128xf32>
      %230 = vector.shape_cast %227 : vector<1x128xf32> to vector<1x1x128xf32>
      tpu.vector_store %arg9[%c0_117, %c0_118, %c4864], %230 {strides = array<i32>} : memref<2x1x6144xf32, #tpu.memory_space<vmem>>, vector<1x1x128xf32>,
      %231 = vector.extract_strided_slice %202 {offsets = [7, 0], sizes = [1, 128], strides = [1, 1]} : vector<16x128xf32> to vector<1x128xf32>
      %c0_119 = arith.constant 0 : index
      %c0_120 = arith.constant 0 : index
      %c5632 = arith.constant 5632 : index
      %232 = vector.load %arg9[%c0_119, %c0_120, %c5632] : memref<2x1x6144xf32, #tpu.memory_space<vmem>>, vector<1x1x128xf32>
      %233 = vector.shape_cast %232 : vector<1x1x128xf32> to vector<1x128xf32>
      %234 = vector.shape_cast %231 : vector<1x128xf32> to vector<1x1x128xf32>
      tpu.vector_store %arg9[%c0_119, %c0_120, %c5632], %234 {strides = array<i32>} : memref<2x1x6144xf32, #tpu.memory_space<vmem>>, vector<1x1x128xf32>,
      %235 = vector.extract_strided_slice %202 {offsets = [8, 0], sizes = [1, 128], strides = [1, 1]} : vector<16x128xf32> to vector<1x128xf32>
      %c1_121 = arith.constant 1 : index
      %c0_122 = arith.constant 0 : index
      %c256_123 = arith.constant 256 : index
      %236 = vector.load %arg9[%c1_121, %c0_122, %c256_123] : memref<2x1x6144xf32, #tpu.memory_space<vmem>>, vector<1x1x128xf32>
      %237 = vector.shape_cast %236 : vector<1x1x128xf32> to vector<1x128xf32>
      %238 = vector.shape_cast %235 : vector<1x128xf32> to vector<1x1x128xf32>
      tpu.vector_store %arg9[%c1_121, %c0_122, %c256_123], %238 {strides = array<i32>} : memref<2x1x6144xf32, #tpu.memory_space<vmem>>, vector<1x1x128xf32>,
      %239 = vector.extract_strided_slice %202 {offsets = [9, 0], sizes = [1, 128], strides = [1, 1]} : vector<16x128xf32> to vector<1x128xf32>
      %c1_124 = arith.constant 1 : index
      %c0_125 = arith.constant 0 : index
      %c1024_126 = arith.constant 1024 : index
      %240 = vector.load %arg9[%c1_124, %c0_125, %c1024_126] : memref<2x1x6144xf32, #tpu.memory_space<vmem>>, vector<1x1x128xf32>
      %241 = vector.shape_cast %240 : vector<1x1x128xf32> to vector<1x128xf32>
      %242 = vector.shape_cast %239 : vector<1x128xf32> to vector<1x1x128xf32>
      tpu.vector_store %arg9[%c1_124, %c0_125, %c1024_126], %242 {strides = array<i32>} : memref<2x1x6144xf32, #tpu.memory_space<vmem>>, vector<1x1x128xf32>,
      %243 = vector.extract_strided_slice %202 {offsets = [10, 0], sizes = [1, 128], strides = [1, 1]} : vector<16x128xf32> to vector<1x128xf32>
      %c1_127 = arith.constant 1 : index
      %c0_128 = arith.constant 0 : index
      %c1792_129 = arith.constant 1792 : index
      %244 = vector.load %arg9[%c1_127, %c0_128, %c1792_129] : memref<2x1x6144xf32, #tpu.memory_space<vmem>>, vector<1x1x128xf32>
      %245 = vector.shape_cast %244 : vector<1x1x128xf32> to vector<1x128xf32>
      %246 = vector.shape_cast %243 : vector<1x128xf32> to vector<1x1x128xf32>
      tpu.vector_store %arg9[%c1_127, %c0_128, %c1792_129], %246 {strides = array<i32>} : memref<2x1x6144xf32, #tpu.memory_space<vmem>>, vector<1x1x128xf32>,
      %247 = vector.extract_strided_slice %202 {offsets = [11, 0], sizes = [1, 128], strides = [1, 1]} : vector<16x128xf32> to vector<1x128xf32>
      %c1_130 = arith.constant 1 : index
      %c0_131 = arith.constant 0 : index
      %c2560_132 = arith.constant 2560 : index
      %248 = vector.load %arg9[%c1_130, %c0_131, %c2560_132] : memref<2x1x6144xf32, #tpu.memory_space<vmem>>, vector<1x1x128xf32>
      %249 = vector.shape_cast %248 : vector<1x1x128xf32> to vector<1x128xf32>
      %250 = vector.shape_cast %247 : vector<1x128xf32> to vector<1x1x128xf32>
      tpu.vector_store %arg9[%c1_130, %c0_131, %c2560_132], %250 {strides = array<i32>} : memref<2x1x6144xf32, #tpu.memory_space<vmem>>, vector<1x1x128xf32>,
      %251 = vector.extract_strided_slice %202 {offsets = [12, 0], sizes = [1, 128], strides = [1, 1]} : vector<16x128xf32> to vector<1x128xf32>
      %c1_133 = arith.constant 1 : index
      %c0_134 = arith.constant 0 : index
      %c3328_135 = arith.constant 3328 : index
      %252 = vector.load %arg9[%c1_133, %c0_134, %c3328_135] : memref<2x1x6144xf32, #tpu.memory_space<vmem>>, vector<1x1x128xf32>
      %253 = vector.shape_cast %252 : vector<1x1x128xf32> to vector<1x128xf32>
      %254 = vector.shape_cast %251 : vector<1x128xf32> to vector<1x1x128xf32>
      tpu.vector_store %arg9[%c1_133, %c0_134, %c3328_135], %254 {strides = array<i32>} : memref<2x1x6144xf32, #tpu.memory_space<vmem>>, vector<1x1x128xf32>,
      %255 = vector.extract_strided_slice %202 {offsets = [13, 0], sizes = [1, 128], strides = [1, 1]} : vector<16x128xf32> to vector<1x128xf32>
      %c1_136 = arith.constant 1 : index
      %c0_137 = arith.constant 0 : index
      %c4096_138 = arith.constant 4096 : index
      %256 = vector.load %arg9[%c1_136, %c0_137, %c4096_138] : memref<2x1x6144xf32, #tpu.memory_space<vmem>>, vector<1x1x128xf32>
      %257 = vector.shape_cast %256 : vector<1x1x128xf32> to vector<1x128xf32>
      %258 = vector.shape_cast %255 : vector<1x128xf32> to vector<1x1x128xf32>
      tpu.vector_store %arg9[%c1_136, %c0_137, %c4096_138], %258 {strides = array<i32>} : memref<2x1x6144xf32, #tpu.memory_space<vmem>>, vector<1x1x128xf32>,
      %259 = vector.extract_strided_slice %202 {offsets = [14, 0], sizes = [1, 128], strides = [1, 1]} : vector<16x128xf32> to vector<1x128xf32>
      %c1_139 = arith.constant 1 : index
      %c0_140 = arith.constant 0 : index
      %c4864_141 = arith.constant 4864 : index
      %260 = vector.load %arg9[%c1_139, %c0_140, %c4864_141] : memref<2x1x6144xf32, #tpu.memory_space<vmem>>, vector<1x1x128xf32>
      %261 = vector.shape_cast %260 : vector<1x1x128xf32> to vector<1x128xf32>
      %262 = vector.shape_cast %259 : vector<1x128xf32> to vector<1x1x128xf32>
      tpu.vector_store %arg9[%c1_139, %c0_140, %c4864_141], %262 {strides = array<i32>} : memref<2x1x6144xf32, #tpu.memory_space<vmem>>, vector<1x1x128xf32>,
      %263 = vector.extract_strided_slice %202 {offsets = [15, 0], sizes = [1, 128], strides = [1, 1]} : vector<16x128xf32> to vector<1x128xf32>
      %c1_142 = arith.constant 1 : index
      %c0_143 = arith.constant 0 : index
      %c5632_144 = arith.constant 5632 : index
      %264 = vector.load %arg9[%c1_142, %c0_143, %c5632_144] : memref<2x1x6144xf32, #tpu.memory_space<vmem>>, vector<1x1x128xf32>
      %265 = vector.shape_cast %264 : vector<1x1x128xf32> to vector<1x128xf32>
      %266 = vector.shape_cast %263 : vector<1x128xf32> to vector<1x1x128xf32>
      tpu.vector_store %arg9[%c1_142, %c0_143, %c5632_144], %266 {strides = array<i32>} : memref<2x1x6144xf32, #tpu.memory_space<vmem>>, vector<1x1x128xf32>,
      %c0_145 = arith.constant 0 : index
      %c384 = arith.constant 384 : index
      %267 = vector.load %arg1[%c0_145, %c384] : memref<32x768xf32, #tpu.memory_space<vmem>>, vector<32x128xf32>
      %cst_146 = arith.constant dense<0.000000e+00> : vector<128x128xf32>
      %268 = tpu.matmul %16, %267, %cst_146 {dimension_numbers = #tpu.dot_dimension_numbers<[1], [0], [0], [1], [0, 0, 1, 1], [], []>} : vector<128x32xf32>, vector<32x128xf32>, vector<128x128xf32> -> vector<128x128xf32>
      %269 = vector.extract_strided_slice %268 {offsets = [0, 0], sizes = [16, 128], strides = [1, 1]} : vector<128x128xf32> to vector<16x128xf32>
      %270 = vector.extract_strided_slice %268 {offsets = [16, 0], sizes = [16, 128], strides = [1, 1]} : vector<128x128xf32> to vector<16x128xf32>
      %271 = arith.maximumf %269, %270 : vector<16x128xf32>
      %272 = vector.extract_strided_slice %268 {offsets = [32, 0], sizes = [16, 128], strides = [1, 1]} : vector<128x128xf32> to vector<16x128xf32>
      %273 = arith.maximumf %271, %272 : vector<16x128xf32>
      %274 = vector.extract_strided_slice %268 {offsets = [48, 0], sizes = [16, 128], strides = [1, 1]} : vector<128x128xf32> to vector<16x128xf32>
      %275 = arith.maximumf %273, %274 : vector<16x128xf32>
      %276 = vector.extract_strided_slice %268 {offsets = [64, 0], sizes = [16, 128], strides = [1, 1]} : vector<128x128xf32> to vector<16x128xf32>
      %277 = arith.maximumf %275, %276 : vector<16x128xf32>
      %278 = vector.extract_strided_slice %268 {offsets = [80, 0], sizes = [16, 128], strides = [1, 1]} : vector<128x128xf32> to vector<16x128xf32>
      %279 = arith.maximumf %277, %278 : vector<16x128xf32>
      %280 = vector.extract_strided_slice %268 {offsets = [96, 0], sizes = [16, 128], strides = [1, 1]} : vector<128x128xf32> to vector<16x128xf32>
      %281 = arith.maximumf %279, %280 : vector<16x128xf32>
      %282 = vector.extract_strided_slice %268 {offsets = [112, 0], sizes = [16, 128], strides = [1, 1]} : vector<128x128xf32> to vector<16x128xf32>
      %283 = arith.maximumf %281, %282 : vector<16x128xf32>
      %284 = vector.broadcast %17 : vector<16x1xf32> to vector<16x128xf32>
      %285 = arith.addf %283, %284 : vector<16x128xf32>
      %286 = vector.extract_strided_slice %285 {offsets = [0, 0], sizes = [1, 128], strides = [1, 1]} : vector<16x128xf32> to vector<1x128xf32>
      %c0_147 = arith.constant 0 : index
      %c0_148 = arith.constant 0 : index
      %c384_149 = arith.constant 384 : index
      %287 = vector.load %arg9[%c0_147, %c0_148, %c384_149] : memref<2x1x6144xf32, #tpu.memory_space<vmem>>, vector<1x1x128xf32>
      %288 = vector.shape_cast %287 : vector<1x1x128xf32> to vector<1x128xf32>
      %289 = vector.shape_cast %286 : vector<1x128xf32> to vector<1x1x128xf32>
      tpu.vector_store %arg9[%c0_147, %c0_148, %c384_149], %289 {strides = array<i32>} : memref<2x1x6144xf32, #tpu.memory_space<vmem>>, vector<1x1x128xf32>,
      %290 = vector.extract_strided_slice %285 {offsets = [1, 0], sizes = [1, 128], strides = [1, 1]} : vector<16x128xf32> to vector<1x128xf32>
      %c0_150 = arith.constant 0 : index
      %c0_151 = arith.constant 0 : index
      %c1152 = arith.constant 1152 : index
      %291 = vector.load %arg9[%c0_150, %c0_151, %c1152] : memref<2x1x6144xf32, #tpu.memory_space<vmem>>, vector<1x1x128xf32>
      %292 = vector.shape_cast %291 : vector<1x1x128xf32> to vector<1x128xf32>
      %293 = vector.shape_cast %290 : vector<1x128xf32> to vector<1x1x128xf32>
      tpu.vector_store %arg9[%c0_150, %c0_151, %c1152], %293 {strides = array<i32>} : memref<2x1x6144xf32, #tpu.memory_space<vmem>>, vector<1x1x128xf32>,
      %294 = vector.extract_strided_slice %285 {offsets = [2, 0], sizes = [1, 128], strides = [1, 1]} : vector<16x128xf32> to vector<1x128xf32>
      %c0_152 = arith.constant 0 : index
      %c0_153 = arith.constant 0 : index
      %c1920 = arith.constant 1920 : index
      %295 = vector.load %arg9[%c0_152, %c0_153, %c1920] : memref<2x1x6144xf32, #tpu.memory_space<vmem>>, vector<1x1x128xf32>
      %296 = vector.shape_cast %295 : vector<1x1x128xf32> to vector<1x128xf32>
      %297 = vector.shape_cast %294 : vector<1x128xf32> to vector<1x1x128xf32>
      tpu.vector_store %arg9[%c0_152, %c0_153, %c1920], %297 {strides = array<i32>} : memref<2x1x6144xf32, #tpu.memory_space<vmem>>, vector<1x1x128xf32>,
      %298 = vector.extract_strided_slice %285 {offsets = [3, 0], sizes = [1, 128], strides = [1, 1]} : vector<16x128xf32> to vector<1x128xf32>
      %c0_154 = arith.constant 0 : index
      %c0_155 = arith.constant 0 : index
      %c2688 = arith.constant 2688 : index
      %299 = vector.load %arg9[%c0_154, %c0_155, %c2688] : memref<2x1x6144xf32, #tpu.memory_space<vmem>>, vector<1x1x128xf32>
      %300 = vector.shape_cast %299 : vector<1x1x128xf32> to vector<1x128xf32>
      %301 = vector.shape_cast %298 : vector<1x128xf32> to vector<1x1x128xf32>
      tpu.vector_store %arg9[%c0_154, %c0_155, %c2688], %301 {strides = array<i32>} : memref<2x1x6144xf32, #tpu.memory_space<vmem>>, vector<1x1x128xf32>,
      %302 = vector.extract_strided_slice %285 {offsets = [4, 0], sizes = [1, 128], strides = [1, 1]} : vector<16x128xf32> to vector<1x128xf32>
      %c0_156 = arith.constant 0 : index
      %c0_157 = arith.constant 0 : index
      %c3456 = arith.constant 3456 : index
      %303 = vector.load %arg9[%c0_156, %c0_157, %c3456] : memref<2x1x6144xf32, #tpu.memory_space<vmem>>, vector<1x1x128xf32>
      %304 = vector.shape_cast %303 : vector<1x1x128xf32> to vector<1x128xf32>
      %305 = vector.shape_cast %302 : vector<1x128xf32> to vector<1x1x128xf32>
      tpu.vector_store %arg9[%c0_156, %c0_157, %c3456], %305 {strides = array<i32>} : memref<2x1x6144xf32, #tpu.memory_space<vmem>>, vector<1x1x128xf32>,
      %306 = vector.extract_strided_slice %285 {offsets = [5, 0], sizes = [1, 128], strides = [1, 1]} : vector<16x128xf32> to vector<1x128xf32>
      %c0_158 = arith.constant 0 : index
      %c0_159 = arith.constant 0 : index
      %c4224 = arith.constant 4224 : index
      %307 = vector.load %arg9[%c0_158, %c0_159, %c4224] : memref<2x1x6144xf32, #tpu.memory_space<vmem>>, vector<1x1x128xf32>
      %308 = vector.shape_cast %307 : vector<1x1x128xf32> to vector<1x128xf32>
      %309 = vector.shape_cast %306 : vector<1x128xf32> to vector<1x1x128xf32>
      tpu.vector_store %arg9[%c0_158, %c0_159, %c4224], %309 {strides = array<i32>} : memref<2x1x6144xf32, #tpu.memory_space<vmem>>, vector<1x1x128xf32>,
      %310 = vector.extract_strided_slice %285 {offsets = [6, 0], sizes = [1, 128], strides = [1, 1]} : vector<16x128xf32> to vector<1x128xf32>
      %c0_160 = arith.constant 0 : index
      %c0_161 = arith.constant 0 : index
      %c4992 = arith.constant 4992 : index
      %311 = vector.load %arg9[%c0_160, %c0_161, %c4992] : memref<2x1x6144xf32, #tpu.memory_space<vmem>>, vector<1x1x128xf32>
      %312 = vector.shape_cast %311 : vector<1x1x128xf32> to vector<1x128xf32>
      %313 = vector.shape_cast %310 : vector<1x128xf32> to vector<1x1x128xf32>
      tpu.vector_store %arg9[%c0_160, %c0_161, %c4992], %313 {strides = array<i32>} : memref<2x1x6144xf32, #tpu.memory_space<vmem>>, vector<1x1x128xf32>,
      %314 = vector.extract_strided_slice %285 {offsets = [7, 0], sizes = [1, 128], strides = [1, 1]} : vector<16x128xf32> to vector<1x128xf32>
      %c0_162 = arith.constant 0 : index
      %c0_163 = arith.constant 0 : index
      %c5760 = arith.constant 5760 : index
      %315 = vector.load %arg9[%c0_162, %c0_163, %c5760] : memref<2x1x6144xf32, #tpu.memory_space<vmem>>, vector<1x1x128xf32>
      %316 = vector.shape_cast %315 : vector<1x1x128xf32> to vector<1x128xf32>
      %317 = vector.shape_cast %314 : vector<1x128xf32> to vector<1x1x128xf32>
      tpu.vector_store %arg9[%c0_162, %c0_163, %c5760], %317 {strides = array<i32>} : memref<2x1x6144xf32, #tpu.memory_space<vmem>>, vector<1x1x128xf32>,
      %318 = vector.extract_strided_slice %285 {offsets = [8, 0], sizes = [1, 128], strides = [1, 1]} : vector<16x128xf32> to vector<1x128xf32>
      %c1_164 = arith.constant 1 : index
      %c0_165 = arith.constant 0 : index
      %c384_166 = arith.constant 384 : index
      %319 = vector.load %arg9[%c1_164, %c0_165, %c384_166] : memref<2x1x6144xf32, #tpu.memory_space<vmem>>, vector<1x1x128xf32>
      %320 = vector.shape_cast %319 : vector<1x1x128xf32> to vector<1x128xf32>
      %321 = vector.shape_cast %318 : vector<1x128xf32> to vector<1x1x128xf32>
      tpu.vector_store %arg9[%c1_164, %c0_165, %c384_166], %321 {strides = array<i32>} : memref<2x1x6144xf32, #tpu.memory_space<vmem>>, vector<1x1x128xf32>,
      %322 = vector.extract_strided_slice %285 {offsets = [9, 0], sizes = [1, 128], strides = [1, 1]} : vector<16x128xf32> to vector<1x128xf32>
      %c1_167 = arith.constant 1 : index
      %c0_168 = arith.constant 0 : index
      %c1152_169 = arith.constant 1152 : index
      %323 = vector.load %arg9[%c1_167, %c0_168, %c1152_169] : memref<2x1x6144xf32, #tpu.memory_space<vmem>>, vector<1x1x128xf32>
      %324 = vector.shape_cast %323 : vector<1x1x128xf32> to vector<1x128xf32>
      %325 = vector.shape_cast %322 : vector<1x128xf32> to vector<1x1x128xf32>
      tpu.vector_store %arg9[%c1_167, %c0_168, %c1152_169], %325 {strides = array<i32>} : memref<2x1x6144xf32, #tpu.memory_space<vmem>>, vector<1x1x128xf32>,
      %326 = vector.extract_strided_slice %285 {offsets = [10, 0], sizes = [1, 128], strides = [1, 1]} : vector<16x128xf32> to vector<1x128xf32>
      %c1_170 = arith.constant 1 : index
      %c0_171 = arith.constant 0 : index
      %c1920_172 = arith.constant 1920 : index
      %327 = vector.load %arg9[%c1_170, %c0_171, %c1920_172] : memref<2x1x6144xf32, #tpu.memory_space<vmem>>, vector<1x1x128xf32>
      %328 = vector.shape_cast %327 : vector<1x1x128xf32> to vector<1x128xf32>
      %329 = vector.shape_cast %326 : vector<1x128xf32> to vector<1x1x128xf32>
      tpu.vector_store %arg9[%c1_170, %c0_171, %c1920_172], %329 {strides = array<i32>} : memref<2x1x6144xf32, #tpu.memory_space<vmem>>, vector<1x1x128xf32>,
      %330 = vector.extract_strided_slice %285 {offsets = [11, 0], sizes = [1, 128], strides = [1, 1]} : vector<16x128xf32> to vector<1x128xf32>
      %c1_173 = arith.constant 1 : index
      %c0_174 = arith.constant 0 : index
      %c2688_175 = arith.constant 2688 : index
      %331 = vector.load %arg9[%c1_173, %c0_174, %c2688_175] : memref<2x1x6144xf32, #tpu.memory_space<vmem>>, vector<1x1x128xf32>
      %332 = vector.shape_cast %331 : vector<1x1x128xf32> to vector<1x128xf32>
      %333 = vector.shape_cast %330 : vector<1x128xf32> to vector<1x1x128xf32>
      tpu.vector_store %arg9[%c1_173, %c0_174, %c2688_175], %333 {strides = array<i32>} : memref<2x1x6144xf32, #tpu.memory_space<vmem>>, vector<1x1x128xf32>,
      %334 = vector.extract_strided_slice %285 {offsets = [12, 0], sizes = [1, 128], strides = [1, 1]} : vector<16x128xf32> to vector<1x128xf32>
      %c1_176 = arith.constant 1 : index
      %c0_177 = arith.constant 0 : index
      %c3456_178 = arith.constant 3456 : index
      %335 = vector.load %arg9[%c1_176, %c0_177, %c3456_178] : memref<2x1x6144xf32, #tpu.memory_space<vmem>>, vector<1x1x128xf32>
      %336 = vector.shape_cast %335 : vector<1x1x128xf32> to vector<1x128xf32>
      %337 = vector.shape_cast %334 : vector<1x128xf32> to vector<1x1x128xf32>
      tpu.vector_store %arg9[%c1_176, %c0_177, %c3456_178], %337 {strides = array<i32>} : memref<2x1x6144xf32, #tpu.memory_space<vmem>>, vector<1x1x128xf32>,
      %338 = vector.extract_strided_slice %285 {offsets = [13, 0], sizes = [1, 128], strides = [1, 1]} : vector<16x128xf32> to vector<1x128xf32>
      %c1_179 = arith.constant 1 : index
      %c0_180 = arith.constant 0 : index
      %c4224_181 = arith.constant 4224 : index
      %339 = vector.load %arg9[%c1_179, %c0_180, %c4224_181] : memref<2x1x6144xf32, #tpu.memory_space<vmem>>, vector<1x1x128xf32>
      %340 = vector.shape_cast %339 : vector<1x1x128xf32> to vector<1x128xf32>
      %341 = vector.shape_cast %338 : vector<1x128xf32> to vector<1x1x128xf32>
      tpu.vector_store %arg9[%c1_179, %c0_180, %c4224_181], %341 {strides = array<i32>} : memref<2x1x6144xf32, #tpu.memory_space<vmem>>, vector<1x1x128xf32>,
      %342 = vector.extract_strided_slice %285 {offsets = [14, 0], sizes = [1, 128], strides = [1, 1]} : vector<16x128xf32> to vector<1x128xf32>
      %c1_182 = arith.constant 1 : index
      %c0_183 = arith.constant 0 : index
      %c4992_184 = arith.constant 4992 : index
      %343 = vector.load %arg9[%c1_182, %c0_183, %c4992_184] : memref<2x1x6144xf32, #tpu.memory_space<vmem>>, vector<1x1x128xf32>
      %344 = vector.shape_cast %343 : vector<1x1x128xf32> to vector<1x128xf32>
      %345 = vector.shape_cast %342 : vector<1x128xf32> to vector<1x1x128xf32>
      tpu.vector_store %arg9[%c1_182, %c0_183, %c4992_184], %345 {strides = array<i32>} : memref<2x1x6144xf32, #tpu.memory_space<vmem>>, vector<1x1x128xf32>,
      %346 = vector.extract_strided_slice %285 {offsets = [15, 0], sizes = [1, 128], strides = [1, 1]} : vector<16x128xf32> to vector<1x128xf32>
      %c1_185 = arith.constant 1 : index
      %c0_186 = arith.constant 0 : index
      %c5760_187 = arith.constant 5760 : index
      %347 = vector.load %arg9[%c1_185, %c0_186, %c5760_187] : memref<2x1x6144xf32, #tpu.memory_space<vmem>>, vector<1x1x128xf32>
      %348 = vector.shape_cast %347 : vector<1x1x128xf32> to vector<1x128xf32>
      %349 = vector.shape_cast %346 : vector<1x128xf32> to vector<1x1x128xf32>
      tpu.vector_store %arg9[%c1_185, %c0_186, %c5760_187], %349 {strides = array<i32>} : memref<2x1x6144xf32, #tpu.memory_space<vmem>>, vector<1x1x128xf32>,
      %c0_188 = arith.constant 0 : index
      %c512 = arith.constant 512 : index
      %350 = vector.load %arg1[%c0_188, %c512] : memref<32x768xf32, #tpu.memory_space<vmem>>, vector<32x128xf32>
      %cst_189 = arith.constant dense<0.000000e+00> : vector<128x128xf32>
      %351 = tpu.matmul %16, %350, %cst_189 {dimension_numbers = #tpu.dot_dimension_numbers<[1], [0], [0], [1], [0, 0, 1, 1], [], []>} : vector<128x32xf32>, vector<32x128xf32>, vector<128x128xf32> -> vector<128x128xf32>
      %352 = vector.extract_strided_slice %351 {offsets = [0, 0], sizes = [16, 128], strides = [1, 1]} : vector<128x128xf32> to vector<16x128xf32>
      %353 = vector.extract_strided_slice %351 {offsets = [16, 0], sizes = [16, 128], strides = [1, 1]} : vector<128x128xf32> to vector<16x128xf32>
      %354 = arith.maximumf %352, %353 : vector<16x128xf32>
      %355 = vector.extract_strided_slice %351 {offsets = [32, 0], sizes = [16, 128], strides = [1, 1]} : vector<128x128xf32> to vector<16x128xf32>
      %356 = arith.maximumf %354, %355 : vector<16x128xf32>
      %357 = vector.extract_strided_slice %351 {offsets = [48, 0], sizes = [16, 128], strides = [1, 1]} : vector<128x128xf32> to vector<16x128xf32>
      %358 = arith.maximumf %356, %357 : vector<16x128xf32>
      %359 = vector.extract_strided_slice %351 {offsets = [64, 0], sizes = [16, 128], strides = [1, 1]} : vector<128x128xf32> to vector<16x128xf32>
      %360 = arith.maximumf %358, %359 : vector<16x128xf32>
      %361 = vector.extract_strided_slice %351 {offsets = [80, 0], sizes = [16, 128], strides = [1, 1]} : vector<128x128xf32> to vector<16x128xf32>
      %362 = arith.maximumf %360, %361 : vector<16x128xf32>
      %363 = vector.extract_strided_slice %351 {offsets = [96, 0], sizes = [16, 128], strides = [1, 1]} : vector<128x128xf32> to vector<16x128xf32>
      %364 = arith.maximumf %362, %363 : vector<16x128xf32>
      %365 = vector.extract_strided_slice %351 {offsets = [112, 0], sizes = [16, 128], strides = [1, 1]} : vector<128x128xf32> to vector<16x128xf32>
      %366 = arith.maximumf %364, %365 : vector<16x128xf32>
      %367 = vector.broadcast %17 : vector<16x1xf32> to vector<16x128xf32>
      %368 = arith.addf %366, %367 : vector<16x128xf32>
      %369 = vector.extract_strided_slice %368 {offsets = [0, 0], sizes = [1, 128], strides = [1, 1]} : vector<16x128xf32> to vector<1x128xf32>
      %c0_190 = arith.constant 0 : index
      %c0_191 = arith.constant 0 : index
      %c512_192 = arith.constant 512 : index
      %370 = vector.load %arg9[%c0_190, %c0_191, %c512_192] : memref<2x1x6144xf32, #tpu.memory_space<vmem>>, vector<1x1x128xf32>
      %371 = vector.shape_cast %370 : vector<1x1x128xf32> to vector<1x128xf32>
      %372 = vector.shape_cast %369 : vector<1x128xf32> to vector<1x1x128xf32>
      tpu.vector_store %arg9[%c0_190, %c0_191, %c512_192], %372 {strides = array<i32>} : memref<2x1x6144xf32, #tpu.memory_space<vmem>>, vector<1x1x128xf32>,
      %373 = vector.extract_strided_slice %368 {offsets = [1, 0], sizes = [1, 128], strides = [1, 1]} : vector<16x128xf32> to vector<1x128xf32>
      %c0_193 = arith.constant 0 : index
      %c0_194 = arith.constant 0 : index
      %c1280 = arith.constant 1280 : index
      %374 = vector.load %arg9[%c0_193, %c0_194, %c1280] : memref<2x1x6144xf32, #tpu.memory_space<vmem>>, vector<1x1x128xf32>
      %375 = vector.shape_cast %374 : vector<1x1x128xf32> to vector<1x128xf32>
      %376 = vector.shape_cast %373 : vector<1x128xf32> to vector<1x1x128xf32>
      tpu.vector_store %arg9[%c0_193, %c0_194, %c1280], %376 {strides = array<i32>} : memref<2x1x6144xf32, #tpu.memory_space<vmem>>, vector<1x1x128xf32>,
      %377 = vector.extract_strided_slice %368 {offsets = [2, 0], sizes = [1, 128], strides = [1, 1]} : vector<16x128xf32> to vector<1x128xf32>
      %c0_195 = arith.constant 0 : index
      %c0_196 = arith.constant 0 : index
      %c2048 = arith.constant 2048 : index
      %378 = vector.load %arg9[%c0_195, %c0_196, %c2048] : memref<2x1x6144xf32, #tpu.memory_space<vmem>>, vector<1x1x128xf32>
      %379 = vector.shape_cast %378 : vector<1x1x128xf32> to vector<1x128xf32>
      %380 = vector.shape_cast %377 : vector<1x128xf32> to vector<1x1x128xf32>
      tpu.vector_store %arg9[%c0_195, %c0_196, %c2048], %380 {strides = array<i32>} : memref<2x1x6144xf32, #tpu.memory_space<vmem>>, vector<1x1x128xf32>,
      %381 = vector.extract_strided_slice %368 {offsets = [3, 0], sizes = [1, 128], strides = [1, 1]} : vector<16x128xf32> to vector<1x128xf32>
      %c0_197 = arith.constant 0 : index
      %c0_198 = arith.constant 0 : index
      %c2816 = arith.constant 2816 : index
      %382 = vector.load %arg9[%c0_197, %c0_198, %c2816] : memref<2x1x6144xf32, #tpu.memory_space<vmem>>, vector<1x1x128xf32>
      %383 = vector.shape_cast %382 : vector<1x1x128xf32> to vector<1x128xf32>
      %384 = vector.shape_cast %381 : vector<1x128xf32> to vector<1x1x128xf32>
      tpu.vector_store %arg9[%c0_197, %c0_198, %c2816], %384 {strides = array<i32>} : memref<2x1x6144xf32, #tpu.memory_space<vmem>>, vector<1x1x128xf32>,
      %385 = vector.extract_strided_slice %368 {offsets = [4, 0], sizes = [1, 128], strides = [1, 1]} : vector<16x128xf32> to vector<1x128xf32>
      %c0_199 = arith.constant 0 : index
      %c0_200 = arith.constant 0 : index
      %c3584 = arith.constant 3584 : index
      %386 = vector.load %arg9[%c0_199, %c0_200, %c3584] : memref<2x1x6144xf32, #tpu.memory_space<vmem>>, vector<1x1x128xf32>
      %387 = vector.shape_cast %386 : vector<1x1x128xf32> to vector<1x128xf32>
      %388 = vector.shape_cast %385 : vector<1x128xf32> to vector<1x1x128xf32>
      tpu.vector_store %arg9[%c0_199, %c0_200, %c3584], %388 {strides = array<i32>} : memref<2x1x6144xf32, #tpu.memory_space<vmem>>, vector<1x1x128xf32>,
      %389 = vector.extract_strided_slice %368 {offsets = [5, 0], sizes = [1, 128], strides = [1, 1]} : vector<16x128xf32> to vector<1x128xf32>
      %c0_201 = arith.constant 0 : index
      %c0_202 = arith.constant 0 : index
      %c4352 = arith.constant 4352 : index
      %390 = vector.load %arg9[%c0_201, %c0_202, %c4352] : memref<2x1x6144xf32, #tpu.memory_space<vmem>>, vector<1x1x128xf32>
      %391 = vector.shape_cast %390 : vector<1x1x128xf32> to vector<1x128xf32>
      %392 = vector.shape_cast %389 : vector<1x128xf32> to vector<1x1x128xf32>
      tpu.vector_store %arg9[%c0_201, %c0_202, %c4352], %392 {strides = array<i32>} : memref<2x1x6144xf32, #tpu.memory_space<vmem>>, vector<1x1x128xf32>,
      %393 = vector.extract_strided_slice %368 {offsets = [6, 0], sizes = [1, 128], strides = [1, 1]} : vector<16x128xf32> to vector<1x128xf32>
      %c0_203 = arith.constant 0 : index
      %c0_204 = arith.constant 0 : index
      %c5120 = arith.constant 5120 : index
      %394 = vector.load %arg9[%c0_203, %c0_204, %c5120] : memref<2x1x6144xf32, #tpu.memory_space<vmem>>, vector<1x1x128xf32>
      %395 = vector.shape_cast %394 : vector<1x1x128xf32> to vector<1x128xf32>
      %396 = vector.shape_cast %393 : vector<1x128xf32> to vector<1x1x128xf32>
      tpu.vector_store %arg9[%c0_203, %c0_204, %c5120], %396 {strides = array<i32>} : memref<2x1x6144xf32, #tpu.memory_space<vmem>>, vector<1x1x128xf32>,
      %397 = vector.extract_strided_slice %368 {offsets = [7, 0], sizes = [1, 128], strides = [1, 1]} : vector<16x128xf32> to vector<1x128xf32>
      %c0_205 = arith.constant 0 : index
      %c0_206 = arith.constant 0 : index
      %c5888 = arith.constant 5888 : index
      %398 = vector.load %arg9[%c0_205, %c0_206, %c5888] : memref<2x1x6144xf32, #tpu.memory_space<vmem>>, vector<1x1x128xf32>
      %399 = vector.shape_cast %398 : vector<1x1x128xf32> to vector<1x128xf32>
      %400 = vector.shape_cast %397 : vector<1x128xf32> to vector<1x1x128xf32>
      tpu.vector_store %arg9[%c0_205, %c0_206, %c5888], %400 {strides = array<i32>} : memref<2x1x6144xf32, #tpu.memory_space<vmem>>, vector<1x1x128xf32>,
      %401 = vector.extract_strided_slice %368 {offsets = [8, 0], sizes = [1, 128], strides = [1, 1]} : vector<16x128xf32> to vector<1x128xf32>
      %c1_207 = arith.constant 1 : index
      %c0_208 = arith.constant 0 : index
      %c512_209 = arith.constant 512 : index
      %402 = vector.load %arg9[%c1_207, %c0_208, %c512_209] : memref<2x1x6144xf32, #tpu.memory_space<vmem>>, vector<1x1x128xf32>
      %403 = vector.shape_cast %402 : vector<1x1x128xf32> to vector<1x128xf32>
      %404 = vector.shape_cast %401 : vector<1x128xf32> to vector<1x1x128xf32>
      tpu.vector_store %arg9[%c1_207, %c0_208, %c512_209], %404 {strides = array<i32>} : memref<2x1x6144xf32, #tpu.memory_space<vmem>>, vector<1x1x128xf32>,
      %405 = vector.extract_strided_slice %368 {offsets = [9, 0], sizes = [1, 128], strides = [1, 1]} : vector<16x128xf32> to vector<1x128xf32>
      %c1_210 = arith.constant 1 : index
      %c0_211 = arith.constant 0 : index
      %c1280_212 = arith.constant 1280 : index
      %406 = vector.load %arg9[%c1_210, %c0_211, %c1280_212] : memref<2x1x6144xf32, #tpu.memory_space<vmem>>, vector<1x1x128xf32>
      %407 = vector.shape_cast %406 : vector<1x1x128xf32> to vector<1x128xf32>
      %408 = vector.shape_cast %405 : vector<1x128xf32> to vector<1x1x128xf32>
      tpu.vector_store %arg9[%c1_210, %c0_211, %c1280_212], %408 {strides = array<i32>} : memref<2x1x6144xf32, #tpu.memory_space<vmem>>, vector<1x1x128xf32>,
      %409 = vector.extract_strided_slice %368 {offsets = [10, 0], sizes = [1, 128], strides = [1, 1]} : vector<16x128xf32> to vector<1x128xf32>
      %c1_213 = arith.constant 1 : index
      %c0_214 = arith.constant 0 : index
      %c2048_215 = arith.constant 2048 : index
      %410 = vector.load %arg9[%c1_213, %c0_214, %c2048_215] : memref<2x1x6144xf32, #tpu.memory_space<vmem>>, vector<1x1x128xf32>
      %411 = vector.shape_cast %410 : vector<1x1x128xf32> to vector<1x128xf32>
      %412 = vector.shape_cast %409 : vector<1x128xf32> to vector<1x1x128xf32>
      tpu.vector_store %arg9[%c1_213, %c0_214, %c2048_215], %412 {strides = array<i32>} : memref<2x1x6144xf32, #tpu.memory_space<vmem>>, vector<1x1x128xf32>,
      %413 = vector.extract_strided_slice %368 {offsets = [11, 0], sizes = [1, 128], strides = [1, 1]} : vector<16x128xf32> to vector<1x128xf32>
      %c1_216 = arith.constant 1 : index
      %c0_217 = arith.constant 0 : index
      %c2816_218 = arith.constant 2816 : index
      %414 = vector.load %arg9[%c1_216, %c0_217, %c2816_218] : memref<2x1x6144xf32, #tpu.memory_space<vmem>>, vector<1x1x128xf32>
      %415 = vector.shape_cast %414 : vector<1x1x128xf32> to vector<1x128xf32>
      %416 = vector.shape_cast %413 : vector<1x128xf32> to vector<1x1x128xf32>
      tpu.vector_store %arg9[%c1_216, %c0_217, %c2816_218], %416 {strides = array<i32>} : memref<2x1x6144xf32, #tpu.memory_space<vmem>>, vector<1x1x128xf32>,
      %417 = vector.extract_strided_slice %368 {offsets = [12, 0], sizes = [1, 128], strides = [1, 1]} : vector<16x128xf32> to vector<1x128xf32>
      %c1_219 = arith.constant 1 : index
      %c0_220 = arith.constant 0 : index
      %c3584_221 = arith.constant 3584 : index
      %418 = vector.load %arg9[%c1_219, %c0_220, %c3584_221] : memref<2x1x6144xf32, #tpu.memory_space<vmem>>, vector<1x1x128xf32>
      %419 = vector.shape_cast %418 : vector<1x1x128xf32> to vector<1x128xf32>
      %420 = vector.shape_cast %417 : vector<1x128xf32> to vector<1x1x128xf32>
      tpu.vector_store %arg9[%c1_219, %c0_220, %c3584_221], %420 {strides = array<i32>} : memref<2x1x6144xf32, #tpu.memory_space<vmem>>, vector<1x1x128xf32>,
      %421 = vector.extract_strided_slice %368 {offsets = [13, 0], sizes = [1, 128], strides = [1, 1]} : vector<16x128xf32> to vector<1x128xf32>
      %c1_222 = arith.constant 1 : index
      %c0_223 = arith.constant 0 : index
      %c4352_224 = arith.constant 4352 : index
      %422 = vector.load %arg9[%c1_222, %c0_223, %c4352_224] : memref<2x1x6144xf32, #tpu.memory_space<vmem>>, vector<1x1x128xf32>
      %423 = vector.shape_cast %422 : vector<1x1x128xf32> to vector<1x128xf32>
      %424 = vector.shape_cast %421 : vector<1x128xf32> to vector<1x1x128xf32>
      tpu.vector_store %arg9[%c1_222, %c0_223, %c4352_224], %424 {strides = array<i32>} : memref<2x1x6144xf32, #tpu.memory_space<vmem>>, vector<1x1x128xf32>,
      %425 = vector.extract_strided_slice %368 {offsets = [14, 0], sizes = [1, 128], strides = [1, 1]} : vector<16x128xf32> to vector<1x128xf32>
      %c1_225 = arith.constant 1 : index
      %c0_226 = arith.constant 0 : index
      %c5120_227 = arith.constant 5120 : index
      %426 = vector.load %arg9[%c1_225, %c0_226, %c5120_227] : memref<2x1x6144xf32, #tpu.memory_space<vmem>>, vector<1x1x128xf32>
      %427 = vector.shape_cast %426 : vector<1x1x128xf32> to vector<1x128xf32>
      %428 = vector.shape_cast %425 : vector<1x128xf32> to vector<1x1x128xf32>
      tpu.vector_store %arg9[%c1_225, %c0_226, %c5120_227], %428 {strides = array<i32>} : memref<2x1x6144xf32, #tpu.memory_space<vmem>>, vector<1x1x128xf32>,
      %429 = vector.extract_strided_slice %368 {offsets = [15, 0], sizes = [1, 128], strides = [1, 1]} : vector<16x128xf32> to vector<1x128xf32>
      %c1_228 = arith.constant 1 : index
      %c0_229 = arith.constant 0 : index
      %c5888_230 = arith.constant 5888 : index
      %430 = vector.load %arg9[%c1_228, %c0_229, %c5888_230] : memref<2x1x6144xf32, #tpu.memory_space<vmem>>, vector<1x1x128xf32>
      %431 = vector.shape_cast %430 : vector<1x1x128xf32> to vector<1x128xf32>
      %432 = vector.shape_cast %429 : vector<1x128xf32> to vector<1x1x128xf32>
      tpu.vector_store %arg9[%c1_228, %c0_229, %c5888_230], %432 {strides = array<i32>} : memref<2x1x6144xf32, #tpu.memory_space<vmem>>, vector<1x1x128xf32>,
      %c0_231 = arith.constant 0 : index
      %c640 = arith.constant 640 : index
      %433 = vector.load %arg1[%c0_231, %c640] : memref<32x768xf32, #tpu.memory_space<vmem>>, vector<32x128xf32>
      %cst_232 = arith.constant dense<0.000000e+00> : vector<128x128xf32>
      %434 = tpu.matmul %16, %433, %cst_232 {dimension_numbers = #tpu.dot_dimension_numbers<[1], [0], [0], [1], [0, 0, 1, 1], [], []>} : vector<128x32xf32>, vector<32x128xf32>, vector<128x128xf32> -> vector<128x128xf32>
      %435 = vector.extract_strided_slice %434 {offsets = [0, 0], sizes = [16, 128], strides = [1, 1]} : vector<128x128xf32> to vector<16x128xf32>
      %436 = vector.extract_strided_slice %434 {offsets = [16, 0], sizes = [16, 128], strides = [1, 1]} : vector<128x128xf32> to vector<16x128xf32>
      %437 = arith.maximumf %435, %436 : vector<16x128xf32>
      %438 = vector.extract_strided_slice %434 {offsets = [32, 0], sizes = [16, 128], strides = [1, 1]} : vector<128x128xf32> to vector<16x128xf32>
      %439 = arith.maximumf %437, %438 : vector<16x128xf32>
      %440 = vector.extract_strided_slice %434 {offsets = [48, 0], sizes = [16, 128], strides = [1, 1]} : vector<128x128xf32> to vector<16x128xf32>
      %441 = arith.maximumf %439, %440 : vector<16x128xf32>
      %442 = vector.extract_strided_slice %434 {offsets = [64, 0], sizes = [16, 128], strides = [1, 1]} : vector<128x128xf32> to vector<16x128xf32>
      %443 = arith.maximumf %441, %442 : vector<16x128xf32>
      %444 = vector.extract_strided_slice %434 {offsets = [80, 0], sizes = [16, 128], strides = [1, 1]} : vector<128x128xf32> to vector<16x128xf32>
      %445 = arith.maximumf %443, %444 : vector<16x128xf32>
      %446 = vector.extract_strided_slice %434 {offsets = [96, 0], sizes = [16, 128], strides = [1, 1]} : vector<128x128xf32> to vector<16x128xf32>
      %447 = arith.maximumf %445, %446 : vector<16x128xf32>
      %448 = vector.extract_strided_slice %434 {offsets = [112, 0], sizes = [16, 128], strides = [1, 1]} : vector<128x128xf32> to vector<16x128xf32>
      %449 = arith.maximumf %447, %448 : vector<16x128xf32>
      %450 = vector.broadcast %17 : vector<16x1xf32> to vector<16x128xf32>
      %451 = arith.addf %449, %450 : vector<16x128xf32>
      %452 = vector.extract_strided_slice %451 {offsets = [0, 0], sizes = [1, 128], strides = [1, 1]} : vector<16x128xf32> to vector<1x128xf32>
      %c0_233 = arith.constant 0 : index
      %c0_234 = arith.constant 0 : index
      %c640_235 = arith.constant 640 : index
      %453 = vector.load %arg9[%c0_233, %c0_234, %c640_235] : memref<2x1x6144xf32, #tpu.memory_space<vmem>>, vector<1x1x128xf32>
      %454 = vector.shape_cast %453 : vector<1x1x128xf32> to vector<1x128xf32>
      %455 = vector.shape_cast %452 : vector<1x128xf32> to vector<1x1x128xf32>
      tpu.vector_store %arg9[%c0_233, %c0_234, %c640_235], %455 {strides = array<i32>} : memref<2x1x6144xf32, #tpu.memory_space<vmem>>, vector<1x1x128xf32>,
      %456 = vector.extract_strided_slice %451 {offsets = [1, 0], sizes = [1, 128], strides = [1, 1]} : vector<16x128xf32> to vector<1x128xf32>
      %c0_236 = arith.constant 0 : index
      %c0_237 = arith.constant 0 : index
      %c1408 = arith.constant 1408 : index
      %457 = vector.load %arg9[%c0_236, %c0_237, %c1408] : memref<2x1x6144xf32, #tpu.memory_space<vmem>>, vector<1x1x128xf32>
      %458 = vector.shape_cast %457 : vector<1x1x128xf32> to vector<1x128xf32>
      %459 = vector.shape_cast %456 : vector<1x128xf32> to vector<1x1x128xf32>
      tpu.vector_store %arg9[%c0_236, %c0_237, %c1408], %459 {strides = array<i32>} : memref<2x1x6144xf32, #tpu.memory_space<vmem>>, vector<1x1x128xf32>,
      %460 = vector.extract_strided_slice %451 {offsets = [2, 0], sizes = [1, 128], strides = [1, 1]} : vector<16x128xf32> to vector<1x128xf32>
      %c0_238 = arith.constant 0 : index
      %c0_239 = arith.constant 0 : index
      %c2176 = arith.constant 2176 : index
      %461 = vector.load %arg9[%c0_238, %c0_239, %c2176] : memref<2x1x6144xf32, #tpu.memory_space<vmem>>, vector<1x1x128xf32>
      %462 = vector.shape_cast %461 : vector<1x1x128xf32> to vector<1x128xf32>
      %463 = vector.shape_cast %460 : vector<1x128xf32> to vector<1x1x128xf32>
      tpu.vector_store %arg9[%c0_238, %c0_239, %c2176], %463 {strides = array<i32>} : memref<2x1x6144xf32, #tpu.memory_space<vmem>>, vector<1x1x128xf32>,
      %464 = vector.extract_strided_slice %451 {offsets = [3, 0], sizes = [1, 128], strides = [1, 1]} : vector<16x128xf32> to vector<1x128xf32>
      %c0_240 = arith.constant 0 : index
      %c0_241 = arith.constant 0 : index
      %c2944 = arith.constant 2944 : index
      %465 = vector.load %arg9[%c0_240, %c0_241, %c2944] : memref<2x1x6144xf32, #tpu.memory_space<vmem>>, vector<1x1x128xf32>
      %466 = vector.shape_cast %465 : vector<1x1x128xf32> to vector<1x128xf32>
      %467 = vector.shape_cast %464 : vector<1x128xf32> to vector<1x1x128xf32>
      tpu.vector_store %arg9[%c0_240, %c0_241, %c2944], %467 {strides = array<i32>} : memref<2x1x6144xf32, #tpu.memory_space<vmem>>, vector<1x1x128xf32>,
      %468 = vector.extract_strided_slice %451 {offsets = [4, 0], sizes = [1, 128], strides = [1, 1]} : vector<16x128xf32> to vector<1x128xf32>
      %c0_242 = arith.constant 0 : index
      %c0_243 = arith.constant 0 : index
      %c3712 = arith.constant 3712 : index
      %469 = vector.load %arg9[%c0_242, %c0_243, %c3712] : memref<2x1x6144xf32, #tpu.memory_space<vmem>>, vector<1x1x128xf32>
      %470 = vector.shape_cast %469 : vector<1x1x128xf32> to vector<1x128xf32>
      %471 = vector.shape_cast %468 : vector<1x128xf32> to vector<1x1x128xf32>
      tpu.vector_store %arg9[%c0_242, %c0_243, %c3712], %471 {strides = array<i32>} : memref<2x1x6144xf32, #tpu.memory_space<vmem>>, vector<1x1x128xf32>,
      %472 = vector.extract_strided_slice %451 {offsets = [5, 0], sizes = [1, 128], strides = [1, 1]} : vector<16x128xf32> to vector<1x128xf32>
      %c0_244 = arith.constant 0 : index
      %c0_245 = arith.constant 0 : index
      %c4480 = arith.constant 4480 : index
      %473 = vector.load %arg9[%c0_244, %c0_245, %c4480] : memref<2x1x6144xf32, #tpu.memory_space<vmem>>, vector<1x1x128xf32>
      %474 = vector.shape_cast %473 : vector<1x1x128xf32> to vector<1x128xf32>
      %475 = vector.shape_cast %472 : vector<1x128xf32> to vector<1x1x128xf32>
      tpu.vector_store %arg9[%c0_244, %c0_245, %c4480], %475 {strides = array<i32>} : memref<2x1x6144xf32, #tpu.memory_space<vmem>>, vector<1x1x128xf32>,
      %476 = vector.extract_strided_slice %451 {offsets = [6, 0], sizes = [1, 128], strides = [1, 1]} : vector<16x128xf32> to vector<1x128xf32>
      %c0_246 = arith.constant 0 : index
      %c0_247 = arith.constant 0 : index
      %c5248 = arith.constant 5248 : index
      %477 = vector.load %arg9[%c0_246, %c0_247, %c5248] : memref<2x1x6144xf32, #tpu.memory_space<vmem>>, vector<1x1x128xf32>
      %478 = vector.shape_cast %477 : vector<1x1x128xf32> to vector<1x128xf32>
      %479 = vector.shape_cast %476 : vector<1x128xf32> to vector<1x1x128xf32>
      tpu.vector_store %arg9[%c0_246, %c0_247, %c5248], %479 {strides = array<i32>} : memref<2x1x6144xf32, #tpu.memory_space<vmem>>, vector<1x1x128xf32>,
      %480 = vector.extract_strided_slice %451 {offsets = [7, 0], sizes = [1, 128], strides = [1, 1]} : vector<16x128xf32> to vector<1x128xf32>
      %c0_248 = arith.constant 0 : index
      %c0_249 = arith.constant 0 : index
      %c6016 = arith.constant 6016 : index
      %481 = vector.load %arg9[%c0_248, %c0_249, %c6016] : memref<2x1x6144xf32, #tpu.memory_space<vmem>>, vector<1x1x128xf32>
      %482 = vector.shape_cast %481 : vector<1x1x128xf32> to vector<1x128xf32>
      %483 = vector.shape_cast %480 : vector<1x128xf32> to vector<1x1x128xf32>
      tpu.vector_store %arg9[%c0_248, %c0_249, %c6016], %483 {strides = array<i32>} : memref<2x1x6144xf32, #tpu.memory_space<vmem>>, vector<1x1x128xf32>,
      %484 = vector.extract_strided_slice %451 {offsets = [8, 0], sizes = [1, 128], strides = [1, 1]} : vector<16x128xf32> to vector<1x128xf32>
      %c1_250 = arith.constant 1 : index
      %c0_251 = arith.constant 0 : index
      %c640_252 = arith.constant 640 : index
      %485 = vector.load %arg9[%c1_250, %c0_251, %c640_252] : memref<2x1x6144xf32, #tpu.memory_space<vmem>>, vector<1x1x128xf32>
      %486 = vector.shape_cast %485 : vector<1x1x128xf32> to vector<1x128xf32>
      %487 = vector.shape_cast %484 : vector<1x128xf32> to vector<1x1x128xf32>
      tpu.vector_store %arg9[%c1_250, %c0_251, %c640_252], %487 {strides = array<i32>} : memref<2x1x6144xf32, #tpu.memory_space<vmem>>, vector<1x1x128xf32>,
      %488 = vector.extract_strided_slice %451 {offsets = [9, 0], sizes = [1, 128], strides = [1, 1]} : vector<16x128xf32> to vector<1x128xf32>
      %c1_253 = arith.constant 1 : index
      %c0_254 = arith.constant 0 : index
      %c1408_255 = arith.constant 1408 : index
      %489 = vector.load %arg9[%c1_253, %c0_254, %c1408_255] : memref<2x1x6144xf32, #tpu.memory_space<vmem>>, vector<1x1x128xf32>
      %490 = vector.shape_cast %489 : vector<1x1x128xf32> to vector<1x128xf32>
      %491 = vector.shape_cast %488 : vector<1x128xf32> to vector<1x1x128xf32>
      tpu.vector_store %arg9[%c1_253, %c0_254, %c1408_255], %491 {strides = array<i32>} : memref<2x1x6144xf32, #tpu.memory_space<vmem>>, vector<1x1x128xf32>,
      %492 = vector.extract_strided_slice %451 {offsets = [10, 0], sizes = [1, 128], strides = [1, 1]} : vector<16x128xf32> to vector<1x128xf32>
      %c1_256 = arith.constant 1 : index
      %c0_257 = arith.constant 0 : index
      %c2176_258 = arith.constant 2176 : index
      %493 = vector.load %arg9[%c1_256, %c0_257, %c2176_258] : memref<2x1x6144xf32, #tpu.memory_space<vmem>>, vector<1x1x128xf32>
      %494 = vector.shape_cast %493 : vector<1x1x128xf32> to vector<1x128xf32>
      %495 = vector.shape_cast %492 : vector<1x128xf32> to vector<1x1x128xf32>
      tpu.vector_store %arg9[%c1_256, %c0_257, %c2176_258], %495 {strides = array<i32>} : memref<2x1x6144xf32, #tpu.memory_space<vmem>>, vector<1x1x128xf32>,
      %496 = vector.extract_strided_slice %451 {offsets = [11, 0], sizes = [1, 128], strides = [1, 1]} : vector<16x128xf32> to vector<1x128xf32>
      %c1_259 = arith.constant 1 : index
      %c0_260 = arith.constant 0 : index
      %c2944_261 = arith.constant 2944 : index
      %497 = vector.load %arg9[%c1_259, %c0_260, %c2944_261] : memref<2x1x6144xf32, #tpu.memory_space<vmem>>, vector<1x1x128xf32>
      %498 = vector.shape_cast %497 : vector<1x1x128xf32> to vector<1x128xf32>
      %499 = vector.shape_cast %496 : vector<1x128xf32> to vector<1x1x128xf32>
      tpu.vector_store %arg9[%c1_259, %c0_260, %c2944_261], %499 {strides = array<i32>} : memref<2x1x6144xf32, #tpu.memory_space<vmem>>, vector<1x1x128xf32>,
      %500 = vector.extract_strided_slice %451 {offsets = [12, 0], sizes = [1, 128], strides = [1, 1]} : vector<16x128xf32> to vector<1x128xf32>
      %c1_262 = arith.constant 1 : index
      %c0_263 = arith.constant 0 : index
      %c3712_264 = arith.constant 3712 : index
      %501 = vector.load %arg9[%c1_262, %c0_263, %c3712_264] : memref<2x1x6144xf32, #tpu.memory_space<vmem>>, vector<1x1x128xf32>
      %502 = vector.shape_cast %501 : vector<1x1x128xf32> to vector<1x128xf32>
      %503 = vector.shape_cast %500 : vector<1x128xf32> to vector<1x1x128xf32>
      tpu.vector_store %arg9[%c1_262, %c0_263, %c3712_264], %503 {strides = array<i32>} : memref<2x1x6144xf32, #tpu.memory_space<vmem>>, vector<1x1x128xf32>,
      %504 = vector.extract_strided_slice %451 {offsets = [13, 0], sizes = [1, 128], strides = [1, 1]} : vector<16x128xf32> to vector<1x128xf32>
      %c1_265 = arith.constant 1 : index
      %c0_266 = arith.constant 0 : index
      %c4480_267 = arith.constant 4480 : index
      %505 = vector.load %arg9[%c1_265, %c0_266, %c4480_267] : memref<2x1x6144xf32, #tpu.memory_space<vmem>>, vector<1x1x128xf32>
      %506 = vector.shape_cast %505 : vector<1x1x128xf32> to vector<1x128xf32>
      %507 = vector.shape_cast %504 : vector<1x128xf32> to vector<1x1x128xf32>
      tpu.vector_store %arg9[%c1_265, %c0_266, %c4480_267], %507 {strides = array<i32>} : memref<2x1x6144xf32, #tpu.memory_space<vmem>>, vector<1x1x128xf32>,
      %508 = vector.extract_strided_slice %451 {offsets = [14, 0], sizes = [1, 128], strides = [1, 1]} : vector<16x128xf32> to vector<1x128xf32>
      %c1_268 = arith.constant 1 : index
      %c0_269 = arith.constant 0 : index
      %c5248_270 = arith.constant 5248 : index
      %509 = vector.load %arg9[%c1_268, %c0_269, %c5248_270] : memref<2x1x6144xf32, #tpu.memory_space<vmem>>, vector<1x1x128xf32>
      %510 = vector.shape_cast %509 : vector<1x1x128xf32> to vector<1x128xf32>
      %511 = vector.shape_cast %508 : vector<1x128xf32> to vector<1x1x128xf32>
      tpu.vector_store %arg9[%c1_268, %c0_269, %c5248_270], %511 {strides = array<i32>} : memref<2x1x6144xf32, #tpu.memory_space<vmem>>, vector<1x1x128xf32>,
      %512 = vector.extract_strided_slice %451 {offsets = [15, 0], sizes = [1, 128], strides = [1, 1]} : vector<16x128xf32> to vector<1x128xf32>
      %c1_271 = arith.constant 1 : index
      %c0_272 = arith.constant 0 : index
      %c6016_273 = arith.constant 6016 : index
      %513 = vector.load %arg9[%c1_271, %c0_272, %c6016_273] : memref<2x1x6144xf32, #tpu.memory_space<vmem>>, vector<1x1x128xf32>
      %514 = vector.shape_cast %513 : vector<1x1x128xf32> to vector<1x128xf32>
      %515 = vector.shape_cast %512 : vector<1x128xf32> to vector<1x1x128xf32>
      tpu.vector_store %arg9[%c1_271, %c0_272, %c6016_273], %515 {strides = array<i32>} : memref<2x1x6144xf32, #tpu.memory_space<vmem>>, vector<1x1x128xf32>,
    } else {
    }
    %c0 = arith.constant 0 : index
    %c0_1 = arith.constant 0 : index
    %3 = vector.load %arg10[%c0, %c0_1] : memref<1x128xf32, #tpu.memory_space<vmem>>, vector<1x128xf32>
    %4 = arith.index_cast %arg0 : i32 to index
    %c0_2 = arith.constant 0 : index
    %c0_3 = arith.constant 0 : index
    %5 = vector.load %arg9[%4, %c0_2, %c0_3] : memref<2x1x6144xf32, #tpu.memory_space<vmem>>, vector<1x1x6144xf32>
    %6 = vector.shape_cast %5 : vector<1x1x6144xf32> to vector<1x6144xf32>
    %c0_4 = arith.constant 0 : index
    %c0_5 = arith.constant 0 : index
    %7 = vector.load %arg4[%c0_4, %c0_5] : memref<6144x128xf32, #tpu.memory_space<vmem>>, vector<6144x128xf32>
    %cst = arith.constant dense<0.000000e+00> : vector<1x128xf32>
    %8 = tpu.matmul %6, %7, %cst {dimension_numbers = #tpu.dot_dimension_numbers<[1], [0], [0], [1], [0, 0, 1, 1], [], []>} : vector<1x6144xf32>, vector<6144x128xf32>, vector<1x128xf32> -> vector<1x128xf32>
    %9 = arith.addf %3, %8 : vector<1x128xf32>
    %c0_6 = arith.constant 0 : index
    %c0_7 = arith.constant 0 : index
    %10 = vector.load %arg10[%c0_6, %c0_7] : memref<1x128xf32, #tpu.memory_space<vmem>>, vector<1x128xf32>
    tpu.vector_store %arg10[%c0_6, %c0_7], %9 {strides = array<i32>} : memref<1x128xf32, #tpu.memory_space<vmem>>, vector<1x128xf32>,
    %c1_i32 = arith.constant 1 : i32
    %11 = arith.cmpi eq, %arg0, %c1_i32 : i32
    %12 = arith.extui %11 : i1 to i32
    %c0_i32_8 = arith.constant 0 : i32
    %13 = arith.cmpi ne, %12, %c0_i32_8 : i32
    scf.if %13 {
      %c0_9 = arith.constant 0 : index
      %c0_10 = arith.constant 0 : index
      %14 = vector.load %arg10[%c0_9, %c0_10] : memref<1x128xf32, #tpu.memory_space<vmem>>, vector<1x128xf32>
      %c0_11 = arith.constant 0 : index
      %c0_12 = arith.constant 0 : index
      %15 = vector.load %arg5[%c0_11, %c0_12] : memref<1x128xf32, #tpu.memory_space<vmem>>, vector<1x128xf32>
      %16 = arith.addf %14, %15 : vector<1x128xf32>
      %cst_13 = arith.constant 0.000000e+00 : f32
      %17 = vector.broadcast %cst_13 : f32 to vector<1x128xf32>
      %18 = arith.maximumf %16, %17 : vector<1x128xf32>
      %c0_14 = arith.constant 0 : index
      %c0_15 = arith.constant 0 : index
      %19 = vector.load %arg6[%c0_14, %c0_15] : memref<1x128xf32, #tpu.memory_space<vmem>>, vector<1x128xf32>
      %20 = arith.mulf %18, %19 : vector<1x128xf32>
      %cst_16 = arith.constant dense<0.000000e+00> : vector<1xf32>
      %21 = vector.multi_reduction <add>, %20, %cst_16 [1] : vector<1x128xf32> to vector<1xf32>
      %22 = vector.shape_cast %21 : vector<1xf32> to vector<1x1xf32>
      %c0_17 = arith.constant 0 : index
      %c0_18 = arith.constant 0 : index
      %23 = vector.load %arg7[%c0_17, %c0_18] : memref<1x1xf32, #tpu.memory_space<vmem>>, vector<1x1xf32>
      %24 = arith.addf %22, %23 : vector<1x1xf32>
      %cst_19 = arith.constant 0.000000e+00 : f32
      %25 = vector.broadcast %cst_19 : f32 to vector<1x1xf32>
      %26 = arith.maximumf %24, %25 : vector<1x1xf32>
      %cst_20 = arith.constant 0.000000e+00 : f32
      %27 = vector.broadcast %cst_20 : f32 to vector<1x1xf32>
      %28 = arith.subf %27, %26 : vector<1x1xf32>
      %29 = math.exp %28 : vector<1x1xf32>
      %cst_21 = arith.constant 1.000000e+00 : f32
      %30 = vector.broadcast %cst_21 : f32 to vector<1x1xf32>
      %31 = arith.addf %30, %29 : vector<1x1xf32>
      %cst_22 = arith.constant 1.000000e+00 : f32
      %32 = vector.broadcast %cst_22 : f32 to vector<1x1xf32>
      %33 = arith.divf %32, %31 : vector<1x1xf32>
      %c0_23 = arith.constant 0 : index
      %c0_24 = arith.constant 0 : index
      %34 = vector.load %arg8[%c0_23, %c0_24] : memref<1x1xf32, #tpu.memory_space<vmem>>, vector<1x1xf32>
      tpu.vector_store %arg8[%c0_23, %c0_24], %33 {strides = array<i32>} : memref<1x1xf32, #tpu.memory_space<vmem>>, vector<1x1xf32>,
    } else {
    }
    return
  }
  func.func @transform_0(%arg0: i32) -> (i32, i32) {
    %c0_i32 = arith.constant 0 : i32
    %c0_i32_0 = arith.constant 0 : i32
    %c0_i32_1 = arith.constant 0 : i32
    return %c0_i32, %c0_i32_0 : i32, i32
  }
  func.func @transform_1(%arg0: i32) -> (i32, i32) {
    %c0_i32 = arith.constant 0 : i32
    %c0_i32_0 = arith.constant 0 : i32
    %c0_i32_1 = arith.constant 0 : i32
    return %c0_i32, %c0_i32_0 : i32, i32
  }
  func.func @transform_2(%arg0: i32) -> (i32, i32) {
    %c0_i32 = arith.constant 0 : i32
    %c0_i32_0 = arith.constant 0 : i32
    %c0_i32_1 = arith.constant 0 : i32
    return %c0_i32, %c0_i32_0 : i32, i32
  }
  func.func @transform_3(%arg0: i32) -> (i32, i32) {
    %c0_i32 = arith.constant 0 : i32
    %c0_i32_0 = arith.constant 0 : i32
    return %arg0, %c0_i32 : i32, i32
  }
  func.func @transform_4(%arg0: i32) -> (i32, i32) {
    %c0_i32 = arith.constant 0 : i32
    %c0_i32_0 = arith.constant 0 : i32
    %c0_i32_1 = arith.constant 0 : i32
    return %c0_i32, %c0_i32_0 : i32, i32
  }
  func.func @transform_5(%arg0: i32) -> (i32, i32) {
    %c0_i32 = arith.constant 0 : i32
    %c0_i32_0 = arith.constant 0 : i32
    %c0_i32_1 = arith.constant 0 : i32
    return %c0_i32, %c0_i32_0 : i32, i32
  }
  func.func @transform_6(%arg0: i32) -> (i32, i32) {
    %c0_i32 = arith.constant 0 : i32
    %c0_i32_0 = arith.constant 0 : i32
    %c0_i32_1 = arith.constant 0 : i32
    return %c0_i32, %c0_i32_0 : i32, i32
  }
  func.func @transform_7(%arg0: i32) -> (i32, i32) {
    %c0_i32 = arith.constant 0 : i32
    %c0_i32_0 = arith.constant 0 : i32
    %c0_i32_1 = arith.constant 0 : i32
    return %c0_i32, %c0_i32_0 : i32, i32
  }
}

</mosaic_0001>

<bundles_post_ra>
// kernel: forward.1
= control target key start
LH: loop header
LB: loop body
LE: loop exit
PB: predicated region body
PF: predicated region fallthrough
CT: control target
= control target key end

     0   :  { %s9181_s0 = inlined_call_operand.vmem [shape: f32[32,768], index: 0, kind: input, shape index: {}]   ;;  %s9182_s1 = inlined_call_operand.vmem [shape: f32[128,32], index: 1, kind: input, shape index: {}]   ;;  %s9183_s2 = inlined_call_operand.vmem [shape: f32[16,1], index: 2, kind: input, shape index: {}]   ;;  %s9184_s3 = inlined_call_operand.hbm [shape: f32[12288,128], index: 3, kind: input, shape index: {}]   ;;  %s9185_s4 = inlined_call_operand.hbm [shape: f32[1,128], index: 4, kind: input, shape index: {}]   ;;  %s9186_s5 = inlined_call_operand.hbm [shape: f32[1,128], index: 5, kind: input, shape index: {}]   ;;  %s9187_s6 = inlined_call_operand.<no memory space> [shape: f32[1,1], index: 6, kind: input, shape index: {}]   ;;  %s9188_s7 = inlined_call_operand.hbm [shape: f32[1,1], index: 7, kind: output, shape index: {}]  }
   0x1   :  { %v12_v0 = vstv %s9187_s6 }
   0x2   :  { %13 = vst [vmem:[#allocation4] sm:$0x1] %v12_v0 }
   0x3   :  { %14 = vsyncpa [#allocation6], 0 }
   0x4   :  { %16 = vsyncpa [#allocation6 + $0x1], 0 }
   0x5   :  { %17 = vsyncpa [#allocation9], 0 }
   0x6   :  { %18 = vsyncpa [#allocation7], 0  ;;  %s7345_s26 = smov 0   ;;  %s7347_s27 = smov 0  }
   0x7   :  { %s7349_s28 = smov 0   ;;  %s7351_s29 = smov 0  }
   0x8 LB: > { %s7364_s6 = sadd.s32 4294967295, %s7291_s29   ;;  %s7367_s30 = sadd.s32 1, %s7291_s29   ;;  %s7291_s29 = sphi %s7351_s29, %s9209_s29   ;;  %s7287_s28 = sphi %s7349_s28, %s9208_s28   ;;  %s7283_s27 = sphi %s7347_s27, %s9207_s27   ;;  %s7279_s26 = sphi %s7345_s26, %s9206_s26  }
   0x9   : > { %s91_s8 = ssub.s32 %s7291_s29, %s7367_s30  ;;  %s94_s9 = sadd.s32 1, %s7287_s28 }
   0xa   : > { %p92_p0 = scmp.eq.s32.totalorder %s91_s8, 0  ;;  %p101_p1 = scmp.ne.s32.totalorder %s7287_s28, %s7283_s27 }
   0xb   : > { %p102_p2 = scmp.eq.s32.totalorder %s7291_s29, 0  ;;  %p107_p3 = scmp.ne.s32.totalorder %s7283_s27, %s7279_s26 }
   0xc   : > { %s7377_s10 = scalar_select %p92_p0, %s7287_s28, %s94_s9  }
   0xd   : > { %p7379_p4 = por %p102_p2, %p101_p1  ;;  %p9189_p5 = scmp.eq.s32.totalorder %s7364_s6, 0 }
   0xe   : > { %p4979_p6 = scmp.ge.s32.totalorder %s7291_s29, 1  ;;  %p202_p7 = scmp.lt.s32.totalorder %s7291_s29, 3 }
   0xf   : > { %p7388_p8 = por %p9189_p5, %p107_p3  ;;  %s7293_s14 = smov [#allocation8]  }
  0x10   : > { %p7393_p10 = pnand %p4979_p6, %p202_p7  ;;  %s224_s15 = sshll.u32 %s7293_s14, 4  ;;  %s225_s15 = int_to_ptr.vmem [resolvable:$true] %s224_s15 }
  0x11   : > { %s9194_s12 = scalar_select %p7388_p8, 1, 0 }
  0x12   : > { %s9195_s13 = scalar_select %p7393_p10, 1, 0 }
  0x13   : > { %p7074_p11 = pneg %p7393_p10  ;;  %p7087_p12 = scmp.lt.s32.totalorder %s7291_s29, 2 }
  0x14   : > { %s7294_s17 = smov [#allocation10]   ;;  %s249_s20 = sand.u32 1, %s7287_s28  }
  0x15   : > { %p7402_p13 = pnand %p7074_p11, %p9189_p5  ;;  %s235_s18 = sshll.u32 %s7294_s17, 4  ;;  %s7412_s18 = int_to_ptr.vmem [resolvable:$true] %s235_s18 }
  0x16   : > { %p7408_p0 = pnand %p7087_p12, %p7379_p4  ;;  %s7137_s23 = scalar_lea.hbm %s9185_s4, 16 }
  0x17   : > { %p7138_p1 = scmp.ne.s32.totalorder %s9185_s4, %s7137_s23  ;;  %p7139_p2 = pneg %p7402_p13 }
  0x18   : > { %s9197_s19 = scalar_select %p7408_p0, 1, 0 }
  0x19   : > { %p7140_p3 = pnand %p7139_p2, %p7138_p1  ;;  %p7144_p6 = scmp.lt.u32.totalorder %s7137_s23, %s9185_s4 }
  0x1b   : > { %p7141_p4 = pneg %p7140_p3 }
  0x1d   : > { %p7146_p7 = pnand %p7144_p6, %p7141_p4 }
  0x1f   : > { %7149 = shalt.err (!%p7146_p7)
}
  0x20   : > { %s7150_s9 = scalar_lea.vmem %s225_s15, 16  ;;  %s7157_s11 = scalar_lea.vmem %s225_s15, 32 }
  0x21   : > { %p7151_p11 = scmp.ne.s32.totalorder %s225_s15, %s7150_s9  ;;  %p7158_p5 = scmp.lt.s32.totalorder %s225_s15, %s225_s15 }
  0x22   : > { %p7159_p8 = scmp.lt.s32.totalorder %s7157_s11, %s7150_s9 }
  0x23   : > { %p7153_p12 = pnand %p7151_p11, %p7139_p2 }
  0x24   : > { %p7160_p10 = por %p7159_p8, %p7158_p5 }
  0x25   : > { %p7154_p9 = pneg %p7153_p12 }
  0x27   : > { %p7161_p0 = pnand %p7160_p10, %p7154_p9 }
  0x29   : > { %7164 = shalt.err (!%p7161_p0)
}
  0x2a   : > { %7077 = dma.hbm_to_vmem [thread:$0]  (!%p7402_p13), %s9185_s4, 16, %s225_s15, [#allocation9]  }
  0x2b   : > { %s7165_s23 = scalar_lea.hbm %s9186_s5, 16 }
  0x2c   : > { %p7166_p1 = scmp.ne.s32.totalorder %s9186_s5, %s7165_s23  ;;  %p7172_p9 = scmp.lt.u32.totalorder %s7165_s23, %s9186_s5 }
  0x2e   : > { %p7168_p5 = pnand %p7166_p1, %p7139_p2 }
  0x30   : > { %p7169_p8 = pneg %p7168_p5 }
  0x32   : > { %p7174_p10 = pnand %p7172_p9, %p7169_p8 }
  0x34   : > { %7177 = shalt.err (!%p7174_p10)
}
  0x35   : > { %s7178_s15 = scalar_lea.vmem %s7412_s18, 16  ;;  %s7185_s9 = scalar_lea.vmem %s7412_s18, 32 }
  0x36   : > { %p7179_p0 = scmp.ne.s32.totalorder %s7412_s18, %s7178_s15  ;;  %p7186_p6 = scmp.lt.s32.totalorder %s7412_s18, %s7412_s18 }
  0x37   : > { %p7187_p7 = scmp.lt.s32.totalorder %s7185_s9, %s7178_s15 }
  0x38   : > { %p7181_p3 = pnand %p7179_p0, %p7139_p2 }
  0x39   : > { %p7188_p11 = por %p7187_p7, %p7186_p6 }
  0x3a   : > { %p7182_p4 = pneg %p7181_p3 }
  0x3c   : > { %p7189_p12 = pnand %p7188_p11, %p7182_p4 }
  0x3e   : > { %7192 = shalt.err (!%p7189_p12)
}
  0x3f   : > { %7080 = dma.hbm_to_vmem [thread:$0]  (!%p7402_p13), %s9186_s5, 16, %s7412_s18, [#allocation9]  }
  0x40   : > { %s7058_s17 = smul.u32 6144, %s249_s20  ;;  %s7475_s26 = scalar_lea.sflag [#allocation6], %s249_s20 }
  0x41   : > { %s5089_s21 = smul.u32 98304, %s7291_s29  ;;  %p9198_p2 = scmp.ne.s32.totalorder %s9197_s19, 0 }
  0x42   : > { %s253_s16 = scalar_lea.vmem [#allocation5], %s7058_s17  ;;  %s7198_s15 = scalar_lea.hbm %s9184_s3, 196608 }
  0x43   : > { %s7469_s24 = scalar_lea.hbm %s9184_s3, %s5089_s21  ;;  %s260_s25 = sshll.u32 %s253_s16, 4  ;;  %s7471_s25 = int_to_ptr.vmem [resolvable:$true] %s260_s25 }
  0x44   : > { %s7193_s18 = scalar_lea.hbm %s7469_s24, 98304  ;;  %p7195_p1 = pneg %p9198_p2 }
  0x45   : > { %p7194_p13 = scmp.ne.s32.totalorder %s7469_s24, %s7193_s18  ;;  %p7199_p9 = scmp.lt.u32.totalorder %s7469_s24, %s9184_s3 }
  0x46   : > { %p7200_p10 = scmp.lt.u32.totalorder %s7198_s15, %s7193_s18  ;;  %p7202_p3 = scmp.lt.u32.totalorder %s7193_s18, %s7469_s24 }
  0x47   : > { %p7196_p5 = pnand %p7195_p1, %p7194_p13 }
  0x48   : > { %p7201_p0 = por %p7200_p10, %p7199_p9 }
  0x49   : > { %p7197_p8 = pneg %p7196_p5 }
  0x4a   : > { %p7203_p4 = por %p7202_p3, %p7201_p0 }
  0x4c   : > { %p7204_p6 = pnand %p7203_p4, %p7197_p8 }
  0x4e   : > { %7207 = shalt.err (!%p7204_p6)
}
  0x4f   : > { %s7208_s20 = scalar_lea.vmem %s7471_s25, 98304  ;;  %s7295_s14 = smov [#allocation5]  }
  0x50   : > { %p7209_p7 = scmp.ne.s32.totalorder %s7471_s25, %s7208_s20  ;;  %s7213_s17 = sshll.u32 %s7295_s14, 4  ;;  %s7214_s17 = int_to_ptr.vmem [resolvable:$false] %s7213_s17 }
  0x51   : > { %s7215_s21 = scalar_lea.vmem %s7214_s17, 196608  ;;  %p7216_p13 = scmp.lt.s32.totalorder %s7471_s25, %s7214_s17 }
  0x52   : > { %p7211_p11 = pnand %p7209_p7, %p7195_p1  ;;  %p7217_p5 = scmp.lt.s32.totalorder %s7215_s21, %s7208_s20 }
  0x54   : > { %p7212_p12 = pneg %p7211_p11  ;;  %p7218_p9 = por %p7217_p5, %p7216_p13 }
  0x56   : > { %p7219_p10 = pnand %p7218_p9, %p7212_p12 }
  0x58   : > { %7222 = shalt.err (!%p7219_p10)
}
  0x59   : > { %s7296_s22 = smov 128   ;;  %s7297_s23 = smov 8  }
  0x5a   : > { %7084 = dma.hbm_to_vmem [thread:$0]  (!%p9198_p2), %s7469_s24, 98304, %s7471_s25, %s7475_s26, %s7296_s22, %s7296_s22, %s7297_s23  }
  0x5b   : > { %p9199_p1 = scmp.ne.s32.totalorder %s9195_s13, 0 }
  0x5c   : > { %s274_s16 = sand.u32 (!%p9199_p1), 1, %s7283_s27   ;;  %p9200_p8 = scmp.ne.s32.totalorder (!%p9199_p1), %s9194_s12, 0 }
  0x5d   : > { %272 = sbr.rel (%p9199_p1) target bundleno = 1271 (0x4f7), region = 48  ;;  %s275_s29 = scalar_lea.sflag (!%p9199_p1), [#allocation6], %s274_s16 }
  0x5e   : > { %s7059_s18 = smul.u32 (!%p9199_p1), 6144, %s274_s16 }
  0x60   : > { %s7506_s8 = scalar_lea.vmem (!%p9199_p1), [#allocation5], %s7059_s18 }
  0x64   : > { %7266 = dma.done.wait (%p9200_p8), %s275_s29, 98304  }
  0x65   : > { %7268 = vsyncadd (%p9200_p8), %s275_s29, 4294868992  ;;  %p9201_p0 = scmp.eq.s32.totalorder %s7364_s6, 0 }
  0x67   : > { %7270 = dma.done.wait (%p9201_p0), [#allocation9], 32   ;;  %p9202_p2 = pmov %p9201_p0 }
  0x68   : > { %p9203_p3 = scmp.ne.s32.totalorder %s7364_s6, 0 }
  0x69   : > { %7272 = vsyncadd (%p9202_p2), [#allocation9], 4294967264  ;;  %v336_v1 = vld [vmem:[%s9181_s0] sm:$0xff] (!%p9203_p3)  ;;  %v337_v2 = vld [vmem:[%s9181_s0 + $0x30] sm:$0xff] (!%p9203_p3)  ;;  %vm340_vm0 = vcmask (!%p9203_p3), 261120   ;;  %v7298_v4 = vmov (!%p9203_p3), 0.0  }
  0x6a   : > { %316 = sbr.rel (%p9203_p3) target bundleno = 447 (0x1bf), region = 64  ;;  %v695_v3 = vld [vmem:[%s9181_s0 + $0x8] sm:$0xff] (!%p9203_p3)  ;;  %317 = vst [vmem:[#allocation3] sm:$0x1] (!%p9203_p3), %v7298_v4  ;;  %v6242_v5 = vpack.c.bf16 (!%p9203_p3), %v337_v2, %v336_v1  ;;  %v696_v6 = vld [vmem:[%s9181_s0 + $0x38] sm:$0xff] (!%p9203_p3)  ;;  %v338_v7 = vld [vmem:[%s9181_s0 + $0x60] sm:$0xff] (!%p9203_p3) }
  0x6b   : > { %v339_v8 = vld [vmem:[%s9181_s0 + $0x90] sm:$0xff] (!%p9203_p3)  ;;  %v7299_v9 = vmov (!%p9203_p3), 0   ;;  %v6250_v10 = vpack.c.bf16 (!%p9203_p3), %v696_v6, %v695_v3  ;;  %v697_v12 = vld [vmem:[%s9181_s0 + $0x68] sm:$0xff] (!%p9203_p3)  ;;  %v698_v13 = vld [vmem:[%s9181_s0 + $0x98] sm:$0xff] (!%p9203_p3) }
  0x6c   : > { %7132 = vset.pattern.permute.xlu0 (!%p9203_p3), %v7299_v9  ;;  %v6246_v11 = vpack.c.bf16 (!%p9203_p3), %v339_v8, %v338_v7  ;;  %v7545_v14 = vld [vmem:[%s9182_s1] sm:$0xff] (!%p9203_p3)  ;;  %6243 = vmatprep.subr.bf16.mxu0 (!%p9203_p3), %v6242_v5  ;;  %v6254_v15 = vpack.c.bf16 (!%p9203_p3), %v698_v13, %v697_v12  ;;  %v990_v16 = vld [vmem:[%s9181_s0 + $0x10] sm:$0xff] (!%p9203_p3)  ;;  %v1285_v18 = vld [vmem:[%s9181_s0 + $0x18] sm:$0xff] (!%p9203_p3) }
  0x6d   : > { %6058 = vmatprep.mubr.msk.f32.mxu0 (!%p9203_p3), %vm340_vm0, %v7545_v14  ;;  %v991_v17 = vld [vmem:[%s9181_s0 + $0x40] sm:$0xff] (!%p9203_p3)  ;;  %6251 = vmatprep.subr.bf16.mxu1 (!%p9203_p3), %v6250_v10  ;;  %v1286_v19 = vld [vmem:[%s9181_s0 + $0x48] sm:$0xff] (!%p9203_p3)  ;;  %v992_v22 = vld [vmem:[%s9181_s0 + $0x70] sm:$0xff] (!%p9203_p3) }
  0x6e   : > { %6245 = vmatpush3.bf16.msra.mxu0 (!%p9203_p3), %v6242_v5  ;;  %6253 = vmatpush3.bf16.msra.mxu1 (!%p9203_p3), %v6250_v10  ;;  %v6258_v20 = vpack.c.bf16 (!%p9203_p3), %v991_v17, %v990_v16  ;;  %v6266_v21 = vpack.c.bf16 (!%p9203_p3), %v1286_v19, %v1285_v18  ;;  %v993_v23 = vld [vmem:[%s9181_s0 + $0xa0] sm:$0xff] (!%p9203_p3)  ;;  %v7572_v24 = vld [vmem:[%s9182_s1 + $0x8] sm:$0xff] (!%p9203_p3)  ;;  %v1287_v25 = vld [vmem:[%s9181_s0 + $0x78] sm:$0xff] (!%p9203_p3) }
  0x6f   : > { %6247 = vmatprep.subr.bf16.mxu0 (!%p9203_p3), %v6246_v11  ;;  %6255 = vmatprep.subr.bf16.mxu1 (!%p9203_p3), %v6254_v15  ;;  %v1288_v26 = vld [vmem:[%s9181_s0 + $0xa8] sm:$0xff] (!%p9203_p3)  ;;  %v7583_v27 = vld [vmem:[%s9182_s1 + $0x10] sm:$0xff] (!%p9203_p3)  ;;  %v6262_v28 = vpack.c.bf16 (!%p9203_p3), %v993_v23, %v992_v22  ;;  %v1580_v30 = vld [vmem:[%s9181_s0 + $0x20] sm:$0xff] (!%p9203_p3) }
  0x70   : > { %6090 = vmatprep.mubr.msk.f32.mxu1 (!%p9203_p3), %vm340_vm0, %v7545_v14  ;;  %v6270_v29 = vpack.c.bf16 (!%p9203_p3), %v1288_v26, %v1287_v25  ;;  %v1581_v31 = vld [vmem:[%s9181_s0 + $0x50] sm:$0xff] (!%p9203_p3)  ;;  %v7598_v32 = vld [vmem:[%s9182_s1 + $0x18] sm:$0xff] (!%p9203_p3)  ;;  %v1875_v33 = vld [vmem:[%s9181_s0 + $0x28] sm:$0xff] (!%p9203_p3) }
  0x71   : > { %v1876_v34 = vld [vmem:[%s9181_s0 + $0x58] sm:$0xff]  ;;  %v7611_v35 = vld [vmem:[%s9182_s1 + $0x20] sm:$0xff]  ;;  %v6274_v36 = vpack.c.bf16 %v1581_v31, %v1580_v30  ;;  %v7624_v38 = vld [vmem:[%s9182_s1 + $0x28] sm:$0xff] }
  0x72   : > { %6249 = vmatpush3.bf16.msra.mxu0 %v6246_v11  ;;  %6257 = vmatpush3.bf16.msra.mxu1 %v6254_v15  ;;  %v6282_v37 = vpack.c.bf16 %v1876_v34, %v1875_v33  ;;  %v7631_v39 = vld [vmem:[%s9182_s1 + $0x30] sm:$0xff]  ;;  %v334_v40 = vld [vmem:[%s9183_s2] sm:$0xff]  ;;  %v7645_v41 = vld [vmem:[%s9182_s1 + $0x38] sm:$0xff]  ;;  %v560_v33 = vlaneseq  ;;  %v7300_v34 = vmov 1966171168  }
  0x73   : > { %6259 = vmatprep.subr.bf16.mxu0 %v6258_v20  ;;  %6267 = vmatprep.subr.bf16.mxu1 %v6266_v21  ;;  %v7652_v42 = vld [vmem:[%s9182_s1 + $0x40] sm:$0xff]  ;;  %v335_v43 = vld [vmem:[%s9183_s2 + $0x8] sm:$0xff]  ;;  %v7673_v45 = vld [vmem:[%s9182_s1 + $0x50] sm:$0xff] }
  0x74   : > { %550 = vperm.xlu0 %7132, %v334_v40   ;;  %v7666_v44 = vld [vmem:[%s9182_s1 + $0x48] sm:$0xff]  ;;  %v7684_v46 = vld [vmem:[%s9182_s1 + $0x58] sm:$0xff]  ;;  %v7691_v47 = vld [vmem:[%s9182_s1 + $0x60] sm:$0xff]  ;;  %vm7874_vm1 = vcmp.lt.s32.totalorder %v560_v33, 128 }
  0x75   : > { %6059 = vmatmul.mubr.msk.f32.vlgmr.msra.gmra.mrb[0].mxu0 %vm340_vm0, %v7572_v24  ;;  %6091 = vmatmul.mubr.msk.f32.vlgmr.msra.gmra.mrb[0].mxu1 %vm340_vm0, %v7572_v24  ;;  %v7702_v48 = vld [vmem:[%s9182_s1 + $0x68] sm:$0xff]  ;;  %v7709_v49 = vld [vmem:[%s9182_s1 + $0x70] sm:$0xff]  ;;  %v7720_v50 = vld [vmem:[%s9182_s1 + $0x78] sm:$0xff] }
  0x76   : > { %6261 = vmatpush3.bf16.msra.mxu0 %v6258_v20  ;;  %6269 = vmatpush3.bf16.msra.mxu1 %v6266_v21  ;;  %v1582_v51 = vld [vmem:[%s9181_s0 + $0x80] sm:$0xff]  ;;  %v1583_v52 = vld [vmem:[%s9181_s0 + $0xb0] sm:$0xff]  ;;  %v1877_v53 = vld [vmem:[%s9181_s0 + $0x88] sm:$0xff] }
  0x77   : > { %6061 = vmatprep.mubr.msk.f32.mxu0 %vm340_vm0, %v7583_v27  ;;  %6093 = vmatprep.mubr.msk.f32.mxu1 %vm340_vm0, %v7583_v27  ;;  %v1878_v54 = vld [vmem:[%s9181_s0 + $0xb8] sm:$0xff]  ;;  %v6278_v55 = vpack.c.bf16 %v1583_v52, %v1582_v51 }
  0x78   : > { %6263 = vmatprep.subr.bf16.mxu0 %v6262_v28  ;;  %6271 = vmatprep.subr.bf16.mxu1 %v6270_v29  ;;  %v6286_v56 = vpack.c.bf16 %v1878_v54, %v1877_v53 }
  0x79   : > { %6062 = vmatmul.mubr.msk.f32.gmra.mrb[2].mxu0 %vm340_vm0, %v7598_v32  ;;  %6094 = vmatmul.mubr.msk.f32.gmra.mrb[2].mxu1 %vm340_vm0, %v7598_v32 }
  0x7a   : > { %6064 = vmatprep.mubr.msk.f32.mxu0 %vm340_vm0, %v7611_v35  ;;  %6096 = vmatprep.mubr.msk.f32.mxu1 %vm340_vm0, %v7611_v35 }
  0x7b   : > { %6265 = vmatpush3.bf16.msra.mxu0 %v6262_v28  ;;  %6273 = vmatpush3.bf16.msra.mxu1 %v6270_v29 }
  0x7c   : > { %6275 = vmatprep.subr.bf16.mxu0 %v6274_v36  ;;  %6283 = vmatprep.subr.bf16.mxu1 %v6282_v37 }
  0x7d   : > { %6065 = vmatmul.mubr.msk.f32.gmra.mrb[4].mxu0 %vm340_vm0, %v7624_v38  ;;  %6097 = vmatmul.mubr.msk.f32.gmra.mrb[4].mxu1 %vm340_vm0, %v7624_v38 }
  0x7e   : > { %6067 = vmatprep.mubr.msk.f32.mxu0 %vm340_vm0, %v7631_v39  ;;  %6099 = vmatprep.mubr.msk.f32.mxu1 %vm340_vm0, %v7631_v39 }
  0x7f   : > { %555 = vperm.xlu0 %7132, %v335_v43  }
  0x81   : > { %6068 = vmatmul.mubr.msk.f32.gmra.mrb[6].mxu0 %vm340_vm0, %v7645_v41  ;;  %6100 = vmatmul.mubr.msk.f32.gmra.mrb[6].mxu1 %vm340_vm0, %v7645_v41 }
  0x82   : > { %6070 = vmatprep.mubr.msk.f32.mxu0 %vm340_vm0, %v7652_v42  ;;  %6102 = vmatprep.mubr.msk.f32.mxu1 %vm340_vm0, %v7652_v42 }
  0x85   : > { %6071 = vmatmul.mubr.msk.f32.gmra.mrb[8].mxu0 %vm340_vm0, %v7666_v44  ;;  %6103 = vmatmul.mubr.msk.f32.gmra.mrb[8].mxu1 %vm340_vm0, %v7666_v44 }
  0x86   : > { %6073 = vmatprep.mubr.msk.f32.mxu0 %vm340_vm0, %v7673_v45  ;;  %6105 = vmatprep.mubr.msk.f32.mxu1 %vm340_vm0, %v7673_v45 }
  0x89   : > { %6074 = vmatmul.mubr.msk.f32.gmra.mrb[10].mxu0 %vm340_vm0, %v7684_v46  ;;  %6106 = vmatmul.mubr.msk.f32.gmra.mrb[10].mxu1 %vm340_vm0, %v7684_v46 }
  0x8a   : > { %6076 = vmatprep.mubr.msk.f32.mxu0 %vm340_vm0, %v7691_v47  ;;  %6108 = vmatprep.mubr.msk.f32.mxu1 %vm340_vm0, %v7691_v47 }
  0x8d   : > { %6077 = vmatmul.mubr.msk.f32.gmra.mrb[12].mxu0 %vm340_vm0, %v7702_v48  ;;  %6109 = vmatmul.mubr.msk.f32.gmra.mrb[12].mxu1 %vm340_vm0, %v7702_v48 }
  0x8e   : > { %6079 = vmatprep.mubr.msk.f32.mxu0 %vm340_vm0, %v7709_v49  ;;  %6111 = vmatprep.mubr.msk.f32.mxu1 %vm340_vm0, %v7709_v49 }
  0x91   : > { %6080 = vmatmul.mubr.msk.f32.gmra.mrb[14].mxu0 %vm340_vm0, %v7720_v50  ;;  %6112 = vmatmul.mubr.msk.f32.gmra.mrb[14].mxu1 %vm340_vm0, %v7720_v50 }
  0x92   : > { %6122 = vmatprep.mubr.msk.f32.mxu0 %vm340_vm0, %v7545_v14  ;;  %6154 = vmatprep.mubr.msk.f32.mxu1 %vm340_vm0, %v7545_v14 }
  0x95   : > { %6123 = vmatmul.mubr.msk.f32.vlgmr.msra.gmra.mrb[16].mxu0 %vm340_vm0, %v7572_v24  ;;  %6155 = vmatmul.mubr.msk.f32.vlgmr.msra.gmra.mrb[16].mxu1 %vm340_vm0, %v7572_v24 }
  0x96   : > { %6277 = vmatpush3.bf16.msra.mxu0 %v6274_v36  ;;  %6285 = vmatpush3.bf16.msra.mxu1 %v6282_v37 }
  0x97   : > { %6125 = vmatprep.mubr.msk.f32.mxu0 %vm340_vm0, %v7583_v27  ;;  %6157 = vmatprep.mubr.msk.f32.mxu1 %vm340_vm0, %v7583_v27 }
  0x98   : > { %6279 = vmatprep.subr.bf16.mxu0 %v6278_v55  ;;  %6287 = vmatprep.subr.bf16.mxu1 %v6286_v56 }
  0x99   : > { %6126 = vmatmul.mubr.msk.f32.gmra.mrb[18].mxu0 %vm340_vm0, %v7598_v32  ;;  %6158 = vmatmul.mubr.msk.f32.gmra.mrb[18].mxu1 %vm340_vm0, %v7598_v32 }
  0x9a   : > { %6128 = vmatprep.mubr.msk.f32.mxu0 %vm340_vm0, %v7611_v35  ;;  %6160 = vmatprep.mubr.msk.f32.mxu1 %vm340_vm0, %v7611_v35 }
  0x9b   : > { %6281 = vmatpush3.bf16.msra.mxu0 %v6278_v55  ;;  %6289 = vmatpush3.bf16.msra.mxu1 %v6286_v56 }
  0x9d   : > { %6129 = vmatmul.mubr.msk.f32.gmra.mrb[20].mxu0 %vm340_vm0, %v7624_v38  ;;  %6161 = vmatmul.mubr.msk.f32.gmra.mrb[20].mxu1 %vm340_vm0, %v7624_v38 }
  0x9e   : > { %6131 = vmatprep.mubr.msk.f32.mxu0 %vm340_vm0, %v7631_v39  ;;  %6163 = vmatprep.mubr.msk.f32.mxu1 %vm340_vm0, %v7631_v39 }
  0xa1   : > { %6132 = vmatmul.mubr.msk.f32.gmra.mrb[22].mxu0 %vm340_vm0, %v7645_v41  ;;  %6164 = vmatmul.mubr.msk.f32.gmra.mrb[22].mxu1 %vm340_vm0, %v7645_v41 }
  0xa2   : > { %6134 = vmatprep.mubr.msk.f32.mxu0 %vm340_vm0, %v7652_v42  ;;  %6166 = vmatprep.mubr.msk.f32.mxu1 %vm340_vm0, %v7652_v42 }
  0xa5   : > { %6135 = vmatmul.mubr.msk.f32.gmra.mrb[24].mxu0 %vm340_vm0, %v7666_v44  ;;  %6167 = vmatmul.mubr.msk.f32.gmra.mrb[24].mxu1 %vm340_vm0, %v7666_v44 }
  0xa6   : > { %6137 = vmatprep.mubr.msk.f32.mxu0 %vm340_vm0, %v7673_v45  ;;  %6169 = vmatprep.mubr.msk.f32.mxu1 %vm340_vm0, %v7673_v45 }
  0xa9   : > { %6138 = vmatmul.mubr.msk.f32.gmra.mrb[26].mxu0 %vm340_vm0, %v7684_v46  ;;  %6170 = vmatmul.mubr.msk.f32.gmra.mrb[26].mxu1 %vm340_vm0, %v7684_v46 }
  0xaa   : > { %6140 = vmatprep.mubr.msk.f32.mxu0 %vm340_vm0, %v7691_v47  ;;  %6172 = vmatprep.mubr.msk.f32.mxu1 %vm340_vm0, %v7691_v47 }
  0xad   : > { %6141 = vmatmul.mubr.msk.f32.gmra.mrb[28].mxu0 %vm340_vm0, %v7702_v48  ;;  %6173 = vmatmul.mubr.msk.f32.gmra.mrb[28].mxu1 %vm340_vm0, %v7702_v48 }
  0xae   : > { %6143 = vmatprep.mubr.msk.f32.mxu0 %vm340_vm0, %v7709_v49  ;;  %6175 = vmatprep.mubr.msk.f32.mxu1 %vm340_vm0, %v7709_v49 }
  0xb1   : > { %6144 = vmatmul.mubr.msk.f32.gmra.mrb[30].mxu0 %vm340_vm0, %v7720_v50  ;;  %6176 = vmatmul.mubr.msk.f32.gmra.mrb[30].mxu1 %vm340_vm0, %v7720_v50 }
  0xb2   : > { %6186 = vmatprep.mubr.msk.f32.mxu0 %vm340_vm0, %v7545_v14  ;;  %6218 = vmatprep.mubr.msk.f32.mxu1 %vm340_vm0, %v7545_v14 }
  0xb5   : > { %6187 = vmatmul.mubr.msk.f32.vlgmr.msra.gmra.mrb[32].mxu0 %vm340_vm0, %v7572_v24  ;;  %6219 = vmatmul.mubr.msk.f32.vlgmr.msra.gmra.mrb[32].mxu1 %vm340_vm0, %v7572_v24 }
  0xb6   : > { %6189 = vmatprep.mubr.msk.f32.mxu0 %vm340_vm0, %v7583_v27  ;;  %6221 = vmatprep.mubr.msk.f32.mxu1 %vm340_vm0, %v7583_v27 }
  0xb9   : > { %6190 = vmatmul.mubr.msk.f32.gmra.mrb[34].mxu0 %vm340_vm0, %v7598_v32  ;;  %6222 = vmatmul.mubr.msk.f32.gmra.mrb[34].mxu1 %vm340_vm0, %v7598_v32 }
  0xba   : > { %6192 = vmatprep.mubr.msk.f32.mxu0 %vm340_vm0, %v7611_v35  ;;  %6224 = vmatprep.mubr.msk.f32.mxu1 %vm340_vm0, %v7611_v35  ;;  %v567_v35 = vunpack.c.l.s4 %v7300_v34 }
  0xbd   : > { %6193 = vmatmul.mubr.msk.f32.gmra.mrb[36].mxu0 %vm340_vm0, %v7624_v38  ;;  %6225 = vmatmul.mubr.msk.f32.gmra.mrb[36].mxu1 %vm340_vm0, %v7624_v38 }
  0xbe   : > { %6195 = vmatprep.mubr.msk.f32.mxu0 %vm340_vm0, %v7631_v39  ;;  %6227 = vmatprep.mubr.msk.f32.mxu1 %vm340_vm0, %v7631_v39 }
  0xc1   : > { %6196 = vmatmul.mubr.msk.f32.gmra.mrb[38].mxu0 %vm340_vm0, %v7645_v41  ;;  %6228 = vmatmul.mubr.msk.f32.gmra.mrb[38].mxu1 %vm340_vm0, %v7645_v41 }
  0xc2   : > { %6198 = vmatprep.mubr.msk.f32.mxu0 %vm340_vm0, %v7652_v42  ;;  %6230 = vmatprep.mubr.msk.f32.mxu1 %vm340_vm0, %v7652_v42 }
  0xc5   : > { %6199 = vmatmul.mubr.msk.f32.gmra.mrb[40].mxu0 %vm340_vm0, %v7666_v44  ;;  %6231 = vmatmul.mubr.msk.f32.gmra.mrb[40].mxu1 %vm340_vm0, %v7666_v44 }
  0xc6   : > { %6201 = vmatprep.mubr.msk.f32.mxu0 %vm340_vm0, %v7673_v45  ;;  %6233 = vmatprep.mubr.msk.f32.mxu1 %vm340_vm0, %v7673_v45  ;;  %v568_v45 = vunpack.c.0.s8 %v567_v35 }
  0xc9   : > { %6202 = vmatmul.mubr.msk.f32.gmra.mrb[42].mxu0 %vm340_vm0, %v7684_v46  ;;  %6234 = vmatmul.mubr.msk.f32.gmra.mrb[42].mxu1 %vm340_vm0, %v7684_v46  ;;  %v570_v46 = vshrl.u32 %v560_v33, 7 }
  0xca   : > { %6204 = vmatprep.mubr.msk.f32.mxu0 %vm340_vm0, %v7691_v47  ;;  %6236 = vmatprep.mubr.msk.f32.mxu1 %vm340_vm0, %v7691_v47 }
  0xcb   : > { %v7872_v56 = vsub.s32 %v568_v45, %v570_v46 }
  0xcd   : > { %6205 = vmatmul.mubr.msk.f32.gmra.mrb[44].mxu0 %vm340_vm0, %v7702_v48  ;;  %6237 = vmatmul.mubr.msk.f32.gmra.mrb[44].mxu1 %vm340_vm0, %v7702_v48 }
  0xce   : > { %6207 = vmatprep.mubr.msk.f32.mxu0 %vm340_vm0, %v7709_v49  ;;  %6239 = vmatprep.mubr.msk.f32.mxu1 %vm340_vm0, %v7709_v49 }
  0xd1   : > { %6208 = vmatmul.mubr.msk.f32.gmra.mrb[46].mxu0 %vm340_vm0, %v7720_v50  ;;  %6240 = vmatmul.mubr.msk.f32.gmra.mrb[46].mxu1 %vm340_vm0, %v7720_v50 }
  0xf3   : > { %v7868_v39 = vpop.permute.xlu0 %550 }
  0xfe   : > { %v7870_v52 = vpop.permute.xlu0 %555 }
 0x148   : > { %v6060_v57 = vpop.f32.mrb[0].mxu0  ;;  %v6092_v58 = vpop.f32.mrb[0].mxu1 }
 0x149   : > { %v455_v59 = vpop.f32.mrb[1].mxu0  ;;  %v765_v60 = vpop.f32.mrb[1].mxu1 }
 0x14c   : > { %v6063_v61 = vpop.f32.mrb[2].mxu0  ;;  %v6095_v63 = vpop.f32.mrb[2].mxu1 }
 0x14d   : > { %v535_v62 = vmax.f32 %v6060_v57, %v6063_v61  ;;  %v465_v0 = vpop.f32.mrb[3].mxu0  ;;  %v845_v1 = vmax.f32 %v6092_v58, %v6095_v63  ;;  %v775_v3 = vpop.f32.mrb[3].mxu1 }
 0x14e   : > { %v534_v2 = vmax.f32 %v455_v59, %v465_v0  ;;  %v844_v4 = vmax.f32 %v765_v60, %v775_v3 }
 0x150   : > { %v6066_v5 = vpop.f32.mrb[4].mxu0  ;;  %v6098_v7 = vpop.f32.mrb[4].mxu1 }
 0x151   : > { %v537_v6 = vmax.f32 %v535_v62, %v6066_v5  ;;  %v475_v8 = vpop.f32.mrb[5].mxu0  ;;  %v847_v9 = vmax.f32 %v845_v1, %v6098_v7  ;;  %v785_v11 = vpop.f32.mrb[5].mxu1 }
 0x152   : > { %v536_v10 = vmax.f32 %v534_v2, %v475_v8  ;;  %v846_v12 = vmax.f32 %v844_v4, %v785_v11 }
 0x154   : > { %v6069_v13 = vpop.f32.mrb[6].mxu0  ;;  %v6101_v15 = vpop.f32.mrb[6].mxu1 }
 0x155   : > { %v539_v14 = vmax.f32 %v537_v6, %v6069_v13  ;;  %v485_v16 = vpop.f32.mrb[7].mxu0  ;;  %v849_v17 = vmax.f32 %v847_v9, %v6101_v15  ;;  %v795_v19 = vpop.f32.mrb[7].mxu1 }
 0x156   : > { %v538_v18 = vmax.f32 %v536_v10, %v485_v16  ;;  %v848_v20 = vmax.f32 %v846_v12, %v795_v19 }
 0x158   : > { %v6072_v21 = vpop.f32.mrb[8].mxu0  ;;  %v6104_v23 = vpop.f32.mrb[8].mxu1 }
 0x159   : > { %v541_v22 = vmax.f32 %v539_v14, %v6072_v21  ;;  %v495_v24 = vpop.f32.mrb[9].mxu0  ;;  %v851_v25 = vmax.f32 %v849_v17, %v6104_v23  ;;  %v805_v27 = vpop.f32.mrb[9].mxu1 }
 0x15a   : > { %v540_v26 = vmax.f32 %v538_v18, %v495_v24  ;;  %v850_v28 = vmax.f32 %v848_v20, %v805_v27 }
 0x15c   : > { %v6075_v29 = vpop.f32.mrb[10].mxu0  ;;  %v6107_v31 = vpop.f32.mrb[10].mxu1 }
 0x15d   : > { %v543_v30 = vmax.f32 %v541_v22, %v6075_v29  ;;  %v505_v32 = vpop.f32.mrb[11].mxu0  ;;  %v853_v36 = vmax.f32 %v851_v25, %v6107_v31  ;;  %v815_v38 = vpop.f32.mrb[11].mxu1 }
 0x15e   : > { %v542_v37 = vmax.f32 %v540_v26, %v505_v32  ;;  %v852_v40 = vmax.f32 %v850_v28, %v815_v38 }
 0x160   : > { %v6078_v41 = vpop.f32.mrb[12].mxu0  ;;  %v6110_v43 = vpop.f32.mrb[12].mxu1 }
 0x161   : > { %v545_v42 = vmax.f32 %v543_v30, %v6078_v41  ;;  %v515_v44 = vpop.f32.mrb[13].mxu0  ;;  %v855_v47 = vmax.f32 %v853_v36, %v6110_v43  ;;  %v825_v49 = vpop.f32.mrb[13].mxu1 }
 0x162   : > { %v544_v48 = vmax.f32 %v542_v37, %v515_v44  ;;  %v854_v50 = vmax.f32 %v852_v40, %v825_v49 }
 0x164   : > { %v6081_v51 = vpop.f32.mrb[14].mxu0  ;;  %v6113_v54 = vpop.f32.mrb[14].mxu1 }
 0x165   : > { %v547_v53 = vmax.f32 %v545_v42, %v6081_v51  ;;  %v525_v55 = vpop.f32.mrb[15].mxu0  ;;  %v857_v57 = vmax.f32 %v855_v47, %v6113_v54  ;;  %v835_v60 = vpop.f32.mrb[15].mxu1 }
 0x166   : > { %v546_v58 = vmax.f32 %v544_v48, %v525_v55  ;;  %v856_v61 = vmax.f32 %v854_v50, %v835_v60 }
 0x167   : > { %v559_v62 = vadd.f32 %v7870_v52, %v547_v53  ;;  %v7881_v0 = vadd.f32 %v857_v57, %v7870_v52 }
 0x168   : > { %v558_v63 = vadd.f32 %v7868_v39, %v546_v58  ;;  %v7883_v1 = vpop.f32.mrb[16].mxu0  ;;  %v858_v2 = vadd.f32 %v856_v61, %v7868_v39  ;;  %v7889_v5 = vpop.f32.mrb[16].mxu1 }
 0x169   : > { %630 = vst.msk [vmem:[#allocation2 + $0x30] sm:$0x1] %vm7874_vm1, %v559_v62  ;;  %v638_v3 = vrot.slane %v559_v62, %v7872_v56  ;;  %v662_v4 = vcombine.high %v559_v62, %v559_v62  ;;  %v7891_v6 = vpop.f32.mrb[17].mxu0  ;;  %925 = vst.msk [vmem:[#allocation2 + $0x31] sm:$0x1] %vm7874_vm1, %v7881_v0  ;;  %v7901_v9 = vrot.slane %v7881_v0, %v7872_v56  ;;  %v7905_v11 = vpop.f32.mrb[17].mxu1 }
 0x16a   : > { %564 = vst.msk [vmem:[#allocation2] sm:$0x1] %vm7874_vm1, %v558_v63  ;;  %v572_v7 = vrot.slane %v558_v63, %v7872_v56  ;;  %v596_v8 = vcombine.high %v558_v63, %v558_v63  ;;  %v957_v10 = vcombine.high %v7881_v0, %v7881_v0  ;;  %860 = vst.msk [vmem:[#allocation2 + $0x1] sm:$0x1] %vm7874_vm1, %v858_v2 }
 0x16b   : > { %v868_v12 = vrot.slane %v858_v2, %v7872_v56  ;;  %v892_v13 = vcombine.high %v858_v2, %v858_v2  ;;  %v639_v14 = vcombine.high %v638_v3, %v638_v3  ;;  %v646_v15 = vrot.slane %v638_v3, %v7872_v56 }
 0x16c   : > { %v573_v16 = vcombine.high %v572_v7, %v572_v7  ;;  %v580_v17 = vrot.slane %v572_v7, %v7872_v56  ;;  %v603_v18 = vrot.slane %v596_v8, %v7872_v56  ;;  %v669_v19 = vrot.slane %v662_v4, %v7872_v56  ;;  %v7914_v20 = vpop.f32.mrb[18].mxu0  ;;  %v7919_v25 = vpop.f32.mrb[18].mxu1 }
 0x16d   : > { %v869_v21 = vcombine.high %v868_v12, %v868_v12  ;;  %v876_v22 = vrot.slane %v868_v12, %v7872_v56  ;;  %v899_v23 = vrot.slane %v892_v13, %v7872_v56  ;;  %v653_v24 = vrot.slane %v639_v14, %v7872_v56  ;;  %v7921_v26 = vpop.f32.mrb[19].mxu0  ;;  %v7925_v31 = vpop.f32.mrb[19].mxu1 }
 0x16e   : > { %v587_v27 = vrot.slane %v573_v16, %v7872_v56  ;;  %v590_v28 = vcombine.high %v580_v17, %v580_v17  ;;  %v610_v29 = vrot.slane %v603_v18, %v7872_v56  ;;  %v613_v30 = vcombine.high %v603_v18, %v603_v18 }
 0x16f   : > { %v883_v32 = vrot.slane %v869_v21, %v7872_v56  ;;  %v886_v33 = vcombine.high %v876_v22, %v876_v22  ;;  %v906_v34 = vrot.slane %v899_v23, %v7872_v56  ;;  %v909_v35 = vcombine.high %v899_v23, %v899_v23  ;;  %655 = vst.msk [vmem:[#allocation2 + $0x36] sm:$0x1] %vm7874_vm1, %v653_v24 }
 0x170   : > { %589 = vst.msk [vmem:[#allocation2 + $0x6] sm:$0x1] %vm7874_vm1, %v587_v27  ;;  %592 = vst.msk [vmem:[#allocation2 + $0xc] sm:$0x1] %vm7874_vm1, %v590_v28  ;;  %v593_v36 = vcombine.high %v587_v27, %v587_v27  ;;  %v620_v37 = vrot.slane %v613_v30, %v7872_v56  ;;  %v623_v38 = vcombine.high %v610_v29, %v610_v29  ;;  %v6130_v41 = vpop.f32.mrb[20].mxu0  ;;  %v6162_v46 = vpop.f32.mrb[20].mxu1 }
 0x171   : > { %612 = vst.msk [vmem:[#allocation2 + $0x18] sm:$0x1] %vm7874_vm1, %v610_v29  ;;  %v656_v40 = vcombine.high %v646_v15, %v646_v15  ;;  %885 = vst.msk [vmem:[#allocation2 + $0x7] sm:$0x1] %vm7874_vm1, %v883_v32  ;;  %v889_v42 = vcombine.high %v883_v32, %v883_v32  ;;  %v916_v43 = vrot.slane %v909_v35, %v7872_v56  ;;  %v1080_v47 = vpop.f32.mrb[21].mxu0  ;;  %v1375_v53 = vpop.f32.mrb[21].mxu1 }
 0x172   : > { %888 = vst.msk [vmem:[#allocation2 + $0xd] sm:$0x1] %vm7874_vm1, %v886_v33  ;;  %908 = vst.msk [vmem:[#allocation2 + $0x19] sm:$0x1] %vm7874_vm1, %v906_v34  ;;  %v919_v44 = vcombine.high %v906_v34, %v906_v34  ;;  %v659_v45 = vcombine.high %v653_v24, %v653_v24  ;;  %v626_v48 = vcombine.high %v620_v37, %v620_v37 }
 0x173   : > { %595 = vst.msk [vmem:[#allocation2 + $0x12] sm:$0x1] %vm7874_vm1, %v593_v36  ;;  %622 = vst.msk [vmem:[#allocation2 + $0x1e] sm:$0x1] %vm7874_vm1, %v620_v37  ;;  %v676_v49 = vrot.slane %v669_v19, %v7872_v56  ;;  %v679_v50 = vcombine.high %v669_v19, %v669_v19  ;;  %v934_v51 = vcombine.high %v7901_v9, %v7901_v9 }
 0x174   : > { %625 = vst.msk [vmem:[#allocation2 + $0x24] sm:$0x1] %vm7874_vm1, %v623_v38  ;;  %658 = vst.msk [vmem:[#allocation2 + $0x3c] sm:$0x1] %vm7874_vm1, %v656_v40  ;;  %v922_v54 = vcombine.high %v916_v43, %v916_v43  ;;  %v941_v55 = vrot.slane %v7901_v9, %v7872_v56  ;;  %v964_v57 = vrot.slane %v957_v10, %v7872_v56  ;;  %v6133_v0 = vpop.f32.mrb[22].mxu0  ;;  %v6165_v7 = vpop.f32.mrb[22].mxu1 }
 0x175   : > { %891 = vst.msk [vmem:[#allocation2 + $0x13] sm:$0x1] %vm7874_vm1, %v889_v42  ;;  %918 = vst.msk [vmem:[#allocation2 + $0x1f] sm:$0x1] %vm7874_vm1, %v916_v43  ;;  %v1140_v58 = vmax.f32 %v7883_v1, %v7914_v20  ;;  %v686_v60 = vrot.slane %v679_v50, %v7872_v56  ;;  %v689_v61 = vcombine.high %v676_v49, %v676_v49  ;;  %v1090_v8 = vpop.f32.mrb[23].mxu0  ;;  %v1385_v13 = vpop.f32.mrb[23].mxu1 }
 0x176   : > { %921 = vst.msk [vmem:[#allocation2 + $0x25] sm:$0x1] %vm7874_vm1, %v919_v44  ;;  %661 = vst.msk [vmem:[#allocation2 + $0x42] sm:$0x1] %vm7874_vm1, %v659_v45  ;;  %v948_v62 = vrot.slane %v934_v51, %v7872_v56  ;;  %v1435_v63 = vmax.f32 %v7889_v5, %v7919_v25  ;;  %v951_v2 = vcombine.high %v941_v55, %v941_v55 }
 0x177   : > { %628 = vst.msk [vmem:[#allocation2 + $0x2a] sm:$0x1] %vm7874_vm1, %v626_v48  ;;  %678 = vst.msk [vmem:[#allocation2 + $0x48] sm:$0x1] %vm7874_vm1, %v676_v49  ;;  %v971_v1 = vrot.slane %v964_v57, %v7872_v56  ;;  %v974_v3 = vcombine.high %v964_v57, %v964_v57  ;;  %v1139_v4 = vmax.f32 %v7891_v6, %v7921_v26 }
 0x178   : > { %924 = vst.msk [vmem:[#allocation2 + $0x2b] sm:$0x1] %vm7874_vm1, %v922_v54  ;;  %688 = vst.msk [vmem:[#allocation2 + $0x4e] sm:$0x1] %vm7874_vm1, %v686_v60  ;;  %v692_v5 = vcombine.high %v686_v60, %v686_v60  ;;  %v954_v9 = vcombine.high %v948_v62, %v948_v62  ;;  %v1434_v10 = vmax.f32 %v7905_v11, %v7925_v31  ;;  %v6136_v18 = vpop.f32.mrb[24].mxu0  ;;  %v6168_v22 = vpop.f32.mrb[24].mxu1 }
 0x179   : > { %691 = vst.msk [vmem:[#allocation2 + $0x54] sm:$0x1] %vm7874_vm1, %v689_v61  ;;  %950 = vst.msk [vmem:[#allocation2 + $0x37] sm:$0x1] %vm7874_vm1, %v948_v62  ;;  %v1142_v12 = vmax.f32 %v1140_v58, %v6130_v41  ;;  %v981_v6 = vrot.slane %v974_v3, %v7872_v56  ;;  %v984_v14 = vcombine.high %v971_v1, %v971_v1  ;;  %v1100_v23 = vpop.f32.mrb[25].mxu0  ;;  %v1395_v26 = vpop.f32.mrb[25].mxu1 }
 0x17a   : > { %953 = vst.msk [vmem:[#allocation2 + $0x3d] sm:$0x1] %vm7874_vm1, %v951_v2  ;;  %973 = vst.msk [vmem:[#allocation2 + $0x49] sm:$0x1] %vm7874_vm1, %v971_v1  ;;  %v1437_v15 = vmax.f32 %v1435_v63, %v6162_v46  ;;  %v1141_v16 = vmax.f32 %v1139_v4, %v1080_v47  ;;  %v1436_v11 = vmax.f32 %v1434_v10, %v1375_v53 }
 0x17b   : > { %694 = vst.msk [vmem:[#allocation2 + $0x5a] sm:$0x1] %vm7874_vm1, %v692_v5  ;;  %956 = vst.msk [vmem:[#allocation2 + $0x43] sm:$0x1] %vm7874_vm1, %v954_v9  ;;  %v1144_v17 = vmax.f32 %v1142_v12, %v6133_v0  ;;  %v987_v19 = vcombine.high %v981_v6, %v981_v6 }
 0x17c   : > { %983 = vst.msk [vmem:[#allocation2 + $0x4f] sm:$0x1] %vm7874_vm1, %v981_v6  ;;  %986 = vst.msk [vmem:[#allocation2 + $0x55] sm:$0x1] %vm7874_vm1, %v984_v14  ;;  %v1439_v20 = vmax.f32 %v1437_v15, %v6165_v7  ;;  %v1143_v21 = vmax.f32 %v1141_v16, %v1090_v8  ;;  %v1438_v24 = vmax.f32 %v1436_v11, %v1385_v13  ;;  %v6139_v30 = vpop.f32.mrb[26].mxu0  ;;  %v6171_v32 = vpop.f32.mrb[26].mxu1 }
 0x17d   : > { %v1146_v25 = vmax.f32 %v1144_v17, %v6136_v18  ;;  %989 = vst.msk [vmem:[#allocation2 + $0x5b] sm:$0x1] %vm7874_vm1, %v987_v19  ;;  %v1110_v33 = vpop.f32.mrb[27].mxu0  ;;  %v1405_v36 = vpop.f32.mrb[27].mxu1 }
 0x17e   : > { %v1441_v27 = vmax.f32 %v1439_v20, %v6168_v22  ;;  %v1145_v28 = vmax.f32 %v1143_v21, %v1100_v23  ;;  %v1440_v29 = vmax.f32 %v1438_v24, %v1395_v26 }
 0x17f   : > { %v1148_v31 = vmax.f32 %v1146_v25, %v6139_v30 }
 0x180   : > { %v1443_v34 = vmax.f32 %v1441_v27, %v6171_v32  ;;  %v1147_v35 = vmax.f32 %v1145_v28, %v1110_v33  ;;  %v1442_v37 = vmax.f32 %v1440_v29, %v1405_v36  ;;  %v6142_v38 = vpop.f32.mrb[28].mxu0  ;;  %v6174_v41 = vpop.f32.mrb[28].mxu1 }
 0x181   : > { %v1150_v40 = vmax.f32 %v1148_v31, %v6142_v38  ;;  %v1120_v42 = vpop.f32.mrb[29].mxu0  ;;  %v1415_v45 = vpop.f32.mrb[29].mxu1 }
 0x182   : > { %v1445_v43 = vmax.f32 %v1443_v34, %v6174_v41  ;;  %v1149_v44 = vmax.f32 %v1147_v35, %v1120_v42  ;;  %v1444_v46 = vmax.f32 %v1442_v37, %v1415_v45 }
 0x184   : > { %v6145_v47 = vpop.f32.mrb[30].mxu0  ;;  %v6177_v49 = vpop.f32.mrb[30].mxu1 }
 0x185   : > { %v1152_v48 = vmax.f32 %v1150_v40, %v6145_v47  ;;  %v1130_v50 = vpop.f32.mrb[31].mxu0  ;;  %v1447_v51 = vmax.f32 %v1445_v43, %v6177_v49  ;;  %v1425_v54 = vpop.f32.mrb[31].mxu1 }
 0x186   : > { %v1151_v53 = vmax.f32 %v1149_v44, %v1130_v50  ;;  %v1446_v57 = vmax.f32 %v1444_v46, %v1425_v54 }
 0x187   : > { %v1154_v55 = vadd.f32 %v1152_v48, %v7870_v52  ;;  %v1449_v58 = vadd.f32 %v1447_v51, %v7870_v52 }
 0x188   : > { %v1153_v60 = vadd.f32 %v1151_v53, %v7868_v39  ;;  %v8008_v61 = vpop.f32.mrb[32].mxu0  ;;  %v8014_v0 = vadd.f32 %v1446_v57, %v7868_v39  ;;  %v8016_v2 = vpop.f32.mrb[32].mxu1 }
 0x189   : > { %1220 = vst.msk [vmem:[#allocation2 + $0x32] sm:$0x1] %vm7874_vm1, %v1154_v55  ;;  %v1228_v62 = vrot.slane %v1154_v55, %v7872_v56  ;;  %v1252_v63 = vcombine.high %v1154_v55, %v1154_v55  ;;  %v8018_v1 = vpop.f32.mrb[33].mxu0  ;;  %1515 = vst.msk [vmem:[#allocation2 + $0x33] sm:$0x1] %vm7874_vm1, %v1449_v58  ;;  %v1523_v3 = vrot.slane %v1449_v58, %v7872_v56  ;;  %v8026_v5 = vpop.f32.mrb[33].mxu1 }
 0x18a   : > { %v1547_v4 = vcombine.high %v1449_v58, %v1449_v58  ;;  %1155 = vst.msk [vmem:[#allocation2 + $0x2] sm:$0x1] %vm7874_vm1, %v1153_v60  ;;  %v1163_v7 = vrot.slane %v1153_v60, %v7872_v56  ;;  %v1187_v8 = vcombine.high %v1153_v60, %v1153_v60  ;;  %1450 = vst.msk [vmem:[#allocation2 + $0x3] sm:$0x1] %vm7874_vm1, %v8014_v0 }
 0x18b   : > { %v1229_v9 = vcombine.high %v1228_v62, %v1228_v62  ;;  %v1236_v10 = vrot.slane %v1228_v62, %v7872_v56  ;;  %v1259_v12 = vrot.slane %v1252_v63, %v7872_v56  ;;  %v1458_v13 = vrot.slane %v8014_v0, %v7872_v56 }
 0x18c   : > { %v1524_v6 = vcombine.high %v1523_v3, %v1523_v3  ;;  %v1531_v14 = vrot.slane %v1523_v3, %v7872_v56  ;;  %v1554_v15 = vrot.slane %v1547_v4, %v7872_v56  ;;  %v1164_v16 = vcombine.high %v1163_v7, %v1163_v7  ;;  %v8037_v11 = vpop.f32.mrb[34].mxu0  ;;  %v8041_v21 = vpop.f32.mrb[34].mxu1 }
 0x18d   : > { %v1243_v17 = vrot.slane %v1229_v9, %v7872_v56  ;;  %v1246_v18 = vcombine.high %v1236_v10, %v1236_v10  ;;  %v1266_v19 = vrot.slane %v1259_v12, %v7872_v56  ;;  %v1269_v20 = vcombine.high %v1259_v12, %v1259_v12  ;;  %v8043_v22 = vpop.f32.mrb[35].mxu0  ;;  %v8047_v27 = vpop.f32.mrb[35].mxu1 }
 0x18e   : > { %v1538_v23 = vrot.slane %v1524_v6, %v7872_v56  ;;  %v1541_v24 = vcombine.high %v1531_v14, %v1531_v14  ;;  %v1561_v25 = vrot.slane %v1554_v15, %v7872_v56  ;;  %v1564_v26 = vcombine.high %v1554_v15, %v1554_v15 }
 0x18f   : > { %1245 = vst.msk [vmem:[#allocation2 + $0x38] sm:$0x1] %vm7874_vm1, %v1243_v17  ;;  %1248 = vst.msk [vmem:[#allocation2 + $0x3e] sm:$0x1] %vm7874_vm1, %v1246_v18  ;;  %v1249_v28 = vcombine.high %v1243_v17, %v1243_v17  ;;  %v1276_v29 = vrot.slane %v1269_v20, %v7872_v56  ;;  %v1279_v30 = vcombine.high %v1266_v19, %v1266_v19 }
 0x190   : > { %1268 = vst.msk [vmem:[#allocation2 + $0x4a] sm:$0x1] %vm7874_vm1, %v1266_v19  ;;  %v1171_v31 = vrot.slane %v1163_v7, %v7872_v56  ;;  %1540 = vst.msk [vmem:[#allocation2 + $0x39] sm:$0x1] %vm7874_vm1, %v1538_v23  ;;  %v1544_v32 = vcombine.high %v1538_v23, %v1538_v23  ;;  %v1571_v33 = vrot.slane %v1564_v26, %v7872_v56  ;;  %v6194_v36 = vpop.f32.mrb[36].mxu0  ;;  %v6226_v42 = vpop.f32.mrb[36].mxu1 }
 0x191   : > { %1543 = vst.msk [vmem:[#allocation2 + $0x3f] sm:$0x1] %vm7874_vm1, %v1541_v24  ;;  %1563 = vst.msk [vmem:[#allocation2 + $0x4b] sm:$0x1] %vm7874_vm1, %v1561_v25  ;;  %v1574_v34 = vcombine.high %v1561_v25, %v1561_v25  ;;  %v1178_v35 = vrot.slane %v1164_v16, %v7872_v56  ;;  %v1282_v37 = vcombine.high %v1276_v29, %v1276_v29  ;;  %v1670_v43 = vpop.f32.mrb[37].mxu0  ;;  %v1965_v48 = vpop.f32.mrb[37].mxu1 }
 0x192   : > { %1251 = vst.msk [vmem:[#allocation2 + $0x44] sm:$0x1] %vm7874_vm1, %v1249_v28  ;;  %1278 = vst.msk [vmem:[#allocation2 + $0x50] sm:$0x1] %vm7874_vm1, %v1276_v29  ;;  %v1181_v38 = vcombine.high %v1171_v31, %v1171_v31  ;;  %v1194_v40 = vrot.slane %v1187_v8, %v7872_v56  ;;  %v1459_v41 = vcombine.high %v1458_v13, %v1458_v13 }
 0x193   : > { %1281 = vst.msk [vmem:[#allocation2 + $0x56] sm:$0x1] %vm7874_vm1, %v1279_v30  ;;  %1546 = vst.msk [vmem:[#allocation2 + $0x45] sm:$0x1] %vm7874_vm1, %v1544_v32  ;;  %v1577_v44 = vcombine.high %v1571_v33, %v1571_v33  ;;  %v1184_v45 = vcombine.high %v1178_v35, %v1178_v35  ;;  %v1466_v46 = vrot.slane %v1458_v13, %v7872_v56 }
 0x194   : > { %1573 = vst.msk [vmem:[#allocation2 + $0x51] sm:$0x1] %vm7874_vm1, %v1571_v33  ;;  %1576 = vst.msk [vmem:[#allocation2 + $0x57] sm:$0x1] %vm7874_vm1, %v1574_v34  ;;  %v1482_v47 = vcombine.high %v8014_v0, %v8014_v0  ;;  %v1201_v49 = vrot.slane %v1194_v40, %v7872_v56  ;;  %v1204_v50 = vcombine.high %v1194_v40, %v1194_v40  ;;  %v6197_v60 = vpop.f32.mrb[38].mxu0  ;;  %v6229_v3 = vpop.f32.mrb[38].mxu1 }
 0x195   : > { %1180 = vst.msk [vmem:[#allocation2 + $0x8] sm:$0x1] %vm7874_vm1, %v1178_v35  ;;  %1284 = vst.msk [vmem:[#allocation2 + $0x5c] sm:$0x1] %vm7874_vm1, %v1282_v37  ;;  %v1473_v51 = vrot.slane %v1459_v41, %v7872_v56  ;;  %v1730_v53 = vmax.f32 %v8008_v61, %v8037_v11  ;;  %v1476_v54 = vcombine.high %v1466_v46, %v1466_v46  ;;  %v1680_v4 = vpop.f32.mrb[39].mxu0  ;;  %v1975_v9 = vpop.f32.mrb[39].mxu1 }
 0x196   : > { %1183 = vst.msk [vmem:[#allocation2 + $0xe] sm:$0x1] %vm7874_vm1, %v1181_v38  ;;  %1579 = vst.msk [vmem:[#allocation2 + $0x5d] sm:$0x1] %vm7874_vm1, %v1577_v44  ;;  %v1489_v55 = vrot.slane %v1482_v47, %v7872_v56  ;;  %v2025_v57 = vmax.f32 %v8016_v2, %v8041_v21  ;;  %v1729_v58 = vmax.f32 %v8018_v1, %v8043_v22 }
 0x197   : > { %1186 = vst.msk [vmem:[#allocation2 + $0x14] sm:$0x1] %vm7874_vm1, %v1184_v45  ;;  %1203 = vst.msk [vmem:[#allocation2 + $0x1a] sm:$0x1] %vm7874_vm1, %v1201_v49  ;;  %v1211_v61 = vrot.slane %v1204_v50, %v7872_v56  ;;  %v1214_v62 = vcombine.high %v1201_v49, %v1201_v49  ;;  %v1479_v63 = vcombine.high %v1473_v51, %v1473_v51 }
 0x198   : > { %1475 = vst.msk [vmem:[#allocation2 + $0x9] sm:$0x1] %vm7874_vm1, %v1473_v51  ;;  %v2024_v0 = vmax.f32 %v8026_v5, %v8047_v27  ;;  %1478 = vst.msk [vmem:[#allocation2 + $0xf] sm:$0x1] %vm7874_vm1, %v1476_v54  ;;  %v1496_v2 = vrot.slane %v1489_v55, %v7872_v56  ;;  %v1499_v1 = vcombine.high %v1489_v55, %v1489_v55  ;;  %v6200_v16 = vpop.f32.mrb[40].mxu0  ;;  %v6232_v18 = vpop.f32.mrb[40].mxu1 }
 0x199   : > { %v1732_v7 = vmax.f32 %v1730_v53, %v6194_v36  ;;  %v2027_v8 = vmax.f32 %v2025_v57, %v6226_v42  ;;  %1213 = vst.msk [vmem:[#allocation2 + $0x20] sm:$0x1] %vm7874_vm1, %v1211_v61  ;;  %1216 = vst.msk [vmem:[#allocation2 + $0x26] sm:$0x1] %vm7874_vm1, %v1214_v62  ;;  %v1217_v10 = vcombine.high %v1211_v61, %v1211_v61  ;;  %v1690_v19 = vpop.f32.mrb[41].mxu0  ;;  %v1985_v23 = vpop.f32.mrb[41].mxu1 }
 0x19a   : > { %1481 = vst.msk [vmem:[#allocation2 + $0x15] sm:$0x1] %vm7874_vm1, %v1479_v63  ;;  %v1731_v5 = vmax.f32 %v1729_v58, %v1670_v43  ;;  %v2026_v12 = vmax.f32 %v2024_v0, %v1965_v48  ;;  %1498 = vst.msk [vmem:[#allocation2 + $0x1b] sm:$0x1] %vm7874_vm1, %v1496_v2  ;;  %v1506_v13 = vrot.slane %v1499_v1, %v7872_v56 }
 0x19b   : > { %v1509_v6 = vcombine.high %v1496_v2, %v1496_v2  ;;  %v1734_v14 = vmax.f32 %v1732_v7, %v6197_v60  ;;  %v2029_v15 = vmax.f32 %v2027_v8, %v6229_v3  ;;  %1219 = vst.msk [vmem:[#allocation2 + $0x2c] sm:$0x1] %vm7874_vm1, %v1217_v10 }
 0x19c   : > { %v1733_v11 = vmax.f32 %v1731_v5, %v1680_v4  ;;  %v2028_v17 = vmax.f32 %v2026_v12, %v1975_v9  ;;  %1508 = vst.msk [vmem:[#allocation2 + $0x21] sm:$0x1] %vm7874_vm1, %v1506_v13  ;;  %v1512_v20 = vcombine.high %v1506_v13, %v1506_v13  ;;  %v6203_v26 = vpop.f32.mrb[42].mxu0  ;;  %v6235_v28 = vpop.f32.mrb[42].mxu1 }
 0x19d   : > { %1511 = vst.msk [vmem:[#allocation2 + $0x27] sm:$0x1] %vm7874_vm1, %v1509_v6  ;;  %v1736_v21 = vmax.f32 %v1734_v14, %v6200_v16  ;;  %v2031_v22 = vmax.f32 %v2029_v15, %v6232_v18  ;;  %v1700_v29 = vpop.f32.mrb[43].mxu0  ;;  %v1995_v32 = vpop.f32.mrb[43].mxu1 }
 0x19e   : > { %v1735_v24 = vmax.f32 %v1733_v11, %v1690_v19  ;;  %v2030_v25 = vmax.f32 %v2028_v17, %v1985_v23  ;;  %1514 = vst.msk [vmem:[#allocation2 + $0x2d] sm:$0x1] %vm7874_vm1, %v1512_v20 }
 0x19f   : > { %v1738_v27 = vmax.f32 %v1736_v21, %v6203_v26  ;;  %v2033_v30 = vmax.f32 %v2031_v22, %v6235_v28 }
 0x1a0   : > { %v1737_v31 = vmax.f32 %v1735_v24, %v1700_v29  ;;  %v2032_v33 = vmax.f32 %v2030_v25, %v1995_v32  ;;  %v6206_v34 = vpop.f32.mrb[44].mxu0  ;;  %v6238_v36 = vpop.f32.mrb[44].mxu1 }
 0x1a1   : > { %v1740_v35 = vmax.f32 %v1738_v27, %v6206_v34  ;;  %v1710_v37 = vpop.f32.mrb[45].mxu0  ;;  %v2035_v38 = vmax.f32 %v2033_v30, %v6238_v36  ;;  %v2005_v41 = vpop.f32.mrb[45].mxu1 }
 0x1a2   : > { %v1739_v40 = vmax.f32 %v1737_v31, %v1710_v37  ;;  %v2034_v42 = vmax.f32 %v2032_v33, %v2005_v41 }
 0x1a4   : > { %v6209_v43 = vpop.f32.mrb[46].mxu0  ;;  %v6241_v45 = vpop.f32.mrb[46].mxu1 }
 0x1a5   : > { %v1742_v44 = vmax.f32 %v1740_v35, %v6209_v43  ;;  %v1720_v46 = vpop.f32.mrb[47].mxu0  ;;  %v2037_v47 = vmax.f32 %v2035_v38, %v6241_v45  ;;  %v2015_v49 = vpop.f32.mrb[47].mxu1 }
 0x1a6   : > { %v1741_v48 = vmax.f32 %v1739_v40, %v1720_v46  ;;  %v2036_v51 = vmax.f32 %v2034_v42, %v2015_v49 }
 0x1a7   : > { %v1744_v50 = vadd.f32 %v1742_v44, %v7870_v52  ;;  %v2039_v53 = vadd.f32 %v2037_v47, %v7870_v52 }
 0x1a8   : > { %v1743_v54 = vadd.f32 %v1741_v48, %v7868_v39  ;;  %v2038_v58 = vadd.f32 %v2036_v51, %v7868_v39 }
 0x1a9   : > { %1810 = vst.msk [vmem:[#allocation2 + $0x34] sm:$0x1] %vm7874_vm1, %v1744_v50  ;;  %v1818_v55 = vrot.slane %v1744_v50, %v7872_v56  ;;  %v1842_v57 = vcombine.high %v1744_v50, %v1744_v50  ;;  %2105 = vst.msk [vmem:[#allocation2 + $0x35] sm:$0x1] %vm7874_vm1, %v2039_v53  ;;  %v2113_v60 = vrot.slane %v2039_v53, %v7872_v56 }
 0x1aa   : > { %v2137_v61 = vcombine.high %v2039_v53, %v2039_v53  ;;  %1745 = vst.msk [vmem:[#allocation2 + $0x4] sm:$0x1] %vm7874_vm1, %v1743_v54  ;;  %v1753_v52 = vrot.slane %v1743_v54, %v7872_v56  ;;  %v1777_v62 = vcombine.high %v1743_v54, %v1743_v54  ;;  %2040 = vst.msk [vmem:[#allocation2 + $0x5] sm:$0x1] %vm7874_vm1, %v2038_v58 }
 0x1ab   : > { %v1819_v63 = vcombine.high %v1818_v55, %v1818_v55  ;;  %v1826_v0 = vrot.slane %v1818_v55, %v7872_v56  ;;  %v1849_v3 = vrot.slane %v1842_v57, %v7872_v56  ;;  %v2048_v39 = vrot.slane %v2038_v58, %v7872_v56 }
 0x1ac   : > { %v2114_v4 = vcombine.high %v2113_v60, %v2113_v60  ;;  %v2121_v2 = vrot.slane %v2113_v60, %v7872_v56  ;;  %v2144_v1 = vrot.slane %v2137_v61, %v7872_v56  ;;  %v1754_v7 = vcombine.high %v1753_v52, %v1753_v52 }
 0x1ad   : > { %v1833_v8 = vrot.slane %v1819_v63, %v7872_v56  ;;  %v1836_v9 = vcombine.high %v1826_v0, %v1826_v0  ;;  %v1856_v10 = vrot.slane %v1849_v3, %v7872_v56  ;;  %v1859_v5 = vcombine.high %v1849_v3, %v1849_v3 }
 0x1ae   : > { %v2128_v12 = vrot.slane %v2114_v4, %v7872_v56  ;;  %v2131_v13 = vcombine.high %v2121_v2, %v2121_v2  ;;  %v2151_v6 = vrot.slane %v2144_v1, %v7872_v56  ;;  %v2154_v14 = vcombine.high %v2144_v1, %v2144_v1 }
 0x1af   : > { %1835 = vst.msk [vmem:[#allocation2 + $0x3a] sm:$0x1] %vm7874_vm1, %v1833_v8  ;;  %1838 = vst.msk [vmem:[#allocation2 + $0x40] sm:$0x1] %vm7874_vm1, %v1836_v9  ;;  %v1839_v15 = vcombine.high %v1833_v8, %v1833_v8  ;;  %v1866_v16 = vrot.slane %v1859_v5, %v7872_v56  ;;  %v1869_v11 = vcombine.high %v1856_v10, %v1856_v10 }
 0x1b0   : > { %1858 = vst.msk [vmem:[#allocation2 + $0x4c] sm:$0x1] %vm7874_vm1, %v1856_v10  ;;  %v1761_v17 = vrot.slane %v1753_v52, %v7872_v56  ;;  %2130 = vst.msk [vmem:[#allocation2 + $0x3b] sm:$0x1] %vm7874_vm1, %v2128_v12  ;;  %v2134_v18 = vcombine.high %v2128_v12, %v2128_v12  ;;  %v2161_v19 = vrot.slane %v2154_v14, %v7872_v56 }
 0x1b1   : > { %2133 = vst.msk [vmem:[#allocation2 + $0x41] sm:$0x1] %vm7874_vm1, %v2131_v13  ;;  %2153 = vst.msk [vmem:[#allocation2 + $0x4d] sm:$0x1] %vm7874_vm1, %v2151_v6  ;;  %v2164_v20 = vcombine.high %v2151_v6, %v2151_v6  ;;  %v1768_v21 = vrot.slane %v1754_v7, %v7872_v56  ;;  %v1872_v22 = vcombine.high %v1866_v16, %v1866_v16 }
 0x1b2   : > { %1841 = vst.msk [vmem:[#allocation2 + $0x46] sm:$0x1] %vm7874_vm1, %v1839_v15  ;;  %1868 = vst.msk [vmem:[#allocation2 + $0x52] sm:$0x1] %vm7874_vm1, %v1866_v16  ;;  %v1771_v23 = vcombine.high %v1761_v17, %v1761_v17  ;;  %v1784_v24 = vrot.slane %v1777_v62, %v7872_v56  ;;  %v2049_v25 = vcombine.high %v2048_v39, %v2048_v39 }
 0x1b3   : > { %1871 = vst.msk [vmem:[#allocation2 + $0x58] sm:$0x1] %vm7874_vm1, %v1869_v11  ;;  %2136 = vst.msk [vmem:[#allocation2 + $0x47] sm:$0x1] %vm7874_vm1, %v2134_v18  ;;  %v2167_v26 = vcombine.high %v2161_v19, %v2161_v19  ;;  %v1774_v27 = vcombine.high %v1768_v21, %v1768_v21  ;;  %v2056_v28 = vrot.slane %v2048_v39, %v7872_v56 }
 0x1b4   : > { %2163 = vst.msk [vmem:[#allocation2 + $0x53] sm:$0x1] %vm7874_vm1, %v2161_v19  ;;  %2166 = vst.msk [vmem:[#allocation2 + $0x59] sm:$0x1] %vm7874_vm1, %v2164_v20  ;;  %v2072_v29 = vcombine.high %v2038_v58, %v2038_v58  ;;  %v1791_v30 = vrot.slane %v1784_v24, %v7872_v56  ;;  %v1794_v31 = vcombine.high %v1784_v24, %v1784_v24 }
 0x1b5   : > { %1770 = vst.msk [vmem:[#allocation2 + $0xa] sm:$0x1] %vm7874_vm1, %v1768_v21  ;;  %1874 = vst.msk [vmem:[#allocation2 + $0x5e] sm:$0x1] %vm7874_vm1, %v1872_v22  ;;  %v2063_v32 = vrot.slane %v2049_v25, %v7872_v56  ;;  %v2066_v33 = vcombine.high %v2056_v28, %v2056_v28 }
 0x1b6   : > { %1773 = vst.msk [vmem:[#allocation2 + $0x10] sm:$0x1] %vm7874_vm1, %v1771_v23  ;;  %2169 = vst.msk [vmem:[#allocation2 + $0x5f] sm:$0x1] %vm7874_vm1, %v2167_v26  ;;  %v2079_v34 = vrot.slane %v2072_v29, %v7872_v56  ;;  %v1801_v35 = vrot.slane %v1794_v31, %v7872_v56  ;;  %v1804_v36 = vcombine.high %v1791_v30, %v1791_v30 }
 0x1b7   : > { %1776 = vst.msk [vmem:[#allocation2 + $0x16] sm:$0x1] %vm7874_vm1, %v1774_v27  ;;  %1793 = vst.msk [vmem:[#allocation2 + $0x1c] sm:$0x1] %vm7874_vm1, %v1791_v30  ;;  %v2069_v37 = vcombine.high %v2063_v32, %v2063_v32 }
 0x1b8   : > { %2065 = vst.msk [vmem:[#allocation2 + $0xb] sm:$0x1] %vm7874_vm1, %v2063_v32  ;;  %2068 = vst.msk [vmem:[#allocation2 + $0x11] sm:$0x1] %vm7874_vm1, %v2066_v33  ;;  %v2086_v38 = vrot.slane %v2079_v34, %v7872_v56  ;;  %v2089_v40 = vcombine.high %v2079_v34, %v2079_v34  ;;  %v1807_v41 = vcombine.high %v1801_v35, %v1801_v35 }
 0x1b9   : > { %1803 = vst.msk [vmem:[#allocation2 + $0x22] sm:$0x1] %vm7874_vm1, %v1801_v35  ;;  %1806 = vst.msk [vmem:[#allocation2 + $0x28] sm:$0x1] %vm7874_vm1, %v1804_v36 }
 0x1ba   : > { %2071 = vst.msk [vmem:[#allocation2 + $0x17] sm:$0x1] %vm7874_vm1, %v2069_v37  ;;  %2088 = vst.msk [vmem:[#allocation2 + $0x1d] sm:$0x1] %vm7874_vm1, %v2086_v38  ;;  %v2096_v42 = vrot.slane %v2089_v40, %v7872_v56  ;;  %v2099_v43 = vcombine.high %v2086_v38, %v2086_v38 }
 0x1bb   : > { %1809 = vst.msk [vmem:[#allocation2 + $0x2e] sm:$0x1] %vm7874_vm1, %v1807_v41 }
 0x1bc   : > { %2098 = vst.msk [vmem:[#allocation2 + $0x23] sm:$0x1] %vm7874_vm1, %v2096_v42  ;;  %2101 = vst.msk [vmem:[#allocation2 + $0x29] sm:$0x1] %vm7874_vm1, %v2099_v43  ;;  %v2102_v44 = vcombine.high %v2096_v42, %v2096_v42 }
 0x1be   : > { %2104 = vst.msk [vmem:[#allocation2 + $0x2f] sm:$0x1] %vm7874_vm1, %v2102_v44 }
 0x1bf PF: > { %v2195_v56 = vld [vmem:[%s7506_s8 + $0x80] sm:$0xff]  ;;  %v2196_v45 = vld [vmem:[%s7506_s8 + $0x88] sm:$0xff]  ;;  %v2197_v55 = vld [vmem:[%s7506_s8 + $0x90] sm:$0xff]  ;;  %v2953_v27 = vlaneseq  ;;  %s2171_s21 = smul.u32 48, %s7364_s6  ;;  %p5084_p4 = scmp.ne.s32.totalorder %s7364_s6, 1 }
 0x1c0   : > { %v2227_v46 = vld [vmem:[%s7506_s8 + $0x180] sm:$0xff]  ;;  %v6290_v47 = vpack.c.bf16 %v2196_v45, %v2195_v56  ;;  %v2228_v48 = vld [vmem:[%s7506_s8 + $0x188] sm:$0xff]  ;;  %v2198_v58 = vld [vmem:[%s7506_s8 + $0x98] sm:$0xff]  ;;  %vm4885_vm2 = vcmask (!%p5084_p4), 1040384   ;;  %vm4898_vm3 = vcmask (!%p5084_p4), 0  }
 0x1c1   : > { %v2179_v59 = vld [vmem:[%s7506_s8] sm:$0xff]  ;;  %v2180_v49 = vld [vmem:[%s7506_s8 + $0x8] sm:$0xff]  ;;  %v6322_v50 = vpack.c.bf16 %v2228_v48, %v2227_v46  ;;  %v2229_v60 = vld [vmem:[%s7506_s8 + $0x190] sm:$0xff]  ;;  %v6294_v52 = vpack.c.bf16 %v2198_v58, %v2197_v55  ;;  %v8262_v42 = vshrl.u32 %v2953_v27, 7  ;;  %s8285_s22 = scalar_lea.vmem [#allocation2], %s2171_s21 }
 0x1c2   : > { %v6292_v51 = vpack.c.bf16 %v2180_v49, %v2179_v59  ;;  %v2211_v53 = vld [vmem:[%s7506_s8 + $0x100] sm:$0xff]  ;;  %v2212_v54 = vld [vmem:[%s7506_s8 + $0x108] sm:$0xff]  ;;  %6291 = vmatprep.subr.bf16.mxu0 %v6290_v47  ;;  %v2230_v61 = vld [vmem:[%s7506_s8 + $0x198] sm:$0xff] }
 0x1c3   : > { %v6324_v57 = vpack.c.bf16 %v2212_v54, %v2211_v53  ;;  %6323 = vmatprep.subr.bf16.mxu1 %v6322_v50  ;;  %v6326_v62 = vpack.c.bf16 %v2230_v61, %v2229_v60  ;;  %v2181_v63 = vld [vmem:[%s7506_s8 + $0x10] sm:$0xff]  ;;  %v2182_v0 = vld [vmem:[%s7506_s8 + $0x18] sm:$0xff]  ;;  %v2199_v2 = vld [vmem:[%s7506_s8 + $0xa0] sm:$0xff]  ;;  %v8273_v54 = vsub.s32 1, %v8262_v42  ;;  %v8276_v55 = vsub.s32 3, %v8262_v42 }
 0x1c4   : > { %6293 = vmatpush3.bf16.msra.mxu0 %v6292_v51  ;;  %v2213_v3 = vld [vmem:[%s7506_s8 + $0x110] sm:$0xff]  ;;  %v6296_v39 = vpack.c.bf16 %v2182_v0, %v2181_v63  ;;  %v2214_v4 = vld [vmem:[%s7506_s8 + $0x118] sm:$0xff]  ;;  %v2200_v1 = vld [vmem:[%s7506_s8 + $0xa8] sm:$0xff] }
 0x1c5   : > { %6325 = vmatpush3.bf16.msra.mxu1 %v6324_v57  ;;  %6295 = vmatprep.subr.bf16.mxu0 %v6294_v52  ;;  %v6328_v7 = vpack.c.bf16 %v2214_v4, %v2213_v3  ;;  %v6298_v8 = vpack.c.bf16 %v2200_v1, %v2199_v2  ;;  %v2231_v9 = vld [vmem:[%s7506_s8 + $0x1a0] sm:$0xff]  ;;  %v2232_v10 = vld [vmem:[%s7506_s8 + $0x1a8] sm:$0xff]  ;;  %v2201_v16 = vld [vmem:[%s7506_s8 + $0xb0] sm:$0xff] }
 0x1c6   : > { %6327 = vmatprep.subr.bf16.mxu1 %v6326_v62  ;;  %v2183_v5 = vld [vmem:[%s7506_s8 + $0x20] sm:$0xff]  ;;  %v6330_v12 = vpack.c.bf16 %v2232_v10, %v2231_v9  ;;  %v2184_v13 = vld [vmem:[%s7506_s8 + $0x28] sm:$0xff]  ;;  %v2202_v11 = vld [vmem:[%s7506_s8 + $0xb8] sm:$0xff] }
 0x1c7   : > { %v2215_v6 = vld [vmem:[%s7506_s8 + $0x120] sm:$0xff]  ;;  %v2216_v14 = vld [vmem:[%s7506_s8 + $0x128] sm:$0xff]  ;;  %v6300_v15 = vpack.c.bf16 %v2184_v13, %v2183_v5  ;;  %v2233_v17 = vld [vmem:[%s7506_s8 + $0x1b0] sm:$0xff]  ;;  %v6302_v19 = vpack.c.bf16 %v2202_v11, %v2201_v16 }
 0x1c8   : > { %6297 = vmatpush3.bf16.msra.mxu0 %v6296_v39  ;;  %v6332_v18 = vpack.c.bf16 %v2216_v14, %v2215_v6  ;;  %v2234_v20 = vld [vmem:[%s7506_s8 + $0x1b8] sm:$0xff]  ;;  %v2185_v21 = vld [vmem:[%s7506_s8 + $0x30] sm:$0xff]  ;;  %v2203_v26 = vld [vmem:[%s7506_s8 + $0xc0] sm:$0xff] }
 0x1c9   : > { %6329 = vmatpush3.bf16.msra.mxu1 %v6328_v7  ;;  %6299 = vmatprep.subr.bf16.mxu0 %v6298_v8  ;;  %v2186_v22 = vld [vmem:[%s7506_s8 + $0x38] sm:$0xff]  ;;  %v6334_v23 = vpack.c.bf16 %v2234_v20, %v2233_v17  ;;  %v2217_v24 = vld [vmem:[%s7506_s8 + $0x130] sm:$0xff]  ;;  %v2204_v28 = vld [vmem:[%s7506_s8 + $0xc8] sm:$0xff] }
 0x1ca   : > { %6331 = vmatprep.subr.bf16.mxu1 %v6330_v12  ;;  %v2218_v25 = vld [vmem:[%s7506_s8 + $0x138] sm:$0xff]  ;;  %v2235_v29 = vld [vmem:[%s7506_s8 + $0x1c0] sm:$0xff]  ;;  %v2236_v30 = vld [vmem:[%s7506_s8 + $0x1c8] sm:$0xff]  ;;  %v6304_v31 = vpack.c.bf16 %v2186_v22, %v2185_v21  ;;  %v6306_v33 = vpack.c.bf16 %v2204_v28, %v2203_v26 }
 0x1cb   : > { %v6336_v32 = vpack.c.bf16 %v2218_v25, %v2217_v24  ;;  %v2187_v34 = vld [vmem:[%s7506_s8 + $0x40] sm:$0xff]  ;;  %v2188_v35 = vld [vmem:[%s7506_s8 + $0x48] sm:$0xff]  ;;  %v6338_v37 = vpack.c.bf16 %v2236_v30, %v2235_v29  ;;  %v2205_v40 = vld [vmem:[%s7506_s8 + $0xd0] sm:$0xff] }
 0x1cc   : > { %6301 = vmatpush3.bf16.msra.mxu0 %v6300_v15  ;;  %v2219_v36 = vld [vmem:[%s7506_s8 + $0x140] sm:$0xff]  ;;  %v2220_v38 = vld [vmem:[%s7506_s8 + $0x148] sm:$0xff]  ;;  %v2206_v41 = vld [vmem:[%s7506_s8 + $0xd8] sm:$0xff]  ;;  %v6308_v56 = vpack.c.bf16 %v2188_v35, %v2187_v34 }
 0x1cd   : > { %6333 = vmatpush3.bf16.msra.mxu1 %v6332_v18  ;;  %6303 = vmatprep.subr.bf16.mxu0 %v6302_v19  ;;  %v2237_v43 = vld [vmem:[%s7506_s8 + $0x1d0] sm:$0xff]  ;;  %v2238_v44 = vld [vmem:[%s7506_s8 + $0x1d8] sm:$0xff]  ;;  %v6340_v45 = vpack.c.bf16 %v2220_v38, %v2219_v36  ;;  %v6310_v46 = vpack.c.bf16 %v2206_v41, %v2205_v40  ;;  %v2207_v51 = vld [vmem:[%s7506_s8 + $0xe0] sm:$0xff]  ;;  %v8306_v19 = vsub.s32 0, %v8262_v42 }
 0x1ce   : > { %6335 = vmatprep.subr.bf16.mxu1 %v6334_v23  ;;  %v2189_v47 = vld [vmem:[%s7506_s8 + $0x50] sm:$0xff]  ;;  %v2190_v48 = vld [vmem:[%s7506_s8 + $0x58] sm:$0xff]  ;;  %v6342_v49 = vpack.c.bf16 %v2238_v44, %v2237_v43  ;;  %v2208_v53 = vld [vmem:[%s7506_s8 + $0xe8] sm:$0xff]  ;;  %v8311_v23 = vsub.s32 2, %v8262_v42 }
 0x1cf   : > { %v2221_v59 = vld [vmem:[%s7506_s8 + $0x150] sm:$0xff]  ;;  %v2222_v50 = vld [vmem:[%s7506_s8 + $0x158] sm:$0xff]  ;;  %v2239_v57 = vld [vmem:[%s7506_s8 + $0x1e0] sm:$0xff]  ;;  %v6312_v60 = vpack.c.bf16 %v2190_v48, %v2189_v47  ;;  %v6314_v62 = vpack.c.bf16 %v2208_v53, %v2207_v51 }
 0x1d0   : > { %6305 = vmatpush3.bf16.msra.mxu0 %v6304_v31  ;;  %v2240_v58 = vld [vmem:[%s7506_s8 + $0x1e8] sm:$0xff]  ;;  %v2191_v61 = vld [vmem:[%s7506_s8 + $0x60] sm:$0xff]  ;;  %v6344_v52 = vpack.c.bf16 %v2222_v50, %v2221_v59  ;;  %v2209_v2 = vld [vmem:[%s7506_s8 + $0xf0] sm:$0xff] }
 0x1d1   : > { %6337 = vmatpush3.bf16.msra.mxu1 %v6336_v32  ;;  %6307 = vmatprep.subr.bf16.mxu0 %v6306_v33  ;;  %v2192_v63 = vld [vmem:[%s7506_s8 + $0x68] sm:$0xff]  ;;  %v2223_v0 = vld [vmem:[%s7506_s8 + $0x160] sm:$0xff]  ;;  %v6346_v39 = vpack.c.bf16 %v2240_v58, %v2239_v57  ;;  %v2210_v1 = vld [vmem:[%s7506_s8 + $0xf8] sm:$0xff]  ;;  %v8320_v33 = vsub.s32 5, %v8262_v42 }
 0x1d2   : > { %6339 = vmatprep.subr.bf16.mxu1 %v6338_v37  ;;  %v8288_v3 = vld [vmem:[%s8285_s22] sm:$0xff]  ;;  %v2224_v4 = vld [vmem:[%s7506_s8 + $0x168] sm:$0xff]  ;;  %v2241_v9 = vld [vmem:[%s7506_s8 + $0x1f0] sm:$0xff]  ;;  %v6316_v5 = vpack.c.bf16 %v2192_v63, %v2191_v61  ;;  %v6318_v13 = vpack.c.bf16 %v2210_v1, %v2209_v2  ;;  %v8327_v37 = vsub.s32 7, %v8262_v42 }
 0x1d3   : > { %v2960_v7 = vrot.slane %v8288_v3, %v8273_v54  ;;  %v2968_v8 = vrot.slane %v8288_v3, %v8276_v55  ;;  %v2242_v10 = vld [vmem:[%s7506_s8 + $0x1f8] sm:$0xff]  ;;  %v6348_v12 = vpack.c.bf16 %v2224_v4, %v2223_v0  ;;  %v2193_v6 = vld [vmem:[%s7506_s8 + $0x70] sm:$0xff]  ;;  %v2259_v17 = vld [vmem:[%s7506_s8 + $0x280] sm:$0xff]  ;;  %v2956_v34 = vrot.slane %v8288_v3, %v8306_v19 }
 0x1d4   : > { %6309 = vmatpush3.bf16.msra.mxu0 %v6308_v56  ;;  %v2194_v14 = vld [vmem:[%s7506_s8 + $0x78] sm:$0xff]  ;;  %v2225_v15 = vld [vmem:[%s7506_s8 + $0x170] sm:$0xff]  ;;  %v6350_v16 = vpack.c.bf16 %v2242_v10, %v2241_v9  ;;  %v2260_v18 = vld [vmem:[%s7506_s8 + $0x288] sm:$0xff]  ;;  %v2964_v38 = vrot.slane %v8288_v3, %v8311_v23  ;;  %v2984_v53 = vrot.slane %v8288_v3, %v8327_v37 }
 0x1d5   : > { %6341 = vmatpush3.bf16.msra.mxu1 %v6340_v45  ;;  %6311 = vmatprep.subr.bf16.mxu0 %v6310_v46  ;;  %v2226_v11 = vld [vmem:[%s7506_s8 + $0x178] sm:$0xff]  ;;  %v2291_v20 = vld [vmem:[%s7506_s8 + $0x380] sm:$0xff]  ;;  %v2292_v21 = vld [vmem:[%s7506_s8 + $0x388] sm:$0xff]  ;;  %v6320_v22 = vpack.c.bf16 %v2194_v14, %v2193_v6  ;;  %v6354_v25 = vpack.c.bf16 %v2260_v18, %v2259_v17 }
 0x1d6   : > { %6343 = vmatprep.subr.bf16.mxu1 %v6342_v49  ;;  %3257 = vmatprep.mubr.f32.mxu0 %v2960_v7  ;;  %v6352_v24 = vpack.c.bf16 %v2226_v11, %v2225_v15  ;;  %v2243_v26 = vld [vmem:[%s7506_s8 + $0x200] sm:$0xff]  ;;  %v2244_v27 = vld [vmem:[%s7506_s8 + $0x208] sm:$0xff]  ;;  %v6386_v29 = vpack.c.bf16 %v2292_v21, %v2291_v20  ;;  %v2261_v31 = vld [vmem:[%s7506_s8 + $0x290] sm:$0xff]  ;;  %v2976_v49 = vrot.slane %v8288_v3, %v8320_v33 }
 0x1d7   : > { %3327 = vmatprep.mubr.f32.mxu1 %v2968_v8  ;;  %v2275_v28 = vld [vmem:[%s7506_s8 + $0x300] sm:$0xff]  ;;  %v2276_v30 = vld [vmem:[%s7506_s8 + $0x308] sm:$0xff]  ;;  %v2262_v32 = vld [vmem:[%s7506_s8 + $0x298] sm:$0xff]  ;;  %v6356_v40 = vpack.c.bf16 %v2244_v27, %v2243_v26 }
 0x1d8   : > { %6313 = vmatpush3.bf16.msra.mxu0 %v6312_v60  ;;  %v2293_v35 = vld [vmem:[%s7506_s8 + $0x390] sm:$0xff]  ;;  %v2294_v36 = vld [vmem:[%s7506_s8 + $0x398] sm:$0xff]  ;;  %v6388_v41 = vpack.c.bf16 %v2276_v30, %v2275_v28  ;;  %v6358_v43 = vpack.c.bf16 %v2262_v32, %v2261_v31  ;;  %v2263_v48 = vld [vmem:[%s7506_s8 + $0x2a0] sm:$0xff] }
 0x1d9   : > { %6345 = vmatpush3.bf16.msra.mxu1 %v6344_v52  ;;  %6315 = vmatprep.subr.bf16.mxu0 %v6314_v62  ;;  %v2245_v44 = vld [vmem:[%s7506_s8 + $0x210] sm:$0xff]  ;;  %v2246_v56 = vld [vmem:[%s7506_s8 + $0x218] sm:$0xff]  ;;  %v6390_v46 = vpack.c.bf16 %v2294_v36, %v2293_v35  ;;  %v2264_v59 = vld [vmem:[%s7506_s8 + $0x2a8] sm:$0xff] }
 0x1da   : > { %6347 = vmatprep.subr.bf16.mxu1 %v6346_v39  ;;  %v2277_v45 = vld [vmem:[%s7506_s8 + $0x310] sm:$0xff]  ;;  %v2278_v47 = vld [vmem:[%s7506_s8 + $0x318] sm:$0xff]  ;;  %v2295_v50 = vld [vmem:[%s7506_s8 + $0x3a0] sm:$0xff]  ;;  %v6360_v57 = vpack.c.bf16 %v2246_v56, %v2245_v44  ;;  %v6362_v60 = vpack.c.bf16 %v2264_v59, %v2263_v48 }
 0x1db   : > { %v2296_v51 = vld [vmem:[%s7506_s8 + $0x3a8] sm:$0xff]  ;;  %v6392_v58 = vpack.c.bf16 %v2278_v47, %v2277_v45  ;;  %v2247_v61 = vld [vmem:[%s7506_s8 + $0x220] sm:$0xff]  ;;  %v2265_v39 = vld [vmem:[%s7506_s8 + $0x2b0] sm:$0xff] }
 0x1dc   : > { %6317 = vmatpush3.bf16.msra.mxu0 %v6316_v5  ;;  %v2248_v52 = vld [vmem:[%s7506_s8 + $0x228] sm:$0xff]  ;;  %v2279_v62 = vld [vmem:[%s7506_s8 + $0x320] sm:$0xff]  ;;  %v6394_v63 = vpack.c.bf16 %v2296_v51, %v2295_v50  ;;  %v2266_v4 = vld [vmem:[%s7506_s8 + $0x2b8] sm:$0xff] }
 0x1dd   : > { %6349 = vmatpush3.bf16.msra.mxu1 %v6348_v12  ;;  %6319 = vmatprep.subr.bf16.mxu0 %v6318_v13  ;;  %v2280_v0 = vld [vmem:[%s7506_s8 + $0x328] sm:$0xff]  ;;  %v2297_v2 = vld [vmem:[%s7506_s8 + $0x3b0] sm:$0xff]  ;;  %v2298_v1 = vld [vmem:[%s7506_s8 + $0x3b8] sm:$0xff]  ;;  %v6364_v7 = vpack.c.bf16 %v2248_v52, %v2247_v61  ;;  %v6366_v9 = vpack.c.bf16 %v2266_v4, %v2265_v39 }
 0x1de   : > { %6351 = vmatprep.subr.bf16.mxu1 %v6350_v16  ;;  %v6396_v8 = vpack.c.bf16 %v2280_v0, %v2279_v62  ;;  %v2249_v10 = vld [vmem:[%s7506_s8 + $0x230] sm:$0xff]  ;;  %v2250_v5 = vld [vmem:[%s7506_s8 + $0x238] sm:$0xff]  ;;  %v6398_v13 = vpack.c.bf16 %v2298_v1, %v2297_v2  ;;  %v2267_v14 = vld [vmem:[%s7506_s8 + $0x2c0] sm:$0xff] }
 0x1df   : > { %v2281_v12 = vld [vmem:[%s7506_s8 + $0x330] sm:$0xff]  ;;  %v2282_v6 = vld [vmem:[%s7506_s8 + $0x338] sm:$0xff]  ;;  %v2268_v15 = vld [vmem:[%s7506_s8 + $0x2c8] sm:$0xff]  ;;  %v6368_v17 = vpack.c.bf16 %v2250_v5, %v2249_v10 }
 0x1e0   : > { %6321 = vmatpush3.bf16.msra.mxu0 %v6320_v22  ;;  %v2299_v16 = vld [vmem:[%s7506_s8 + $0x3c0] sm:$0xff]  ;;  %v2300_v11 = vld [vmem:[%s7506_s8 + $0x3c8] sm:$0xff]  ;;  %v6400_v18 = vpack.c.bf16 %v2282_v6, %v2281_v12  ;;  %v6370_v20 = vpack.c.bf16 %v2268_v15, %v2267_v14  ;;  %v2269_v27 = vld [vmem:[%s7506_s8 + $0x2d0] sm:$0xff] }
 0x1e1   : > { %6353 = vmatpush3.bf16.msra.mxu1 %v6352_v24  ;;  %6355 = vmatprep.subr.bf16.mxu0 %v6354_v25  ;;  %v2251_v21 = vld [vmem:[%s7506_s8 + $0x240] sm:$0xff]  ;;  %v2252_v22 = vld [vmem:[%s7506_s8 + $0x248] sm:$0xff]  ;;  %v6402_v25 = vpack.c.bf16 %v2300_v11, %v2299_v16  ;;  %v2270_v28 = vld [vmem:[%s7506_s8 + $0x2d8] sm:$0xff] }
 0x1e2   : > { %6387 = vmatprep.subr.bf16.mxu1 %v6386_v29  ;;  %v2283_v24 = vld [vmem:[%s7506_s8 + $0x340] sm:$0xff]  ;;  %v2284_v26 = vld [vmem:[%s7506_s8 + $0x348] sm:$0xff]  ;;  %v2301_v29 = vld [vmem:[%s7506_s8 + $0x3d0] sm:$0xff]  ;;  %v6372_v31 = vpack.c.bf16 %v2252_v22, %v2251_v21 }
 0x1e3   : > { %3258 = vmatmul.mubr.f32.vlgmr.msra.gmra.mrb[0].mxu0 %v2956_v34  ;;  %v2302_v30 = vld [vmem:[%s7506_s8 + $0x3d8] sm:$0xff]  ;;  %v6404_v32 = vpack.c.bf16 %v2284_v26, %v2283_v24  ;;  %v6374_v34 = vpack.c.bf16 %v2270_v28, %v2269_v27  ;;  %v2253_v35 = vld [vmem:[%s7506_s8 + $0x250] sm:$0xff]  ;;  %v2272_v44 = vld [vmem:[%s7506_s8 + $0x2e8] sm:$0xff] }
 0x1e4   : > { %3328 = vmatmul.mubr.f32.vlgmr.msra.gmra.mrb[0].mxu1 %v2964_v38  ;;  %6357 = vmatpush3.bf16.msra.mxu0 %v6356_v40  ;;  %v2254_v36 = vld [vmem:[%s7506_s8 + $0x258] sm:$0xff]  ;;  %v2285_v38 = vld [vmem:[%s7506_s8 + $0x350] sm:$0xff]  ;;  %v6406_v40 = vpack.c.bf16 %v2302_v30, %v2301_v29  ;;  %v2303_v56 = vld [vmem:[%s7506_s8 + $0x3e0] sm:$0xff] }
 0x1e5   : > { %6389 = vmatpush3.bf16.msra.mxu1 %v6388_v41  ;;  %6359 = vmatprep.subr.bf16.mxu0 %v6358_v43  ;;  %v2286_v41 = vld [vmem:[%s7506_s8 + $0x358] sm:$0xff]  ;;  %v2271_v43 = vld [vmem:[%s7506_s8 + $0x2e0] sm:$0xff]  ;;  %v2304_v45 = vld [vmem:[%s7506_s8 + $0x3e8] sm:$0xff] }
 0x1e6   : > { %6391 = vmatprep.subr.bf16.mxu1 %v6390_v46  ;;  %3397 = vmatprep.mubr.f32.mxu0 %v2976_v49  ;;  %v6376_v46 = vpack.c.bf16 %v2254_v36, %v2253_v35  ;;  %v6408_v47 = vpack.c.bf16 %v2286_v41, %v2285_v38  ;;  %v6378_v48 = vpack.c.bf16 %v2272_v44, %v2271_v43  ;;  %v2255_v59 = vld [vmem:[%s7506_s8 + $0x260] sm:$0xff]  ;;  %v2256_v49 = vld [vmem:[%s7506_s8 + $0x268] sm:$0xff]  ;;  %v2306_v61 = vld [vmem:[%s7506_s8 + $0x3f8] sm:$0xff] }
 0x1e7   : > { %3467 = vmatprep.mubr.f32.mxu1 %v2984_v53  ;;  %v2287_v50 = vld [vmem:[%s7506_s8 + $0x360] sm:$0xff]  ;;  %v6410_v51 = vpack.c.bf16 %v2304_v45, %v2303_v56  ;;  %v2288_v53 = vld [vmem:[%s7506_s8 + $0x368] sm:$0xff]  ;;  %v6380_v52 = vpack.c.bf16 %v2256_v49, %v2255_v59  ;;  %v2257_v0 = vld [vmem:[%s7506_s8 + $0x270] sm:$0xff] }
 0x1e8   : > { %6361 = vmatpush3.bf16.msra.mxu0 %v6360_v57  ;;  %v2273_v57 = vld [vmem:[%s7506_s8 + $0x2f0] sm:$0xff]  ;;  %v6412_v62 = vpack.c.bf16 %v2288_v53, %v2287_v50  ;;  %v2258_v39 = vld [vmem:[%s7506_s8 + $0x278] sm:$0xff]  ;;  %v2355_v10 = vld [vmem:[%s7506_s8 + $0x580] sm:$0xff] }
 0x1e9   : > { %6393 = vmatpush3.bf16.msra.mxu1 %v6392_v58  ;;  %6363 = vmatprep.subr.bf16.mxu0 %v6362_v60  ;;  %v2274_v58 = vld [vmem:[%s7506_s8 + $0x2f8] sm:$0xff]  ;;  %v2305_v60 = vld [vmem:[%s7506_s8 + $0x3f0] sm:$0xff]  ;;  %v2356_v5 = vld [vmem:[%s7506_s8 + $0x588] sm:$0xff]  ;;  %v6384_v12 = vpack.c.bf16 %v2258_v39, %v2257_v0 }
 0x1ea   : > { %6395 = vmatprep.subr.bf16.mxu1 %v6394_v63  ;;  %v6382_v63 = vpack.c.bf16 %v2274_v58, %v2273_v57  ;;  %v2289_v4 = vld [vmem:[%s7506_s8 + $0x370] sm:$0xff]  ;;  %v6414_v2 = vpack.c.bf16 %v2306_v61, %v2305_v60  ;;  %v2290_v1 = vld [vmem:[%s7506_s8 + $0x378] sm:$0xff]  ;;  %v2307_v15 = vld [vmem:[%s7506_s8 + $0x400] sm:$0xff] }
 0x1eb   : > { %v6416_v6 = vpack.c.bf16 %v2290_v1, %v2289_v4  ;;  %v2308_v16 = vld [vmem:[%s7506_s8 + $0x408] sm:$0xff]  ;;  %v2339_v11 = vld [vmem:[%s7506_s8 + $0x500] sm:$0xff]  ;;  %v2326_v21 = vld [vmem:[%s7506_s8 + $0x498] sm:$0xff] }
 0x1ec   : > { %6365 = vmatpush3.bf16.msra.mxu0 %v6364_v7  ;;  %v2323_v7 = vld [vmem:[%s7506_s8 + $0x480] sm:$0xff]  ;;  %v2357_v22 = vld [vmem:[%s7506_s8 + $0x590] sm:$0xff]  ;;  %v2358_v24 = vld [vmem:[%s7506_s8 + $0x598] sm:$0xff] }
 0x1ed   : > { %6397 = vmatpush3.bf16.msra.mxu1 %v6396_v8  ;;  %6367 = vmatprep.subr.bf16.mxu0 %v6366_v9  ;;  %v2324_v8 = vld [vmem:[%s7506_s8 + $0x488] sm:$0xff]  ;;  %v8390_v9 = vsub.s32 4, %v8262_v42  ;;  %v2309_v30 = vld [vmem:[%s7506_s8 + $0x410] sm:$0xff]  ;;  %v2342_v35 = vld [vmem:[%s7506_s8 + $0x518] sm:$0xff] }
 0x1ee   : > { %6399 = vmatprep.subr.bf16.mxu1 %v6398_v13  ;;  %v8395_v13 = vsub.s32 6, %v8262_v42  ;;  %v6418_v14 = vpack.c.bf16 %v2324_v8, %v2323_v7  ;;  %v8410_v27 = vld [vmem:[%s8285_s22 + $0x8] sm:$0xff]  ;;  %v2329_v50 = vld [vmem:[%s7506_s8 + $0x4b0] sm:$0xff]  ;;  %v2362_v57 = vld [vmem:[%s7506_s8 + $0x5b8] sm:$0xff] }
 0x1ef   : > { %v2972_v42 = vrot.slane %v8288_v3, %v8390_v9  ;;  %v2327_v36 = vld [vmem:[%s7506_s8 + $0x4a0] sm:$0xff]  ;;  %v2328_v38 = vld [vmem:[%s7506_s8 + $0x4a8] sm:$0xff]  ;;  %v3000_v43 = vrot.slane %v8410_v27, %v8276_v55  ;;  %v2361_v53 = vld [vmem:[%s7506_s8 + $0x5b0] sm:$0xff] }
 0x1f0   : > { %6369 = vmatpush3.bf16.msra.mxu0 %v6368_v17  ;;  %v6450_v17 = vpack.c.bf16 %v2356_v5, %v2355_v10  ;;  %v2980_v26 = vrot.slane %v8288_v3, %v8395_v13  ;;  %v2992_v3 = vrot.slane %v8410_v27, %v8273_v54  ;;  %v2360_v41 = vld [vmem:[%s7506_s8 + $0x5a8] sm:$0xff]  ;;  %v6426_v45 = vpack.c.bf16 %v2328_v38, %v2327_v36  ;;  %v2346_v39 = vld [vmem:[%s7506_s8 + $0x538] sm:$0xff]  ;;  %v2331_v4 = vld [vmem:[%s7506_s8 + $0x4c0] sm:$0xff] }
 0x1f1   : > { %6401 = vmatpush3.bf16.msra.mxu1 %v6400_v18  ;;  %6371 = vmatprep.subr.bf16.mxu0 %v6370_v20  ;;  %v2340_v18 = vld [vmem:[%s7506_s8 + $0x508] sm:$0xff]  ;;  %v2325_v20 = vld [vmem:[%s7506_s8 + $0x490] sm:$0xff]  ;;  %v6462_v0 = vpack.c.bf16 %v2362_v57, %v2361_v53  ;;  %v2363_v1 = vld [vmem:[%s7506_s8 + $0x5c0] sm:$0xff] }
 0x1f2   : > { %6403 = vmatprep.subr.bf16.mxu1 %v6402_v25  ;;  %v6420_v25 = vpack.c.bf16 %v2308_v16, %v2307_v15  ;;  %v6452_v28 = vpack.c.bf16 %v2340_v18, %v2339_v11  ;;  %v6422_v29 = vpack.c.bf16 %v2326_v21, %v2325_v20  ;;  %v2344_v49 = vld [vmem:[%s7506_s8 + $0x528] sm:$0xff]  ;;  %v2333_v11 = vld [vmem:[%s7506_s8 + $0x4d0] sm:$0xff]  ;;  %v2366_v20 = vld [vmem:[%s7506_s8 + $0x5d8] sm:$0xff] }
 0x1f3   : > { %v2364_v7 = vld [vmem:[%s7506_s8 + $0x5c8] sm:$0xff]  ;;  %v2365_v18 = vld [vmem:[%s7506_s8 + $0x5d0] sm:$0xff] }
 0x1f4   : > { %6373 = vmatpush3.bf16.msra.mxu0 %v6372_v31  ;;  %v2310_v31 = vld [vmem:[%s7506_s8 + $0x418] sm:$0xff]  ;;  %v6466_v15 = vpack.c.bf16 %v2364_v7, %v2363_v1  ;;  %v2348_v16 = vld [vmem:[%s7506_s8 + $0x548] sm:$0xff]  ;;  %v2353_v53 = vld [vmem:[%s7506_s8 + $0x570] sm:$0xff] }
 0x1f5   : > { %6405 = vmatpush3.bf16.msra.mxu1 %v6404_v32  ;;  %6375 = vmatprep.subr.bf16.mxu0 %v6374_v34  ;;  %v2341_v32 = vld [vmem:[%s7506_s8 + $0x510] sm:$0xff]  ;;  %v6454_v34 = vpack.c.bf16 %v2358_v24, %v2357_v22  ;;  %v6424_v44 = vpack.c.bf16 %v2310_v31, %v2309_v30  ;;  %v2335_v30 = vld [vmem:[%s7506_s8 + $0x4e0] sm:$0xff]  ;;  %v2336_v31 = vld [vmem:[%s7506_s8 + $0x4e8] sm:$0xff] }
 0x1f6   : > { %6407 = vmatprep.subr.bf16.mxu1 %v6406_v40  ;;  %v2359_v40 = vld [vmem:[%s7506_s8 + $0x5a0] sm:$0xff]  ;;  %v6456_v56 = vpack.c.bf16 %v2342_v35, %v2341_v32  ;;  %v2317_v24 = vld [vmem:[%s7506_s8 + $0x450] sm:$0xff]  ;;  %v6442_v38 = vpack.c.bf16 %v2336_v31, %v2335_v30  ;;  %v3016_v30 = vrot.slane %v8410_v27, %v8327_v37 }
 0x1f7   : > { %v6458_v59 = vpack.c.bf16 %v2360_v41, %v2359_v40  ;;  %v2367_v32 = vld [vmem:[%s7506_s8 + $0x5e0] sm:$0xff]  ;;  %v2320_v40 = vld [vmem:[%s7506_s8 + $0x468] sm:$0xff] }
 0x1f8   : > { %6377 = vmatpush3.bf16.msra.mxu0 %v6376_v46  ;;  %v2311_v46 = vld [vmem:[%s7506_s8 + $0x420] sm:$0xff] }
 0x1f9   : > { %6409 = vmatpush3.bf16.msra.mxu1 %v6408_v47  ;;  %6379 = vmatprep.subr.bf16.mxu0 %v6378_v48  ;;  %v2312_v47 = vld [vmem:[%s7506_s8 + $0x428] sm:$0xff]  ;;  %v2343_v48 = vld [vmem:[%s7506_s8 + $0x520] sm:$0xff] }
 0x1fa   : > { %6411 = vmatprep.subr.bf16.mxu1 %v6410_v51  ;;  %v2330_v51 = vld [vmem:[%s7506_s8 + $0x4b8] sm:$0xff]  ;;  %v6428_v58 = vpack.c.bf16 %v2312_v47, %v2311_v46  ;;  %v6460_v60 = vpack.c.bf16 %v2344_v49, %v2343_v48  ;;  %v2351_v41 = vld [vmem:[%s7506_s8 + $0x560] sm:$0xff]  ;;  %v2369_v46 = vld [vmem:[%s7506_s8 + $0x5f0] sm:$0xff] }
 0x1fb   : > { %v6430_v61 = vpack.c.bf16 %v2330_v51, %v2329_v50  ;;  %v2370_v47 = vld [vmem:[%s7506_s8 + $0x5f8] sm:$0xff]  ;;  %v2321_v50 = vld [vmem:[%s7506_s8 + $0x470] sm:$0xff]  ;;  %v2403_v1 = vld [vmem:[%s7506_s8 + $0x700] sm:$0xff] }
 0x1fc   : > { %6381 = vmatpush3.bf16.msra.mxu0 %v6380_v52  ;;  %v2313_v52 = vld [vmem:[%s7506_s8 + $0x430] sm:$0xff]  ;;  %v2322_v51 = vld [vmem:[%s7506_s8 + $0x478] sm:$0xff]  ;;  %v6478_v57 = vpack.c.bf16 %v2370_v47, %v2369_v46 }
 0x1fd   : > { %6413 = vmatpush3.bf16.msra.mxu1 %v6412_v62  ;;  %6383 = vmatprep.subr.bf16.mxu0 %v6382_v63  ;;  %v2314_v62 = vld [vmem:[%s7506_s8 + $0x438] sm:$0xff]  ;;  %v2345_v63 = vld [vmem:[%s7506_s8 + $0x530] sm:$0xff] }
 0x1fe   : > { %6415 = vmatprep.subr.bf16.mxu1 %v6414_v2  ;;  %v2332_v2 = vld [vmem:[%s7506_s8 + $0x4c8] sm:$0xff]  ;;  %v6432_v8 = vpack.c.bf16 %v2314_v62, %v2313_v52  ;;  %v6464_v10 = vpack.c.bf16 %v2346_v39, %v2345_v63  ;;  %v2419_v52 = vld [vmem:[%s7506_s8 + $0x780] sm:$0xff]  ;;  %v6448_v63 = vpack.c.bf16 %v2322_v51, %v2321_v50  ;;  %v2410_v51 = vld [vmem:[%s7506_s8 + $0x738] sm:$0xff] }
 0x1ff   : > { %v6434_v5 = vpack.c.bf16 %v2332_v2, %v2331_v4  ;;  %v2420_v62 = vld [vmem:[%s7506_s8 + $0x788] sm:$0xff]  ;;  %v2371_v4 = vld [vmem:[%s7506_s8 + $0x600] sm:$0xff] }
 0x200   : > { %6385 = vmatpush3.bf16.msra.mxu0 %v6384_v12  ;;  %v2315_v12 = vld [vmem:[%s7506_s8 + $0x440] sm:$0xff]  ;;  %v2372_v2 = vld [vmem:[%s7506_s8 + $0x608] sm:$0xff]  ;;  %v6514_v7 = vpack.c.bf16 %v2420_v62, %v2419_v52 }
 0x201   : > { %6417 = vmatpush3.bf16.msra.mxu1 %v6416_v6  ;;  %6419 = vmatprep.subr.bf16.mxu0 %v6418_v14  ;;  %v2316_v6 = vld [vmem:[%s7506_s8 + $0x448] sm:$0xff]  ;;  %v2347_v14 = vld [vmem:[%s7506_s8 + $0x540] sm:$0xff] }
 0x202   : > { %6451 = vmatprep.subr.bf16.mxu1 %v6450_v17  ;;  %v2334_v17 = vld [vmem:[%s7506_s8 + $0x4d8] sm:$0xff]  ;;  %v6436_v21 = vpack.c.bf16 %v2316_v6, %v2315_v12  ;;  %v2988_v12 = vrot.slane %v8410_v27, %v8306_v19  ;;  %v2421_v6 = vld [vmem:[%s7506_s8 + $0x790] sm:$0xff] }
 0x203   : > { %3398 = vmatmul.mubr.f32.vlgmr.msra.gmra.mrb[2].mxu0 %v2972_v42  ;;  %v6468_v42 = vpack.c.bf16 %v2348_v16, %v2347_v14  ;;  %v6438_v22 = vpack.c.bf16 %v2334_v17, %v2333_v11  ;;  %v2422_v14 = vld [vmem:[%s7506_s8 + $0x798] sm:$0xff]  ;;  %v2996_v16 = vrot.slane %v8410_v27, %v8311_v23 }
 0x204   : > { %6421 = vmatpush3.bf16.msra.mxu0 %v6420_v25  ;;  %3468 = vmatmul.mubr.f32.vlgmr.msra.gmra.mrb[2].mxu1 %v2980_v26  ;;  %v2318_v25 = vld [vmem:[%s7506_s8 + $0x458] sm:$0xff]  ;;  %v2349_v26 = vld [vmem:[%s7506_s8 + $0x550] sm:$0xff] }
 0x205   : > { %6453 = vmatpush3.bf16.msra.mxu1 %v6452_v28  ;;  %6423 = vmatprep.subr.bf16.mxu0 %v6422_v29  ;;  %v6470_v28 = vpack.c.bf16 %v2366_v20, %v2365_v18  ;;  %v2350_v29 = vld [vmem:[%s7506_s8 + $0x558] sm:$0xff]  ;;  %v6440_v35 = vpack.c.bf16 %v2318_v25, %v2317_v24  ;;  %v2373_v18 = vld [vmem:[%s7506_s8 + $0x610] sm:$0xff]  ;;  %v2391_v24 = vld [vmem:[%s7506_s8 + $0x6a0] sm:$0xff] }
 0x206   : > { %6455 = vmatprep.subr.bf16.mxu1 %v6454_v34  ;;  %3537 = vmatprep.mubr.f32.mxu0 %v2992_v3  ;;  %v2368_v34 = vld [vmem:[%s7506_s8 + $0x5e8] sm:$0xff]  ;;  %v6472_v36 = vpack.c.bf16 %v2350_v29, %v2349_v26  ;;  %v2319_v3 = vld [vmem:[%s7506_s8 + $0x460] sm:$0xff]  ;;  %v2374_v20 = vld [vmem:[%s7506_s8 + $0x618] sm:$0xff]  ;;  %v3008_v26 = vrot.slane %v8410_v27, %v8320_v33 }
 0x207   : > { %3607 = vmatprep.mubr.f32.mxu1 %v3000_v43  ;;  %v6474_v43 = vpack.c.bf16 %v2368_v34, %v2367_v32  ;;  %v6444_v48 = vpack.c.bf16 %v2320_v40, %v2319_v3  ;;  %v2392_v25 = vld [vmem:[%s7506_s8 + $0x6a8] sm:$0xff]  ;;  %v6488_v31 = vpack.c.bf16 %v2374_v20, %v2373_v18  ;;  %v2399_v18 = vld [vmem:[%s7506_s8 + $0x6e0] sm:$0xff] }
 0x208   : > { %6425 = vmatpush3.bf16.msra.mxu0 %v6424_v44  ;;  %v2352_v44 = vld [vmem:[%s7506_s8 + $0x568] sm:$0xff]  ;;  %v6490_v34 = vpack.c.bf16 %v2392_v25, %v2391_v24 }
 0x209   : > { %6457 = vmatpush3.bf16.msra.mxu1 %v6456_v56  ;;  %6427 = vmatprep.subr.bf16.mxu0 %v6426_v45  ;;  %v2337_v56 = vld [vmem:[%s7506_s8 + $0x4f0] sm:$0xff]  ;;  %v2338_v45 = vld [vmem:[%s7506_s8 + $0x4f8] sm:$0xff]  ;;  %v2424_v29 = vld [vmem:[%s7506_s8 + $0x7a8] sm:$0xff] }
 0x20a   : > { %6459 = vmatprep.subr.bf16.mxu1 %v6458_v59  ;;  %v6476_v59 = vpack.c.bf16 %v2352_v44, %v2351_v41  ;;  %v6446_v49 = vpack.c.bf16 %v2338_v45, %v2337_v56  ;;  %v2408_v40 = vld [vmem:[%s7506_s8 + $0x728] sm:$0xff]  ;;  %v2393_v41 = vld [vmem:[%s7506_s8 + $0x6b0] sm:$0xff]  ;;  %v2426_v56 = vld [vmem:[%s7506_s8 + $0x7b8] sm:$0xff] }
 0x20b   : > { %v2425_v44 = vld [vmem:[%s7506_s8 + $0x7b0] sm:$0xff]  ;;  %v2400_v20 = vld [vmem:[%s7506_s8 + $0x6e8] sm:$0xff] }
 0x20c   : > { %6429 = vmatpush3.bf16.msra.mxu0 %v6428_v58  ;;  %v2354_v58 = vld [vmem:[%s7506_s8 + $0x578] sm:$0xff]  ;;  %v6526_v50 = vpack.c.bf16 %v2426_v56, %v2425_v44  ;;  %v6506_v25 = vpack.c.bf16 %v2400_v20, %v2399_v18  ;;  %v2417_v44 = vld [vmem:[%s7506_s8 + $0x770] sm:$0xff] }
 0x20d   : > { %6461 = vmatpush3.bf16.msra.mxu1 %v6460_v60  ;;  %6431 = vmatprep.subr.bf16.mxu0 %v6430_v61  ;;  %v2387_v60 = vld [vmem:[%s7506_s8 + $0x680] sm:$0xff]  ;;  %v2388_v61 = vld [vmem:[%s7506_s8 + $0x688] sm:$0xff] }
 0x20e   : > { %6463 = vmatprep.subr.bf16.mxu1 %v6462_v0  ;;  %v6480_v0 = vpack.c.bf16 %v2354_v58, %v2353_v53  ;;  %v6482_v39 = vpack.c.bf16 %v2388_v61, %v2387_v60  ;;  %v2395_v53 = vld [vmem:[%s7506_s8 + $0x6c0] sm:$0xff]  ;;  %v2428_v60 = vld [vmem:[%s7506_s8 + $0x7c8] sm:$0xff] }
 0x20f   : > { %v2427_v58 = vld [vmem:[%s7506_s8 + $0x7c0] sm:$0xff] }
 0x210   : > { %6433 = vmatpush3.bf16.msra.mxu0 %v6432_v8  ;;  %v2404_v8 = vld [vmem:[%s7506_s8 + $0x708] sm:$0xff] }
 0x211   : > { %6465 = vmatpush3.bf16.msra.mxu1 %v6464_v10  ;;  %6435 = vmatprep.subr.bf16.mxu0 %v6434_v5  ;;  %v2389_v10 = vld [vmem:[%s7506_s8 + $0x690] sm:$0xff]  ;;  %v2390_v5 = vld [vmem:[%s7506_s8 + $0x698] sm:$0xff]  ;;  %v6516_v11 = vpack.c.bf16 %v2404_v8, %v2403_v1 }
 0x212   : > { %6467 = vmatprep.subr.bf16.mxu1 %v6466_v15  ;;  %v6484_v15 = vpack.c.bf16 %v2372_v2, %v2371_v4  ;;  %v6486_v17 = vpack.c.bf16 %v2390_v5, %v2389_v10  ;;  %v6530_v4 = vpack.c.bf16 %v2428_v60, %v2427_v58  ;;  %v2412_v2 = vld [vmem:[%s7506_s8 + $0x748] sm:$0xff]  ;;  %v2397_v1 = vld [vmem:[%s7506_s8 + $0x6d0] sm:$0xff]  ;;  %v2430_v10 = vld [vmem:[%s7506_s8 + $0x7d8] sm:$0xff] }
 0x213   : > { %v2429_v8 = vld [vmem:[%s7506_s8 + $0x7d0] sm:$0xff]  ;;  %v2467_v58 = vld [vmem:[%s7506_s8 + $0x900] sm:$0xff] }
 0x214   : > { %6437 = vmatpush3.bf16.msra.mxu0 %v6436_v21  ;;  %v2405_v21 = vld [vmem:[%s7506_s8 + $0x710] sm:$0xff] }
 0x215   : > { %6469 = vmatpush3.bf16.msra.mxu1 %v6468_v42  ;;  %6439 = vmatprep.subr.bf16.mxu0 %v6438_v22  ;;  %v6518_v42 = vpack.c.bf16 %v2422_v14, %v2421_v6  ;;  %v2406_v22 = vld [vmem:[%s7506_s8 + $0x718] sm:$0xff]  ;;  %v2381_v14 = vld [vmem:[%s7506_s8 + $0x650] sm:$0xff] }
 0x216   : > { %6471 = vmatprep.subr.bf16.mxu1 %v6470_v28  ;;  %v2423_v28 = vld [vmem:[%s7506_s8 + $0x7a0] sm:$0xff]  ;;  %v6520_v32 = vpack.c.bf16 %v2406_v22, %v2405_v21 }
 0x217   : > { %v6522_v3 = vpack.c.bf16 %v2424_v29, %v2423_v28  ;;  %v2431_v21 = vld [vmem:[%s7506_s8 + $0x7e0] sm:$0xff]  ;;  %v2384_v28 = vld [vmem:[%s7506_s8 + $0x668] sm:$0xff] }
 0x218   : > { %6441 = vmatpush3.bf16.msra.mxu0 %v6440_v35  ;;  %v2375_v35 = vld [vmem:[%s7506_s8 + $0x620] sm:$0xff] }
 0x219   : > { %6473 = vmatpush3.bf16.msra.mxu1 %v6472_v36  ;;  %6443 = vmatprep.subr.bf16.mxu0 %v6442_v38  ;;  %v2376_v36 = vld [vmem:[%s7506_s8 + $0x628] sm:$0xff]  ;;  %v2407_v38 = vld [vmem:[%s7506_s8 + $0x720] sm:$0xff] }
 0x21a   : > { %6475 = vmatprep.subr.bf16.mxu1 %v6474_v43  ;;  %v2394_v43 = vld [vmem:[%s7506_s8 + $0x6b8] sm:$0xff]  ;;  %v6492_v45 = vpack.c.bf16 %v2376_v36, %v2375_v35  ;;  %v6524_v46 = vpack.c.bf16 %v2408_v40, %v2407_v38  ;;  %v2415_v29 = vld [vmem:[%s7506_s8 + $0x760] sm:$0xff]  ;;  %v2433_v35 = vld [vmem:[%s7506_s8 + $0x7f0] sm:$0xff] }
 0x21b   : > { %v6494_v47 = vpack.c.bf16 %v2394_v43, %v2393_v41  ;;  %v2434_v36 = vld [vmem:[%s7506_s8 + $0x7f8] sm:$0xff]  ;;  %v2385_v41 = vld [vmem:[%s7506_s8 + $0x670] sm:$0xff] }
 0x21c   : > { %6445 = vmatpush3.bf16.msra.mxu0 %v6444_v48  ;;  %v2377_v48 = vld [vmem:[%s7506_s8 + $0x630] sm:$0xff]  ;;  %v2386_v43 = vld [vmem:[%s7506_s8 + $0x678] sm:$0xff]  ;;  %v6542_v56 = vpack.c.bf16 %v2434_v36, %v2433_v35 }
 0x21d   : > { %6477 = vmatpush3.bf16.msra.mxu1 %v6476_v59  ;;  %6447 = vmatprep.subr.bf16.mxu0 %v6446_v49  ;;  %v2378_v59 = vld [vmem:[%s7506_s8 + $0x638] sm:$0xff]  ;;  %v2409_v49 = vld [vmem:[%s7506_s8 + $0x730] sm:$0xff] }
 0x21e   : > { %6479 = vmatprep.subr.bf16.mxu1 %v6478_v57  ;;  %v2396_v57 = vld [vmem:[%s7506_s8 + $0x6c8] sm:$0xff]  ;;  %v6496_v61 = vpack.c.bf16 %v2378_v59, %v2377_v48  ;;  %v6528_v52 = vpack.c.bf16 %v2410_v51, %v2409_v49  ;;  %v2483_v48 = vld [vmem:[%s7506_s8 + $0x980] sm:$0xff]  ;;  %v6512_v49 = vpack.c.bf16 %v2386_v43, %v2385_v41  ;;  %v2474_v43 = vld [vmem:[%s7506_s8 + $0x938] sm:$0xff] }
 0x21f   : > { %v6498_v62 = vpack.c.bf16 %v2396_v57, %v2395_v53  ;;  %v2484_v59 = vld [vmem:[%s7506_s8 + $0x988] sm:$0xff]  ;;  %v2435_v53 = vld [vmem:[%s7506_s8 + $0x800] sm:$0xff] }
 0x220   : > { %6449 = vmatpush3.bf16.msra.mxu0 %v6448_v63  ;;  %v2379_v63 = vld [vmem:[%s7506_s8 + $0x640] sm:$0xff]  ;;  %v2436_v57 = vld [vmem:[%s7506_s8 + $0x808] sm:$0xff]  ;;  %v6578_v60 = vpack.c.bf16 %v2484_v59, %v2483_v48 }
 0x221   : > { %6481 = vmatpush3.bf16.msra.mxu1 %v6480_v0  ;;  %6483 = vmatprep.subr.bf16.mxu0 %v6482_v39  ;;  %v2380_v0 = vld [vmem:[%s7506_s8 + $0x648] sm:$0xff]  ;;  %v2411_v39 = vld [vmem:[%s7506_s8 + $0x740] sm:$0xff] }
 0x222   : > { %6515 = vmatprep.subr.bf16.mxu1 %v6514_v7  ;;  %v2398_v7 = vld [vmem:[%s7506_s8 + $0x6d8] sm:$0xff]  ;;  %v6500_v5 = vpack.c.bf16 %v2380_v0, %v2379_v63  ;;  %v3004_v63 = vrot.slane %v8410_v27, %v8390_v9  ;;  %v2485_v0 = vld [vmem:[%s7506_s8 + $0x990] sm:$0xff] }
 0x223   : > { %3538 = vmatmul.mubr.f32.vlgmr.msra.gmra.mrb[4].mxu0 %v2988_v12  ;;  %v6532_v12 = vpack.c.bf16 %v2412_v2, %v2411_v39  ;;  %v6502_v6 = vpack.c.bf16 %v2398_v7, %v2397_v1  ;;  %v2486_v39 = vld [vmem:[%s7506_s8 + $0x998] sm:$0xff]  ;;  %v6548_v2 = vpack.c.bf16 %v2436_v57, %v2435_v53  ;;  %v3012_v1 = vrot.slane %v8410_v27, %v8395_v13  ;;  %v2487_v27 = vld [vmem:[%s7506_s8 + $0x9a0] sm:$0xff]  ;;  %v2476_v57 = vld [vmem:[%s7506_s8 + $0x948] sm:$0xff] }
 0x224   : > { %6485 = vmatpush3.bf16.msra.mxu0 %v6484_v15  ;;  %3608 = vmatmul.mubr.f32.vlgmr.msra.gmra.mrb[4].mxu1 %v2996_v16  ;;  %v2382_v15 = vld [vmem:[%s7506_s8 + $0x658] sm:$0xff]  ;;  %v2413_v16 = vld [vmem:[%s7506_s8 + $0x750] sm:$0xff] }
 0x225   : > { %6517 = vmatpush3.bf16.msra.mxu1 %v6516_v11  ;;  %6487 = vmatprep.subr.bf16.mxu0 %v6486_v17  ;;  %v6534_v11 = vpack.c.bf16 %v2430_v10, %v2429_v8  ;;  %v2414_v17 = vld [vmem:[%s7506_s8 + $0x758] sm:$0xff]  ;;  %v6504_v22 = vpack.c.bf16 %v2382_v15, %v2381_v14  ;;  %v2437_v10 = vld [vmem:[%s7506_s8 + $0x810] sm:$0xff]  ;;  %v2455_v15 = vld [vmem:[%s7506_s8 + $0x8a0] sm:$0xff] }
 0x226   : > { %6519 = vmatprep.subr.bf16.mxu1 %v6518_v42  ;;  %3677 = vmatprep.mubr.f32.mxu0 %v3008_v26  ;;  %v2432_v42 = vld [vmem:[%s7506_s8 + $0x7e8] sm:$0xff]  ;;  %v6536_v24 = vpack.c.bf16 %v2414_v17, %v2413_v16  ;;  %v2383_v26 = vld [vmem:[%s7506_s8 + $0x660] sm:$0xff]  ;;  %v2470_v14 = vld [vmem:[%s7506_s8 + $0x918] sm:$0xff] }
 0x227   : > { %3747 = vmatprep.mubr.f32.mxu1 %v3016_v30  ;;  %v6538_v30 = vpack.c.bf16 %v2432_v42, %v2431_v21  ;;  %v6508_v38 = vpack.c.bf16 %v2384_v28, %v2383_v26  ;;  %v2456_v16 = vld [vmem:[%s7506_s8 + $0x8a8] sm:$0xff] }
 0x228   : > { %6489 = vmatpush3.bf16.msra.mxu0 %v6488_v31  ;;  %v2416_v31 = vld [vmem:[%s7506_s8 + $0x768] sm:$0xff]  ;;  %v6554_v42 = vpack.c.bf16 %v2456_v16, %v2455_v15 }
 0x229   : > { %6521 = vmatpush3.bf16.msra.mxu1 %v6520_v32  ;;  %6491 = vmatprep.subr.bf16.mxu0 %v6490_v34  ;;  %v2401_v32 = vld [vmem:[%s7506_s8 + $0x6f0] sm:$0xff]  ;;  %v2402_v34 = vld [vmem:[%s7506_s8 + $0x6f8] sm:$0xff]  ;;  %v2488_v17 = vld [vmem:[%s7506_s8 + $0x9a8] sm:$0xff] }
 0x22a   : > { %6523 = vmatprep.subr.bf16.mxu1 %v6522_v3  ;;  %v6540_v3 = vpack.c.bf16 %v2416_v31, %v2415_v29  ;;  %v6510_v40 = vpack.c.bf16 %v2402_v34, %v2401_v32  ;;  %v6586_v26 = vpack.c.bf16 %v2488_v17, %v2487_v27  ;;  %v2472_v28 = vld [vmem:[%s7506_s8 + $0x928] sm:$0xff]  ;;  %v2457_v29 = vld [vmem:[%s7506_s8 + $0x8b0] sm:$0xff]  ;;  %v2490_v32 = vld [vmem:[%s7506_s8 + $0x9b8] sm:$0xff] }
 0x22b   : > { %v2489_v31 = vld [vmem:[%s7506_s8 + $0x9b0] sm:$0xff]  ;;  %v2448_v27 = vld [vmem:[%s7506_s8 + $0x868] sm:$0xff]  ;;  %v2479_v17 = vld [vmem:[%s7506_s8 + $0x960] sm:$0xff] }
 0x22c   : > { %6493 = vmatpush3.bf16.msra.mxu0 %v6492_v45  ;;  %v2418_v45 = vld [vmem:[%s7506_s8 + $0x778] sm:$0xff]  ;;  %v6590_v41 = vpack.c.bf16 %v2490_v32, %v2489_v31  ;;  %v2481_v31 = vld [vmem:[%s7506_s8 + $0x970] sm:$0xff] }
 0x22d   : > { %6525 = vmatpush3.bf16.msra.mxu1 %v6524_v46  ;;  %6495 = vmatprep.subr.bf16.mxu0 %v6494_v47  ;;  %v2451_v46 = vld [vmem:[%s7506_s8 + $0x880] sm:$0xff]  ;;  %v2452_v47 = vld [vmem:[%s7506_s8 + $0x888] sm:$0xff] }
 0x22e   : > { %6527 = vmatprep.subr.bf16.mxu1 %v6526_v50  ;;  %v6544_v50 = vpack.c.bf16 %v2418_v45, %v2417_v44  ;;  %v6546_v51 = vpack.c.bf16 %v2452_v47, %v2451_v46  ;;  %v2459_v44 = vld [vmem:[%s7506_s8 + $0x8c0] sm:$0xff]  ;;  %v2492_v46 = vld [vmem:[%s7506_s8 + $0x9c8] sm:$0xff] }
 0x22f   : > { %v2491_v45 = vld [vmem:[%s7506_s8 + $0x9c0] sm:$0xff] }
 0x230   : > { %6497 = vmatpush3.bf16.msra.mxu0 %v6496_v61  ;;  %v2468_v61 = vld [vmem:[%s7506_s8 + $0x908] sm:$0xff]  ;;  %v6594_v53 = vpack.c.bf16 %v2492_v46, %v2491_v45  ;;  %v2531_v45 = vld [vmem:[%s7506_s8 + $0xb00] sm:$0xff] }
 0x231   : > { %6529 = vmatpush3.bf16.msra.mxu1 %v6528_v52  ;;  %6499 = vmatprep.subr.bf16.mxu0 %v6498_v62  ;;  %v2453_v52 = vld [vmem:[%s7506_s8 + $0x890] sm:$0xff]  ;;  %v2454_v62 = vld [vmem:[%s7506_s8 + $0x898] sm:$0xff]  ;;  %v6580_v7 = vpack.c.bf16 %v2468_v61, %v2467_v58 }
 0x232   : > { %6531 = vmatprep.subr.bf16.mxu1 %v6530_v4  ;;  %v8555_v4 = vld [vmem:[%s8285_s22 + $0x10] sm:$0xff]  ;;  %v6550_v8 = vpack.c.bf16 %v2454_v62, %v2453_v52  ;;  %v2494_v52 = vld [vmem:[%s7506_s8 + $0x9d8] sm:$0xff] }
 0x233   : > { %v3032_v18 = vrot.slane %v8555_v4, %v8276_v55  ;;  %v2461_v58 = vld [vmem:[%s7506_s8 + $0x8d0] sm:$0xff] }
 0x234   : > { %6501 = vmatpush3.bf16.msra.mxu0 %v6500_v5  ;;  %v2438_v5 = vld [vmem:[%s7506_s8 + $0x818] sm:$0xff]  ;;  %v2493_v61 = vld [vmem:[%s7506_s8 + $0x9d0] sm:$0xff] }
 0x235   : > { %6533 = vmatpush3.bf16.msra.mxu1 %v6532_v12  ;;  %6503 = vmatprep.subr.bf16.mxu0 %v6502_v6  ;;  %v2469_v12 = vld [vmem:[%s7506_s8 + $0x910] sm:$0xff]  ;;  %v6582_v6 = vpack.c.bf16 %v2486_v39, %v2485_v0  ;;  %v6552_v20 = vpack.c.bf16 %v2438_v5, %v2437_v10  ;;  %v2463_v10 = vld [vmem:[%s7506_s8 + $0x8e0] sm:$0xff]  ;;  %v2464_v5 = vld [vmem:[%s7506_s8 + $0x8e8] sm:$0xff] }
 0x236   : > { %6535 = vmatprep.subr.bf16.mxu1 %v6534_v11  ;;  %v3024_v11 = vrot.slane %v8555_v4, %v8273_v54  ;;  %v6584_v21 = vpack.c.bf16 %v2470_v14, %v2469_v12  ;;  %v2445_v39 = vld [vmem:[%s7506_s8 + $0x850] sm:$0xff]  ;;  %v2495_v12 = vld [vmem:[%s7506_s8 + $0x9e0] sm:$0xff]  ;;  %v6570_v16 = vpack.c.bf16 %v2464_v5, %v2463_v10  ;;  %v3048_v10 = vrot.slane %v8555_v4, %v8327_v37 }
 0x238   : > { %6505 = vmatpush3.bf16.msra.mxu0 %v6504_v22  ;;  %v2439_v22 = vld [vmem:[%s7506_s8 + $0x820] sm:$0xff] }
 0x239   : > { %6537 = vmatpush3.bf16.msra.mxu1 %v6536_v24  ;;  %6507 = vmatprep.subr.bf16.mxu0 %v6506_v25  ;;  %v2440_v24 = vld [vmem:[%s7506_s8 + $0x828] sm:$0xff]  ;;  %v2471_v25 = vld [vmem:[%s7506_s8 + $0x920] sm:$0xff] }
 0x23a   : > { %6539 = vmatprep.subr.bf16.mxu1 %v6538_v30  ;;  %v2458_v30 = vld [vmem:[%s7506_s8 + $0x8b8] sm:$0xff]  ;;  %v6556_v34 = vpack.c.bf16 %v2440_v24, %v2439_v22  ;;  %v6588_v35 = vpack.c.bf16 %v2472_v28, %v2471_v25  ;;  %v2497_v22 = vld [vmem:[%s7506_s8 + $0x9f0] sm:$0xff] }
 0x23b   : > { %v6558_v36 = vpack.c.bf16 %v2458_v30, %v2457_v29  ;;  %v2498_v24 = vld [vmem:[%s7506_s8 + $0x9f8] sm:$0xff]  ;;  %v2449_v29 = vld [vmem:[%s7506_s8 + $0x870] sm:$0xff] }
 0x23c   : > { %6509 = vmatpush3.bf16.msra.mxu0 %v6508_v38  ;;  %v2441_v38 = vld [vmem:[%s7506_s8 + $0x830] sm:$0xff]  ;;  %v2450_v30 = vld [vmem:[%s7506_s8 + $0x878] sm:$0xff]  ;;  %v6606_v32 = vpack.c.bf16 %v2498_v24, %v2497_v22 }
 0x23d   : > { %6541 = vmatpush3.bf16.msra.mxu1 %v6540_v3  ;;  %6511 = vmatprep.subr.bf16.mxu0 %v6510_v40  ;;  %v2442_v3 = vld [vmem:[%s7506_s8 + $0x838] sm:$0xff]  ;;  %v2473_v40 = vld [vmem:[%s7506_s8 + $0x930] sm:$0xff] }
 0x23e   : > { %6543 = vmatprep.subr.bf16.mxu1 %v6542_v56  ;;  %v2460_v56 = vld [vmem:[%s7506_s8 + $0x8c8] sm:$0xff]  ;;  %v6560_v47 = vpack.c.bf16 %v2442_v3, %v2441_v38  ;;  %v6592_v48 = vpack.c.bf16 %v2474_v43, %v2473_v40  ;;  %v2547_v38 = vld [vmem:[%s7506_s8 + $0xb80] sm:$0xff]  ;;  %v6576_v40 = vpack.c.bf16 %v2450_v30, %v2449_v29  ;;  %v2538_v30 = vld [vmem:[%s7506_s8 + $0xb38] sm:$0xff] }
 0x23f   : > { %v6562_v59 = vpack.c.bf16 %v2460_v56, %v2459_v44  ;;  %v2548_v3 = vld [vmem:[%s7506_s8 + $0xb88] sm:$0xff]  ;;  %v2499_v44 = vld [vmem:[%s7506_s8 + $0xa00] sm:$0xff] }
 0x240   : > { %6513 = vmatpush3.bf16.msra.mxu0 %v6512_v49  ;;  %v2443_v49 = vld [vmem:[%s7506_s8 + $0x840] sm:$0xff]  ;;  %v2500_v56 = vld [vmem:[%s7506_s8 + $0xa08] sm:$0xff]  ;;  %v6642_v46 = vpack.c.bf16 %v2548_v3, %v2547_v38 }
 0x241   : > { %6545 = vmatpush3.bf16.msra.mxu1 %v6544_v50  ;;  %6547 = vmatprep.subr.bf16.mxu0 %v6546_v51  ;;  %v2444_v50 = vld [vmem:[%s7506_s8 + $0x848] sm:$0xff]  ;;  %v2475_v51 = vld [vmem:[%s7506_s8 + $0x940] sm:$0xff] }
 0x242   : > { %6579 = vmatprep.subr.bf16.mxu1 %v6578_v60  ;;  %v2462_v60 = vld [vmem:[%s7506_s8 + $0x8d8] sm:$0xff]  ;;  %v6564_v62 = vpack.c.bf16 %v2444_v50, %v2443_v49  ;;  %v3020_v49 = vrot.slane %v8555_v4, %v8306_v19  ;;  %v2549_v50 = vld [vmem:[%s7506_s8 + $0xb90] sm:$0xff] }
 0x243   : > { %3678 = vmatmul.mubr.f32.vlgmr.msra.gmra.mrb[6].mxu0 %v3004_v63  ;;  %v6596_v63 = vpack.c.bf16 %v2476_v57, %v2475_v51  ;;  %v6566_v0 = vpack.c.bf16 %v2462_v60, %v2461_v58  ;;  %v2550_v51 = vld [vmem:[%s7506_s8 + $0xb98] sm:$0xff]  ;;  %v3028_v57 = vrot.slane %v8555_v4, %v8311_v23 }
 0x244   : > { %6549 = vmatpush3.bf16.msra.mxu0 %v6548_v2  ;;  %3748 = vmatmul.mubr.f32.vlgmr.msra.gmra.mrb[6].mxu1 %v3012_v1  ;;  %v2446_v2 = vld [vmem:[%s7506_s8 + $0x858] sm:$0xff]  ;;  %v2477_v1 = vld [vmem:[%s7506_s8 + $0x950] sm:$0xff] }
 0x245   : > { %6581 = vmatpush3.bf16.msra.mxu1 %v6580_v7  ;;  %6551 = vmatprep.subr.bf16.mxu0 %v6550_v8  ;;  %v6598_v7 = vpack.c.bf16 %v2494_v52, %v2493_v61  ;;  %v2478_v8 = vld [vmem:[%s7506_s8 + $0x958] sm:$0xff]  ;;  %v6568_v14 = vpack.c.bf16 %v2446_v2, %v2445_v39  ;;  %v2501_v61 = vld [vmem:[%s7506_s8 + $0xa10] sm:$0xff]  ;;  %v2519_v39 = vld [vmem:[%s7506_s8 + $0xaa0] sm:$0xff] }
 0x246   : > { %6583 = vmatprep.subr.bf16.mxu1 %v6582_v6  ;;  %3817 = vmatprep.mubr.f32.mxu0 %v3024_v11  ;;  %v2496_v6 = vld [vmem:[%s7506_s8 + $0x9e8] sm:$0xff]  ;;  %v6600_v15 = vpack.c.bf16 %v2478_v8, %v2477_v1  ;;  %v2447_v11 = vld [vmem:[%s7506_s8 + $0x860] sm:$0xff]  ;;  %v2502_v52 = vld [vmem:[%s7506_s8 + $0xa18] sm:$0xff]  ;;  %v3040_v1 = vrot.slane %v8555_v4, %v8320_v33 }
 0x247   : > { %3887 = vmatprep.mubr.f32.mxu1 %v3032_v18  ;;  %v6602_v18 = vpack.c.bf16 %v2496_v6, %v2495_v12  ;;  %v6572_v25 = vpack.c.bf16 %v2448_v27, %v2447_v11  ;;  %v2520_v2 = vld [vmem:[%s7506_s8 + $0xaa8] sm:$0xff]  ;;  %v6616_v5 = vpack.c.bf16 %v2502_v52, %v2501_v61  ;;  %v2527_v61 = vld [vmem:[%s7506_s8 + $0xae0] sm:$0xff] }
 0x248   : > { %6553 = vmatpush3.bf16.msra.mxu0 %v6552_v20  ;;  %v2480_v20 = vld [vmem:[%s7506_s8 + $0x968] sm:$0xff]  ;;  %v6618_v6 = vpack.c.bf16 %v2520_v2, %v2519_v39 }
 0x249   : > { %6585 = vmatpush3.bf16.msra.mxu1 %v6584_v21  ;;  %6555 = vmatprep.subr.bf16.mxu0 %v6554_v42  ;;  %v2465_v21 = vld [vmem:[%s7506_s8 + $0x8f0] sm:$0xff]  ;;  %v2466_v42 = vld [vmem:[%s7506_s8 + $0x8f8] sm:$0xff]  ;;  %v2552_v8 = vld [vmem:[%s7506_s8 + $0xba8] sm:$0xff] }
 0x24a   : > { %6587 = vmatprep.subr.bf16.mxu1 %v6586_v26  ;;  %v6604_v26 = vpack.c.bf16 %v2480_v20, %v2479_v17  ;;  %v6574_v28 = vpack.c.bf16 %v2466_v42, %v2465_v21  ;;  %v2536_v27 = vld [vmem:[%s7506_s8 + $0xb28] sm:$0xff]  ;;  %v2521_v17 = vld [vmem:[%s7506_s8 + $0xab0] sm:$0xff]  ;;  %v2554_v21 = vld [vmem:[%s7506_s8 + $0xbb8] sm:$0xff] }
 0x24b   : > { %v2553_v20 = vld [vmem:[%s7506_s8 + $0xbb0] sm:$0xff]  ;;  %v2528_v52 = vld [vmem:[%s7506_s8 + $0xae8] sm:$0xff] }
 0x24c   : > { %6557 = vmatpush3.bf16.msra.mxu0 %v6556_v34  ;;  %v2482_v34 = vld [vmem:[%s7506_s8 + $0x978] sm:$0xff]  ;;  %v6654_v29 = vpack.c.bf16 %v2554_v21, %v2553_v20  ;;  %v6634_v2 = vpack.c.bf16 %v2528_v52, %v2527_v61  ;;  %v2545_v20 = vld [vmem:[%s7506_s8 + $0xb70] sm:$0xff] }
 0x24d   : > { %6589 = vmatpush3.bf16.msra.mxu1 %v6588_v35  ;;  %6559 = vmatprep.subr.bf16.mxu0 %v6558_v36  ;;  %v2515_v35 = vld [vmem:[%s7506_s8 + $0xa80] sm:$0xff]  ;;  %v2516_v36 = vld [vmem:[%s7506_s8 + $0xa88] sm:$0xff] }
 0x24e   : > { %6591 = vmatprep.subr.bf16.mxu1 %v6590_v41  ;;  %v6608_v41 = vpack.c.bf16 %v2482_v34, %v2481_v31  ;;  %v6610_v43 = vpack.c.bf16 %v2516_v36, %v2515_v35  ;;  %v2523_v31 = vld [vmem:[%s7506_s8 + $0xac0] sm:$0xff]  ;;  %v2556_v35 = vld [vmem:[%s7506_s8 + $0xbc8] sm:$0xff] }
 0x24f   : > { %v2555_v34 = vld [vmem:[%s7506_s8 + $0xbc0] sm:$0xff] }
 0x250   : > { %6561 = vmatpush3.bf16.msra.mxu0 %v6560_v47  ;;  %v2532_v47 = vld [vmem:[%s7506_s8 + $0xb08] sm:$0xff] }
 0x251   : > { %6593 = vmatpush3.bf16.msra.mxu1 %v6592_v48  ;;  %6563 = vmatprep.subr.bf16.mxu0 %v6562_v59  ;;  %v2517_v48 = vld [vmem:[%s7506_s8 + $0xa90] sm:$0xff]  ;;  %v2518_v59 = vld [vmem:[%s7506_s8 + $0xa98] sm:$0xff]  ;;  %v6644_v58 = vpack.c.bf16 %v2532_v47, %v2531_v45 }
 0x252   : > { %6595 = vmatprep.subr.bf16.mxu1 %v6594_v53  ;;  %v6612_v53 = vpack.c.bf16 %v2500_v56, %v2499_v44  ;;  %v6614_v60 = vpack.c.bf16 %v2518_v59, %v2517_v48  ;;  %v6658_v44 = vpack.c.bf16 %v2556_v35, %v2555_v34  ;;  %v2540_v56 = vld [vmem:[%s7506_s8 + $0xb48] sm:$0xff]  ;;  %v2525_v45 = vld [vmem:[%s7506_s8 + $0xad0] sm:$0xff]  ;;  %v2558_v48 = vld [vmem:[%s7506_s8 + $0xbd8] sm:$0xff] }
 0x253   : > { %v2557_v47 = vld [vmem:[%s7506_s8 + $0xbd0] sm:$0xff]  ;;  %v2595_v34 = vld [vmem:[%s7506_s8 + $0xd00] sm:$0xff] }
 0x254   : > { %6565 = vmatpush3.bf16.msra.mxu0 %v6564_v62  ;;  %v2533_v62 = vld [vmem:[%s7506_s8 + $0xb10] sm:$0xff] }
 0x255   : > { %6597 = vmatpush3.bf16.msra.mxu1 %v6596_v63  ;;  %6567 = vmatprep.subr.bf16.mxu0 %v6566_v0  ;;  %v6646_v63 = vpack.c.bf16 %v2550_v51, %v2549_v50  ;;  %v2534_v0 = vld [vmem:[%s7506_s8 + $0xb18] sm:$0xff]  ;;  %v2509_v51 = vld [vmem:[%s7506_s8 + $0xa50] sm:$0xff] }
 0x256   : > { %6599 = vmatprep.subr.bf16.mxu1 %v6598_v7  ;;  %v2551_v7 = vld [vmem:[%s7506_s8 + $0xba0] sm:$0xff]  ;;  %v6648_v12 = vpack.c.bf16 %v2534_v0, %v2533_v62 }
 0x257   : > { %v6650_v11 = vpack.c.bf16 %v2552_v8, %v2551_v7  ;;  %v2559_v62 = vld [vmem:[%s7506_s8 + $0xbe0] sm:$0xff]  ;;  %v2512_v7 = vld [vmem:[%s7506_s8 + $0xa68] sm:$0xff] }
 0x258   : > { %6569 = vmatpush3.bf16.msra.mxu0 %v6568_v14  ;;  %v2503_v14 = vld [vmem:[%s7506_s8 + $0xa20] sm:$0xff] }
 0x259   : > { %6601 = vmatpush3.bf16.msra.mxu1 %v6600_v15  ;;  %6571 = vmatprep.subr.bf16.mxu0 %v6570_v16  ;;  %v2504_v15 = vld [vmem:[%s7506_s8 + $0xa28] sm:$0xff]  ;;  %v2535_v16 = vld [vmem:[%s7506_s8 + $0xb20] sm:$0xff] }
 0x25a   : > { %6603 = vmatprep.subr.bf16.mxu1 %v6602_v18  ;;  %v2522_v18 = vld [vmem:[%s7506_s8 + $0xab8] sm:$0xff]  ;;  %v6620_v42 = vpack.c.bf16 %v2504_v15, %v2503_v14  ;;  %v6652_v22 = vpack.c.bf16 %v2536_v27, %v2535_v16  ;;  %v2543_v8 = vld [vmem:[%s7506_s8 + $0xb60] sm:$0xff]  ;;  %v2561_v14 = vld [vmem:[%s7506_s8 + $0xbf0] sm:$0xff] }
 0x25b   : > { %v6622_v24 = vpack.c.bf16 %v2522_v18, %v2521_v17  ;;  %v2562_v15 = vld [vmem:[%s7506_s8 + $0xbf8] sm:$0xff]  ;;  %v2513_v17 = vld [vmem:[%s7506_s8 + $0xa70] sm:$0xff] }
 0x25c   : > { %6573 = vmatpush3.bf16.msra.mxu0 %v6572_v25  ;;  %v2505_v25 = vld [vmem:[%s7506_s8 + $0xa30] sm:$0xff]  ;;  %v2514_v18 = vld [vmem:[%s7506_s8 + $0xa78] sm:$0xff]  ;;  %v6670_v21 = vpack.c.bf16 %v2562_v15, %v2561_v14 }
 0x25d   : > { %6605 = vmatpush3.bf16.msra.mxu1 %v6604_v26  ;;  %6575 = vmatprep.subr.bf16.mxu0 %v6574_v28  ;;  %v2506_v26 = vld [vmem:[%s7506_s8 + $0xa38] sm:$0xff]  ;;  %v2537_v28 = vld [vmem:[%s7506_s8 + $0xb30] sm:$0xff] }
 0x25e   : > { %6607 = vmatprep.subr.bf16.mxu1 %v6606_v32  ;;  %v2524_v32 = vld [vmem:[%s7506_s8 + $0xac8] sm:$0xff]  ;;  %v6624_v36 = vpack.c.bf16 %v2506_v26, %v2505_v25  ;;  %v6656_v38 = vpack.c.bf16 %v2538_v30, %v2537_v28  ;;  %v2611_v25 = vld [vmem:[%s7506_s8 + $0xd80] sm:$0xff]  ;;  %v6640_v28 = vpack.c.bf16 %v2514_v18, %v2513_v17  ;;  %v2602_v18 = vld [vmem:[%s7506_s8 + $0xd38] sm:$0xff] }
 0x25f   : > { %v6626_v3 = vpack.c.bf16 %v2524_v32, %v2523_v31  ;;  %v2612_v26 = vld [vmem:[%s7506_s8 + $0xd88] sm:$0xff]  ;;  %v2563_v31 = vld [vmem:[%s7506_s8 + $0xc00] sm:$0xff] }
 0x260   : > { %6577 = vmatpush3.bf16.msra.mxu0 %v6576_v40  ;;  %v2507_v40 = vld [vmem:[%s7506_s8 + $0xa40] sm:$0xff]  ;;  %v2564_v32 = vld [vmem:[%s7506_s8 + $0xc08] sm:$0xff]  ;;  %v6706_v35 = vpack.c.bf16 %v2612_v26, %v2611_v25 }
 0x261   : > { %6609 = vmatpush3.bf16.msra.mxu1 %v6608_v41  ;;  %6611 = vmatprep.subr.bf16.mxu0 %v6610_v43  ;;  %v2508_v41 = vld [vmem:[%s7506_s8 + $0xa48] sm:$0xff]  ;;  %v2539_v43 = vld [vmem:[%s7506_s8 + $0xb40] sm:$0xff] }
 0x262   : > { %6643 = vmatprep.subr.bf16.mxu1 %v6642_v46  ;;  %v2526_v46 = vld [vmem:[%s7506_s8 + $0xad8] sm:$0xff]  ;;  %v6628_v59 = vpack.c.bf16 %v2508_v41, %v2507_v40  ;;  %v3036_v40 = vrot.slane %v8555_v4, %v8390_v9  ;;  %v2613_v41 = vld [vmem:[%s7506_s8 + $0xd90] sm:$0xff] }
 0x263   : > { %3818 = vmatmul.mubr.f32.vlgmr.msra.gmra.mrb[8].mxu0 %v3020_v49  ;;  %v6660_v49 = vpack.c.bf16 %v2540_v56, %v2539_v43  ;;  %v6630_v50 = vpack.c.bf16 %v2526_v46, %v2525_v45  ;;  %v2614_v43 = vld [vmem:[%s7506_s8 + $0xd98] sm:$0xff]  ;;  %v6676_v56 = vpack.c.bf16 %v2564_v32, %v2563_v31  ;;  %v3044_v45 = vrot.slane %v8555_v4, %v8395_v13  ;;  %v2615_v4 = vld [vmem:[%s7506_s8 + $0xda0] sm:$0xff]  ;;  %v2604_v32 = vld [vmem:[%s7506_s8 + $0xd48] sm:$0xff] }
 0x264   : > { %6613 = vmatpush3.bf16.msra.mxu0 %v6612_v53  ;;  %3888 = vmatmul.mubr.f32.vlgmr.msra.gmra.mrb[8].mxu1 %v3028_v57  ;;  %v2510_v53 = vld [vmem:[%s7506_s8 + $0xa58] sm:$0xff]  ;;  %v2541_v57 = vld [vmem:[%s7506_s8 + $0xb50] sm:$0xff] }
 0x265   : > { %6645 = vmatpush3.bf16.msra.mxu1 %v6644_v58  ;;  %6615 = vmatprep.subr.bf16.mxu0 %v6614_v60  ;;  %v6662_v58 = vpack.c.bf16 %v2558_v48, %v2557_v47  ;;  %v2542_v60 = vld [vmem:[%s7506_s8 + $0xb58] sm:$0xff]  ;;  %v6632_v0 = vpack.c.bf16 %v2510_v53, %v2509_v51  ;;  %v2565_v48 = vld [vmem:[%s7506_s8 + $0xc10] sm:$0xff]  ;;  %v2583_v53 = vld [vmem:[%s7506_s8 + $0xca0] sm:$0xff] }
 0x266   : > { %6647 = vmatprep.subr.bf16.mxu1 %v6646_v63  ;;  %3957 = vmatprep.mubr.f32.mxu0 %v3040_v1  ;;  %v2560_v63 = vld [vmem:[%s7506_s8 + $0xbe8] sm:$0xff]  ;;  %v6664_v39 = vpack.c.bf16 %v2542_v60, %v2541_v57  ;;  %v2511_v1 = vld [vmem:[%s7506_s8 + $0xa60] sm:$0xff]  ;;  %v2598_v51 = vld [vmem:[%s7506_s8 + $0xd18] sm:$0xff] }
 0x267   : > { %4027 = vmatprep.mubr.f32.mxu1 %v3048_v10  ;;  %v6666_v10 = vpack.c.bf16 %v2560_v63, %v2559_v62  ;;  %v6636_v16 = vpack.c.bf16 %v2512_v7, %v2511_v1  ;;  %v2584_v57 = vld [vmem:[%s7506_s8 + $0xca8] sm:$0xff] }
 0x268   : > { %6617 = vmatpush3.bf16.msra.mxu0 %v6616_v5  ;;  %v2544_v5 = vld [vmem:[%s7506_s8 + $0xb68] sm:$0xff]  ;;  %v6682_v63 = vpack.c.bf16 %v2584_v57, %v2583_v53 }
 0x269   : > { %6649 = vmatpush3.bf16.msra.mxu1 %v6648_v12  ;;  %6619 = vmatprep.subr.bf16.mxu0 %v6618_v6  ;;  %v2529_v12 = vld [vmem:[%s7506_s8 + $0xaf0] sm:$0xff]  ;;  %v2530_v6 = vld [vmem:[%s7506_s8 + $0xaf8] sm:$0xff]  ;;  %v2616_v60 = vld [vmem:[%s7506_s8 + $0xda8] sm:$0xff] }
 0x26a   : > { %6651 = vmatprep.subr.bf16.mxu1 %v6650_v11  ;;  %v6668_v11 = vpack.c.bf16 %v2544_v5, %v2543_v8  ;;  %v6638_v27 = vpack.c.bf16 %v2530_v6, %v2529_v12  ;;  %v6714_v1 = vpack.c.bf16 %v2616_v60, %v2615_v4  ;;  %v2600_v7 = vld [vmem:[%s7506_s8 + $0xd28] sm:$0xff]  ;;  %v2585_v8 = vld [vmem:[%s7506_s8 + $0xcb0] sm:$0xff]  ;;  %v2618_v12 = vld [vmem:[%s7506_s8 + $0xdb8] sm:$0xff] }
 0x26b   : > { %v2617_v5 = vld [vmem:[%s7506_s8 + $0xdb0] sm:$0xff]  ;;  %v2576_v4 = vld [vmem:[%s7506_s8 + $0xc68] sm:$0xff]  ;;  %v2607_v60 = vld [vmem:[%s7506_s8 + $0xd60] sm:$0xff] }
 0x26c   : > { %6621 = vmatpush3.bf16.msra.mxu0 %v6620_v42  ;;  %v2546_v42 = vld [vmem:[%s7506_s8 + $0xb78] sm:$0xff]  ;;  %v6718_v17 = vpack.c.bf16 %v2618_v12, %v2617_v5  ;;  %v2609_v5 = vld [vmem:[%s7506_s8 + $0xd70] sm:$0xff] }
 0x26d   : > { %6653 = vmatpush3.bf16.msra.mxu1 %v6652_v22  ;;  %6623 = vmatprep.subr.bf16.mxu0 %v6622_v24  ;;  %v2579_v22 = vld [vmem:[%s7506_s8 + $0xc80] sm:$0xff]  ;;  %v2580_v24 = vld [vmem:[%s7506_s8 + $0xc88] sm:$0xff] }
 0x26e   : > { %6655 = vmatprep.subr.bf16.mxu1 %v6654_v29  ;;  %v6672_v29 = vpack.c.bf16 %v2546_v42, %v2545_v20  ;;  %v6674_v30 = vpack.c.bf16 %v2580_v24, %v2579_v22  ;;  %v2587_v20 = vld [vmem:[%s7506_s8 + $0xcc0] sm:$0xff]  ;;  %v2620_v22 = vld [vmem:[%s7506_s8 + $0xdc8] sm:$0xff] }
 0x26f   : > { %v2619_v42 = vld [vmem:[%s7506_s8 + $0xdc0] sm:$0xff] }
 0x270   : > { %6625 = vmatpush3.bf16.msra.mxu0 %v6624_v36  ;;  %v2596_v36 = vld [vmem:[%s7506_s8 + $0xd08] sm:$0xff]  ;;  %v6722_v31 = vpack.c.bf16 %v2620_v22, %v2619_v42  ;;  %v2659_v42 = vld [vmem:[%s7506_s8 + $0xf00] sm:$0xff] }
 0x271   : > { %6657 = vmatpush3.bf16.msra.mxu1 %v6656_v38  ;;  %6627 = vmatprep.subr.bf16.mxu0 %v6626_v3  ;;  %v2581_v38 = vld [vmem:[%s7506_s8 + $0xc90] sm:$0xff]  ;;  %v2582_v3 = vld [vmem:[%s7506_s8 + $0xc98] sm:$0xff]  ;;  %v6708_v46 = vpack.c.bf16 %v2596_v36, %v2595_v34 }
 0x272   : > { %6659 = vmatprep.subr.bf16.mxu1 %v6658_v44  ;;  %v8702_v44 = vld [vmem:[%s8285_s22 + $0x18] sm:$0xff]  ;;  %v6678_v47 = vpack.c.bf16 %v2582_v3, %v2581_v38 }
 0x273   : > { %v3064_v61 = vrot.slane %v8702_v44, %v8276_v55  ;;  %v2589_v34 = vld [vmem:[%s7506_s8 + $0xcd0] sm:$0xff]  ;;  %v2622_v38 = vld [vmem:[%s7506_s8 + $0xdd8] sm:$0xff] }
 0x274   : > { %6629 = vmatpush3.bf16.msra.mxu0 %v6628_v59  ;;  %v2566_v59 = vld [vmem:[%s7506_s8 + $0xc18] sm:$0xff]  ;;  %v2621_v36 = vld [vmem:[%s7506_s8 + $0xdd0] sm:$0xff] }
 0x275   : > { %6661 = vmatpush3.bf16.msra.mxu1 %v6660_v49  ;;  %6631 = vmatprep.subr.bf16.mxu0 %v6630_v50  ;;  %v2597_v49 = vld [vmem:[%s7506_s8 + $0xd10] sm:$0xff]  ;;  %v6710_v50 = vpack.c.bf16 %v2614_v43, %v2613_v41  ;;  %v6680_v52 = vpack.c.bf16 %v2566_v59, %v2565_v48  ;;  %v2591_v48 = vld [vmem:[%s7506_s8 + $0xce0] sm:$0xff]  ;;  %v2592_v59 = vld [vmem:[%s7506_s8 + $0xce8] sm:$0xff] }
 0x276   : > { %6663 = vmatprep.subr.bf16.mxu1 %v6662_v58  ;;  %v3056_v58 = vrot.slane %v8702_v44, %v8273_v54  ;;  %v6712_v62 = vpack.c.bf16 %v2598_v51, %v2597_v49  ;;  %v2573_v43 = vld [vmem:[%s7506_s8 + $0xc50] sm:$0xff]  ;;  %v2623_v49 = vld [vmem:[%s7506_s8 + $0xde0] sm:$0xff]  ;;  %v6698_v57 = vpack.c.bf16 %v2592_v59, %v2591_v48  ;;  %v3080_v48 = vrot.slane %v8702_v44, %v8327_v37 }
 0x278   : > { %6633 = vmatpush3.bf16.msra.mxu0 %v6632_v0  ;;  %v2567_v0 = vld [vmem:[%s7506_s8 + $0xc20] sm:$0xff] }
 0x279   : > { %6665 = vmatpush3.bf16.msra.mxu1 %v6664_v39  ;;  %6635 = vmatprep.subr.bf16.mxu0 %v6634_v2  ;;  %v2568_v39 = vld [vmem:[%s7506_s8 + $0xc28] sm:$0xff]  ;;  %v2599_v2 = vld [vmem:[%s7506_s8 + $0xd20] sm:$0xff] }
 0x27a   : > { %6667 = vmatprep.subr.bf16.mxu1 %v6666_v10  ;;  %v2586_v10 = vld [vmem:[%s7506_s8 + $0xcb8] sm:$0xff]  ;;  %v6684_v6 = vpack.c.bf16 %v2568_v39, %v2567_v0  ;;  %v6716_v14 = vpack.c.bf16 %v2600_v7, %v2599_v2  ;;  %v2625_v0 = vld [vmem:[%s7506_s8 + $0xdf0] sm:$0xff] }
 0x27b   : > { %v6686_v15 = vpack.c.bf16 %v2586_v10, %v2585_v8  ;;  %v2626_v39 = vld [vmem:[%s7506_s8 + $0xdf8] sm:$0xff]  ;;  %v2577_v8 = vld [vmem:[%s7506_s8 + $0xc70] sm:$0xff] }
 0x27c   : > { %6637 = vmatpush3.bf16.msra.mxu0 %v6636_v16  ;;  %v2569_v16 = vld [vmem:[%s7506_s8 + $0xc30] sm:$0xff]  ;;  %v2578_v10 = vld [vmem:[%s7506_s8 + $0xc78] sm:$0xff]  ;;  %v6734_v12 = vpack.c.bf16 %v2626_v39, %v2625_v0 }
 0x27d   : > { %6669 = vmatpush3.bf16.msra.mxu1 %v6668_v11  ;;  %6639 = vmatprep.subr.bf16.mxu0 %v6638_v27  ;;  %v2570_v11 = vld [vmem:[%s7506_s8 + $0xc38] sm:$0xff]  ;;  %v2601_v27 = vld [vmem:[%s7506_s8 + $0xd30] sm:$0xff] }
 0x27e   : > { %6671 = vmatprep.subr.bf16.mxu1 %v6670_v21  ;;  %v2588_v21 = vld [vmem:[%s7506_s8 + $0xcc8] sm:$0xff]  ;;  %v6688_v24 = vpack.c.bf16 %v2570_v11, %v2569_v16  ;;  %v6720_v25 = vpack.c.bf16 %v2602_v18, %v2601_v27  ;;  %v2675_v16 = vld [vmem:[%s7506_s8 + $0xf80] sm:$0xff]  ;;  %v6704_v27 = vpack.c.bf16 %v2578_v10, %v2577_v8  ;;  %v2666_v10 = vld [vmem:[%s7506_s8 + $0xf38] sm:$0xff] }
 0x27f   : > { %v6690_v26 = vpack.c.bf16 %v2588_v21, %v2587_v20  ;;  %v2676_v11 = vld [vmem:[%s7506_s8 + $0xf88] sm:$0xff]  ;;  %v2627_v20 = vld [vmem:[%s7506_s8 + $0xe00] sm:$0xff] }
 0x280   : > { %6641 = vmatpush3.bf16.msra.mxu0 %v6640_v28  ;;  %v2571_v28 = vld [vmem:[%s7506_s8 + $0xc40] sm:$0xff]  ;;  %v2628_v21 = vld [vmem:[%s7506_s8 + $0xe08] sm:$0xff]  ;;  %v6770_v22 = vpack.c.bf16 %v2676_v11, %v2675_v16 }
 0x281   : > { %6673 = vmatpush3.bf16.msra.mxu1 %v6672_v29  ;;  %6675 = vmatprep.subr.bf16.mxu0 %v6674_v30  ;;  %v2572_v29 = vld [vmem:[%s7506_s8 + $0xc48] sm:$0xff]  ;;  %v2603_v30 = vld [vmem:[%s7506_s8 + $0xd40] sm:$0xff] }
 0x282   : > { %6707 = vmatprep.subr.bf16.mxu1 %v6706_v35  ;;  %v2590_v35 = vld [vmem:[%s7506_s8 + $0xcd8] sm:$0xff]  ;;  %v6692_v3 = vpack.c.bf16 %v2572_v29, %v2571_v28  ;;  %v3052_v28 = vrot.slane %v8702_v44, %v8306_v19  ;;  %v2677_v29 = vld [vmem:[%s7506_s8 + $0xf90] sm:$0xff] }
 0x283   : > { %3958 = vmatmul.mubr.f32.vlgmr.msra.gmra.mrb[10].mxu0 %v3036_v40  ;;  %v6724_v40 = vpack.c.bf16 %v2604_v32, %v2603_v30  ;;  %v6694_v41 = vpack.c.bf16 %v2590_v35, %v2589_v34  ;;  %v2678_v30 = vld [vmem:[%s7506_s8 + $0xf98] sm:$0xff]  ;;  %v3060_v32 = vrot.slane %v8702_v44, %v8311_v23 }
 0x284   : > { %6677 = vmatpush3.bf16.msra.mxu0 %v6676_v56  ;;  %4028 = vmatmul.mubr.f32.vlgmr.msra.gmra.mrb[10].mxu1 %v3044_v45  ;;  %v2574_v56 = vld [vmem:[%s7506_s8 + $0xc58] sm:$0xff]  ;;  %v2605_v45 = vld [vmem:[%s7506_s8 + $0xd50] sm:$0xff] }
 0x285   : > { %6709 = vmatpush3.bf16.msra.mxu1 %v6708_v46  ;;  %6679 = vmatprep.subr.bf16.mxu0 %v6678_v47  ;;  %v6726_v46 = vpack.c.bf16 %v2622_v38, %v2621_v36  ;;  %v2606_v47 = vld [vmem:[%s7506_s8 + $0xd58] sm:$0xff]  ;;  %v6696_v51 = vpack.c.bf16 %v2574_v56, %v2573_v43  ;;  %v2629_v36 = vld [vmem:[%s7506_s8 + $0xe10] sm:$0xff]  ;;  %v2647_v43 = vld [vmem:[%s7506_s8 + $0xea0] sm:$0xff] }
 0x286   : > { %6711 = vmatprep.subr.bf16.mxu1 %v6710_v50  ;;  %4097 = vmatprep.mubr.f32.mxu0 %v3056_v58  ;;  %v2624_v50 = vld [vmem:[%s7506_s8 + $0xde8] sm:$0xff]  ;;  %v6728_v53 = vpack.c.bf16 %v2606_v47, %v2605_v45  ;;  %v2575_v58 = vld [vmem:[%s7506_s8 + $0xc60] sm:$0xff]  ;;  %v2630_v38 = vld [vmem:[%s7506_s8 + $0xe18] sm:$0xff]  ;;  %v3072_v45 = vrot.slane %v8702_v44, %v8320_v33 }
 0x287   : > { %4167 = vmatprep.mubr.f32.mxu1 %v3064_v61  ;;  %v6730_v61 = vpack.c.bf16 %v2624_v50, %v2623_v49  ;;  %v6700_v2 = vpack.c.bf16 %v2576_v4, %v2575_v58  ;;  %v2648_v56 = vld [vmem:[%s7506_s8 + $0xea8] sm:$0xff]  ;;  %v6744_v59 = vpack.c.bf16 %v2630_v38, %v2629_v36  ;;  %v2655_v36 = vld [vmem:[%s7506_s8 + $0xee0] sm:$0xff] }
 0x288   : > { %6681 = vmatpush3.bf16.msra.mxu0 %v6680_v52  ;;  %v2608_v52 = vld [vmem:[%s7506_s8 + $0xd68] sm:$0xff]  ;;  %v6746_v50 = vpack.c.bf16 %v2648_v56, %v2647_v43 }
 0x289   : > { %6713 = vmatpush3.bf16.msra.mxu1 %v6712_v62  ;;  %6683 = vmatprep.subr.bf16.mxu0 %v6682_v63  ;;  %v2593_v62 = vld [vmem:[%s7506_s8 + $0xcf0] sm:$0xff]  ;;  %v2594_v63 = vld [vmem:[%s7506_s8 + $0xcf8] sm:$0xff]  ;;  %v2680_v47 = vld [vmem:[%s7506_s8 + $0xfa8] sm:$0xff] }
 0x28a   : > { %6715 = vmatprep.subr.bf16.mxu1 %v6714_v1  ;;  %v6732_v1 = vpack.c.bf16 %v2608_v52, %v2607_v60  ;;  %v6702_v7 = vpack.c.bf16 %v2594_v63, %v2593_v62  ;;  %v2664_v4 = vld [vmem:[%s7506_s8 + $0xf28] sm:$0xff]  ;;  %v2649_v60 = vld [vmem:[%s7506_s8 + $0xeb0] sm:$0xff]  ;;  %v2682_v62 = vld [vmem:[%s7506_s8 + $0xfb8] sm:$0xff] }
 0x28b   : > { %v2681_v52 = vld [vmem:[%s7506_s8 + $0xfb0] sm:$0xff]  ;;  %v2656_v38 = vld [vmem:[%s7506_s8 + $0xee8] sm:$0xff] }
 0x28c   : > { %6685 = vmatpush3.bf16.msra.mxu0 %v6684_v6  ;;  %v2610_v6 = vld [vmem:[%s7506_s8 + $0xd78] sm:$0xff]  ;;  %v6782_v8 = vpack.c.bf16 %v2682_v62, %v2681_v52  ;;  %v6762_v56 = vpack.c.bf16 %v2656_v38, %v2655_v36  ;;  %v2725_v36 = vld [vmem:[%s7506_s8 + $0x1110] sm:$0xff] }
 0x28d   : > { %6717 = vmatpush3.bf16.msra.mxu1 %v6716_v14  ;;  %6687 = vmatprep.subr.bf16.mxu0 %v6686_v15  ;;  %v2643_v14 = vld [vmem:[%s7506_s8 + $0xe80] sm:$0xff]  ;;  %v2644_v15 = vld [vmem:[%s7506_s8 + $0xe88] sm:$0xff] }
 0x28e   : > { %6719 = vmatprep.subr.bf16.mxu1 %v6718_v17  ;;  %v6736_v17 = vpack.c.bf16 %v2610_v6, %v2609_v5  ;;  %v6738_v18 = vpack.c.bf16 %v2644_v15, %v2643_v14  ;;  %v2651_v5 = vld [vmem:[%s7506_s8 + $0xec0] sm:$0xff]  ;;  %v2684_v14 = vld [vmem:[%s7506_s8 + $0xfc8] sm:$0xff] }
 0x28f   : > { %v2683_v6 = vld [vmem:[%s7506_s8 + $0xfc0] sm:$0xff] }
 0x290   : > { %6689 = vmatpush3.bf16.msra.mxu0 %v6688_v24  ;;  %v2660_v24 = vld [vmem:[%s7506_s8 + $0xf08] sm:$0xff] }
 0x291   : > { %6721 = vmatpush3.bf16.msra.mxu1 %v6720_v25  ;;  %6691 = vmatprep.subr.bf16.mxu0 %v6690_v26  ;;  %v2645_v25 = vld [vmem:[%s7506_s8 + $0xe90] sm:$0xff]  ;;  %v2646_v26 = vld [vmem:[%s7506_s8 + $0xe98] sm:$0xff]  ;;  %v6772_v34 = vpack.c.bf16 %v2660_v24, %v2659_v42 }
 0x292   : > { %6723 = vmatprep.subr.bf16.mxu1 %v6722_v31  ;;  %v6740_v31 = vpack.c.bf16 %v2628_v21, %v2627_v20  ;;  %v6742_v35 = vpack.c.bf16 %v2646_v26, %v2645_v25  ;;  %v6786_v20 = vpack.c.bf16 %v2684_v14, %v2683_v6  ;;  %v2668_v21 = vld [vmem:[%s7506_s8 + $0xf48] sm:$0xff]  ;;  %v2653_v42 = vld [vmem:[%s7506_s8 + $0xed0] sm:$0xff]  ;;  %v2686_v25 = vld [vmem:[%s7506_s8 + $0xfd8] sm:$0xff] }
 0x293   : > { %v2685_v24 = vld [vmem:[%s7506_s8 + $0xfd0] sm:$0xff]  ;;  %v2739_v6 = vld [vmem:[%s7506_s8 + $0x1180] sm:$0xff]  ;;  %v2740_v14 = vld [vmem:[%s7506_s8 + $0x1188] sm:$0xff] }
 0x294   : > { %6693 = vmatpush3.bf16.msra.mxu0 %v6692_v3  ;;  %v2661_v3 = vld [vmem:[%s7506_s8 + $0xf10] sm:$0xff] }
 0x295   : > { %6725 = vmatpush3.bf16.msra.mxu1 %v6724_v40  ;;  %6695 = vmatprep.subr.bf16.mxu0 %v6694_v41  ;;  %v6774_v40 = vpack.c.bf16 %v2678_v30, %v2677_v29  ;;  %v2662_v41 = vld [vmem:[%s7506_s8 + $0xf18] sm:$0xff]  ;;  %v2637_v30 = vld [vmem:[%s7506_s8 + $0xe50] sm:$0xff] }
 0x296   : > { %6727 = vmatprep.subr.bf16.mxu1 %v6726_v46  ;;  %v2679_v46 = vld [vmem:[%s7506_s8 + $0xfa0] sm:$0xff]  ;;  %v6776_v49 = vpack.c.bf16 %v2662_v41, %v2661_v3 }
 0x297   : > { %v6778_v58 = vpack.c.bf16 %v2680_v47, %v2679_v46  ;;  %v2687_v3 = vld [vmem:[%s7506_s8 + $0xfe0] sm:$0xff]  ;;  %v2640_v46 = vld [vmem:[%s7506_s8 + $0xe68] sm:$0xff] }
 0x298   : > { %6697 = vmatpush3.bf16.msra.mxu0 %v6696_v51  ;;  %v2631_v51 = vld [vmem:[%s7506_s8 + $0xe20] sm:$0xff] }
 0x299   : > { %6729 = vmatpush3.bf16.msra.mxu1 %v6728_v53  ;;  %6699 = vmatprep.subr.bf16.mxu0 %v6698_v57  ;;  %v2632_v53 = vld [vmem:[%s7506_s8 + $0xe28] sm:$0xff]  ;;  %v2663_v57 = vld [vmem:[%s7506_s8 + $0xf20] sm:$0xff] }
 0x29a   : > { %6731 = vmatprep.subr.bf16.mxu1 %v6730_v61  ;;  %v2650_v61 = vld [vmem:[%s7506_s8 + $0xeb8] sm:$0xff]  ;;  %v6748_v63 = vpack.c.bf16 %v2632_v53, %v2631_v51  ;;  %v6780_v0 = vpack.c.bf16 %v2664_v4, %v2663_v57  ;;  %v2671_v47 = vld [vmem:[%s7506_s8 + $0xf60] sm:$0xff] }
 0x29b   : > { %v6750_v39 = vpack.c.bf16 %v2650_v61, %v2649_v60  ;;  %v2658_v51 = vld [vmem:[%s7506_s8 + $0xef8] sm:$0xff] }
 0x29c   : > { %6701 = vmatpush3.bf16.msra.mxu0 %v6700_v2  ;;  %v2633_v2 = vld [vmem:[%s7506_s8 + $0xe30] sm:$0xff]  ;;  %v2690_v4 = vld [vmem:[%s7506_s8 + $0xff8] sm:$0xff] }
 0x29d   : > { %6733 = vmatpush3.bf16.msra.mxu1 %v6732_v1  ;;  %6703 = vmatprep.subr.bf16.mxu0 %v6702_v7  ;;  %v2634_v1 = vld [vmem:[%s7506_s8 + $0xe38] sm:$0xff]  ;;  %v2665_v7 = vld [vmem:[%s7506_s8 + $0xf30] sm:$0xff] }
 0x29e   : > { %6735 = vmatprep.subr.bf16.mxu1 %v6734_v12  ;;  %v2652_v12 = vld [vmem:[%s7506_s8 + $0xec8] sm:$0xff]  ;;  %v6752_v15 = vpack.c.bf16 %v2634_v1, %v2633_v2  ;;  %v6784_v16 = vpack.c.bf16 %v2666_v10, %v2665_v7  ;;  %v2642_v2 = vld [vmem:[%s7506_s8 + $0xe78] sm:$0xff]  ;;  %v2673_v1 = vld [vmem:[%s7506_s8 + $0xf70] sm:$0xff] }
 0x29f   : > { %v6754_v11 = vpack.c.bf16 %v2652_v12, %v2651_v5  ;;  %v2707_v10 = vld [vmem:[%s7506_s8 + $0x1080] sm:$0xff]  ;;  %v2708_v5 = vld [vmem:[%s7506_s8 + $0x1088] sm:$0xff] }
 0x2a0   : > { %6705 = vmatpush3.bf16.msra.mxu0 %v6704_v27  ;;  %v2635_v27 = vld [vmem:[%s7506_s8 + $0xe40] sm:$0xff] }
 0x2a1   : > { %6737 = vmatpush3.bf16.msra.mxu1 %v6736_v17  ;;  %6739 = vmatprep.subr.bf16.mxu0 %v6738_v18  ;;  %v2636_v17 = vld [vmem:[%s7506_s8 + $0xe48] sm:$0xff]  ;;  %v2667_v18 = vld [vmem:[%s7506_s8 + $0xf40] sm:$0xff] }
 0x2a2   : > { %6771 = vmatprep.subr.bf16.mxu1 %v6770_v22  ;;  %v2654_v22 = vld [vmem:[%s7506_s8 + $0xed8] sm:$0xff]  ;;  %v6756_v26 = vpack.c.bf16 %v2636_v17, %v2635_v27  ;;  %v2691_v27 = vld [vmem:[%s7506_s8 + $0x1000] sm:$0xff]  ;;  %v2692_v17 = vld [vmem:[%s7506_s8 + $0x1008] sm:$0xff] }
 0x2a3   : > { %4098 = vmatmul.mubr.f32.vlgmr.msra.gmra.mrb[12].mxu0 %v3052_v28  ;;  %v6788_v28 = vpack.c.bf16 %v2668_v21, %v2667_v18  ;;  %v6758_v29 = vpack.c.bf16 %v2654_v22, %v2653_v42  ;;  %v2723_v18 = vld [vmem:[%s7506_s8 + $0x1100] sm:$0xff]  ;;  %v2724_v21 = vld [vmem:[%s7506_s8 + $0x1108] sm:$0xff]  ;;  %v2709_v42 = vld [vmem:[%s7506_s8 + $0x1090] sm:$0xff] }
 0x2a4   : > { %6741 = vmatpush3.bf16.msra.mxu0 %v6740_v31  ;;  %4168 = vmatmul.mubr.f32.vlgmr.msra.gmra.mrb[12].mxu1 %v3060_v32  ;;  %v2638_v31 = vld [vmem:[%s7506_s8 + $0xe58] sm:$0xff]  ;;  %v2669_v32 = vld [vmem:[%s7506_s8 + $0xf50] sm:$0xff] }
 0x2a5   : > { %6773 = vmatpush3.bf16.msra.mxu1 %v6772_v34  ;;  %6743 = vmatprep.subr.bf16.mxu0 %v6742_v35  ;;  %v6790_v34 = vpack.c.bf16 %v2686_v25, %v2685_v24  ;;  %v2670_v35 = vld [vmem:[%s7506_s8 + $0xf58] sm:$0xff]  ;;  %v6760_v41 = vpack.c.bf16 %v2638_v31, %v2637_v30  ;;  %v3068_v24 = vrot.slane %v8702_v44, %v8390_v9  ;;  %v2741_v25 = vld [vmem:[%s7506_s8 + $0x1190] sm:$0xff] }
 0x2a6   : > { %6775 = vmatprep.subr.bf16.mxu1 %v6774_v40  ;;  %4237 = vmatprep.mubr.f32.mxu0 %v3072_v45  ;;  %v2688_v40 = vld [vmem:[%s7506_s8 + $0xfe8] sm:$0xff]  ;;  %v6792_v43 = vpack.c.bf16 %v2670_v35, %v2669_v32  ;;  %v2639_v45 = vld [vmem:[%s7506_s8 + $0xe60] sm:$0xff]  ;;  %v2710_v22 = vld [vmem:[%s7506_s8 + $0x1098] sm:$0xff]  ;;  %v3076_v30 = vrot.slane %v8702_v44, %v8395_v13  ;;  %v6836_v31 = vpack.c.bf16 %v2724_v21, %v2723_v18 }
 0x2a7   : > { %4307 = vmatprep.mubr.f32.mxu1 %v3080_v48  ;;  %v6764_v52 = vpack.c.bf16 %v2640_v46, %v2639_v45  ;;  %v6806_v32 = vpack.c.bf16 %v2710_v22, %v2709_v42  ;;  %v2694_v35 = vld [vmem:[%s7506_s8 + $0x1018] sm:$0xff]  ;;  %v2743_v44 = vld [vmem:[%s7506_s8 + $0x11a0] sm:$0xff]  ;;  %v2732_v18 = vld [vmem:[%s7506_s8 + $0x1148] sm:$0xff] }
 0x2a8   : > { %6745 = vmatpush3.bf16.msra.mxu0 %v6744_v59  ;;  %v6794_v59 = vpack.c.bf16 %v2688_v40, %v2687_v3  ;;  %v2726_v3 = vld [vmem:[%s7506_s8 + $0x1118] sm:$0xff]  ;;  %v2711_v40 = vld [vmem:[%s7506_s8 + $0x10a0] sm:$0xff]  ;;  %v2749_v42 = vld [vmem:[%s7506_s8 + $0x11d0] sm:$0xff] }
 0x2a9   : > { %6777 = vmatpush3.bf16.msra.mxu1 %v6776_v49  ;;  %6747 = vmatprep.subr.bf16.mxu0 %v6746_v50  ;;  %v2672_v49 = vld [vmem:[%s7506_s8 + $0xf68] sm:$0xff]  ;;  %v2657_v50 = vld [vmem:[%s7506_s8 + $0xef0] sm:$0xff]  ;;  %v2718_v21 = vld [vmem:[%s7506_s8 + $0x10d8] sm:$0xff] }
 0x2aa   : > { %6779 = vmatprep.subr.bf16.mxu1 %v6778_v58  ;;  %v2689_v58 = vld [vmem:[%s7506_s8 + $0xff0] sm:$0xff]  ;;  %v2750_v22 = vld [vmem:[%s7506_s8 + $0x11d8] sm:$0xff] }
 0x2ab   : > { %v6798_v7 = vpack.c.bf16 %v2690_v4, %v2689_v58  ;;  %v2714_v58 = vld [vmem:[%s7506_s8 + $0x10b8] sm:$0xff]  ;;  %v2745_v4 = vld [vmem:[%s7506_s8 + $0x11b0] sm:$0xff] }
 0x2ac   : > { %6749 = vmatpush3.bf16.msra.mxu0 %v6748_v63  ;;  %v6796_v63 = vpack.c.bf16 %v2672_v49, %v2671_v47  ;;  %v6840_v47 = vpack.c.bf16 %v2726_v3, %v2725_v36  ;;  %v2696_v49 = vld [vmem:[%s7506_s8 + $0x1028] sm:$0xff] }
 0x2ad   : > { %6781 = vmatpush3.bf16.msra.mxu1 %v6780_v0  ;;  %6751 = vmatprep.subr.bf16.mxu0 %v6750_v39  ;;  %v6766_v0 = vpack.c.bf16 %v2658_v51, %v2657_v50  ;;  %v2641_v39 = vld [vmem:[%s7506_s8 + $0xe70] sm:$0xff]  ;;  %v2727_v50 = vld [vmem:[%s7506_s8 + $0x1120] sm:$0xff]  ;;  %v2720_v36 = vld [vmem:[%s7506_s8 + $0x10e8] sm:$0xff] }
 0x2ae   : > { %6783 = vmatprep.subr.bf16.mxu1 %v6782_v8  ;;  %v2674_v8 = vld [vmem:[%s7506_s8 + $0xf78] sm:$0xff]  ;;  %v2752_v3 = vld [vmem:[%s7506_s8 + $0x11e8] sm:$0xff] }
 0x2b0   : > { %6753 = vmatpush3.bf16.msra.mxu0 %v6752_v15  ;;  %v6768_v15 = vpack.c.bf16 %v2642_v2, %v2641_v39  ;;  %v2729_v39 = vld [vmem:[%s7506_s8 + $0x1130] sm:$0xff] }
 0x2b1   : > { %6785 = vmatpush3.bf16.msra.mxu1 %v6784_v16  ;;  %6755 = vmatprep.subr.bf16.mxu0 %v6754_v11  ;;  %v6800_v16 = vpack.c.bf16 %v2674_v8, %v2673_v1  ;;  %v6802_v11 = vpack.c.bf16 %v2708_v5, %v2707_v10  ;;  %v2730_v1 = vld [vmem:[%s7506_s8 + $0x1138] sm:$0xff]  ;;  %v2716_v8 = vld [vmem:[%s7506_s8 + $0x10c8] sm:$0xff]  ;;  %v2747_v10 = vld [vmem:[%s7506_s8 + $0x11c0] sm:$0xff] }
 0x2b2   : > { %6787 = vmatprep.subr.bf16.mxu1 %v6786_v20  ;;  %v6834_v20 = vpack.c.bf16 %v2740_v14, %v2739_v6  ;;  %v2748_v5 = vld [vmem:[%s7506_s8 + $0x11c8] sm:$0xff]  ;;  %v6848_v14 = vpack.c.bf16 %v2730_v1, %v2729_v39  ;;  %v2737_v39 = vld [vmem:[%s7506_s8 + $0x1170] sm:$0xff] }
 0x2b4   : > { %6757 = vmatpush3.bf16.msra.mxu0 %v6756_v26  ;;  %v2742_v26 = vld [vmem:[%s7506_s8 + $0x1198] sm:$0xff] }
 0x2b5   : > { %6789 = vmatpush3.bf16.msra.mxu1 %v6788_v28  ;;  %6759 = vmatprep.subr.bf16.mxu0 %v6758_v29  ;;  %v8851_v28 = vld [vmem:[%s8285_s22 + $0x20] sm:$0xff]  ;;  %v6804_v29 = vpack.c.bf16 %v2692_v17, %v2691_v27  ;;  %v6838_v38 = vpack.c.bf16 %v2742_v26, %v2741_v25  ;;  %v6850_v17 = vpack.c.bf16 %v2748_v5, %v2747_v10  ;;  %v2772_v10 = vld [vmem:[%s7506_s8 + $0x1288] sm:$0xff] }
 0x2b6   : > { %v5242_v48 = vpop.f32.mrb[0].mxu0  ;;  %6791 = vmatprep.subr.bf16.mxu1 %v6790_v34  ;;  %v2693_v34 = vld [vmem:[%s7506_s8 + $0x1010] sm:$0xff]  ;;  %v3096_v45 = vrot.slane %v8851_v28, %v8276_v55  ;;  %v2731_v27 = vld [vmem:[%s7506_s8 + $0x1140] sm:$0xff] }
 0x2b7   : > { %v5277_v53 = vpop.f32.mrb[0].mxu1  ;;  %v5243_v57 = vpop.f32.mrb[1].mxu0  ;;  %v6808_v46 = vpack.c.bf16 %v2694_v35, %v2693_v34  ;;  %v6852_v25 = vpack.c.bf16 %v2732_v18, %v2731_v27  ;;  %v2734_v34 = vld [vmem:[%s7506_s8 + $0x1158] sm:$0xff]  ;;  %v2719_v35 = vld [vmem:[%s7506_s8 + $0x10e0] sm:$0xff]  ;;  %v2756_v27 = vld [vmem:[%s7506_s8 + $0x1208] sm:$0xff] }
 0x2b8   : > { %v5244_v60 = vadd.f32 %v5243_v57, %v5242_v48  ;;  %v5278_v61 = vpop.f32.mrb[1].mxu1  ;;  %6761 = vmatpush3.bf16.msra.mxu0 %v6760_v41  ;;  %v2712_v41 = vld [vmem:[%s7506_s8 + $0x10a8] sm:$0xff]  ;;  %v2713_v57 = vld [vmem:[%s7506_s8 + $0x10b0] sm:$0xff]  ;;  %v2803_v5 = vld [vmem:[%s7506_s8 + $0x1380] sm:$0xff] }
 0x2b9   : > { %v5279_v62 = vadd.f32 %v5278_v61, %v5277_v53  ;;  %6793 = vmatpush3.bf16.msra.mxu1 %v6792_v43  ;;  %6763 = vmatprep.subr.bf16.mxu0 %v6762_v56  ;;  %v3088_v43 = vrot.slane %v8851_v28, %v8273_v54  ;;  %v2744_v56 = vld [vmem:[%s7506_s8 + $0x11a8] sm:$0xff]  ;;  %v6810_v48 = vpack.c.bf16 %v2712_v41, %v2711_v40 }
 0x2ba   : > { %6795 = vmatprep.subr.bf16.mxu1 %v6794_v59  ;;  %v2695_v59 = vld [vmem:[%s7506_s8 + $0x1020] sm:$0xff]  ;;  %v6842_v51 = vpack.c.bf16 %v2744_v56, %v2743_v44  ;;  %v2728_v53 = vld [vmem:[%s7506_s8 + $0x1128] sm:$0xff] }
 0x2bb   : > { %v8836_v12 = vadd.f32 %v5279_v62, %v5244_v60  ;;  %v2746_v60 = vld [vmem:[%s7506_s8 + $0x11b8] sm:$0xff]  ;;  %v6812_v61 = vpack.c.bf16 %v2696_v49, %v2695_v59  ;;  %v6814_v62 = vpack.c.bf16 %v2714_v58, %v2713_v57  ;;  %v2703_v44 = vld [vmem:[%s7506_s8 + $0x1060] sm:$0xff]  ;;  %v2704_v56 = vld [vmem:[%s7506_s8 + $0x1068] sm:$0xff] }
 0x2bc   : > { %6765 = vmatpush3.bf16.msra.mxu0 %v6764_v52  ;;  %v6844_v52 = vpack.c.bf16 %v2728_v53, %v2727_v50  ;;  %v6846_v2 = vpack.c.bf16 %v2746_v60, %v2745_v4  ;;  %v2721_v59 = vld [vmem:[%s7506_s8 + $0x10f0] sm:$0xff]  ;;  %v2722_v49 = vld [vmem:[%s7506_s8 + $0x10f8] sm:$0xff]  ;;  %v6828_v60 = vpack.c.bf16 %v2704_v56, %v2703_v44  ;;  %v2808_v44 = vld [vmem:[%s7506_s8 + $0x13a8] sm:$0xff]  ;;  %v3112_v56 = vrot.slane %v8851_v28, %v8327_v37 }
 0x2bd   : > { %6797 = vmatpush3.bf16.msra.mxu1 %v6796_v63  ;;  %6767 = vmatprep.subr.bf16.mxu0 %v6766_v0  ;;  %v2697_v63 = vld [vmem:[%s7506_s8 + $0x1030] sm:$0xff]  ;;  %v2698_v0 = vld [vmem:[%s7506_s8 + $0x1038] sm:$0xff] }
 0x2be   : > { %6799 = vmatprep.subr.bf16.mxu1 %v6798_v7  ;;  %v2715_v7 = vld [vmem:[%s7506_s8 + $0x10c0] sm:$0xff]  ;;  %v6816_v6 = vpack.c.bf16 %v2698_v0, %v2697_v63  ;;  %v2753_v53 = vld [vmem:[%s7506_s8 + $0x11f0] sm:$0xff]  ;;  %v2754_v57 = vld [vmem:[%s7506_s8 + $0x11f8] sm:$0xff] }
 0x2bf   : > { %v2705_v63 = vld [vmem:[%s7506_s8 + $0x1070] sm:$0xff]  ;;  %v2706_v0 = vld [vmem:[%s7506_s8 + $0x1078] sm:$0xff]  ;;  %v6862_v1 = vpack.c.bf16 %v2754_v57, %v2753_v53 }
 0x2c0   : > { %6769 = vmatpush3.bf16.msra.mxu0 %v6768_v15  ;;  %v6818_v15 = vpack.c.bf16 %v2716_v8, %v2715_v7  ;;  %v2738_v7 = vld [vmem:[%s7506_s8 + $0x1178] sm:$0xff]  ;;  %v2771_v8 = vld [vmem:[%s7506_s8 + $0x1280] sm:$0xff]  ;;  %v2777_v53 = vld [vmem:[%s7506_s8 + $0x12b0] sm:$0xff] }
 0x2c1   : > { %6801 = vmatpush3.bf16.msra.mxu1 %v6800_v16  ;;  %6803 = vmatprep.subr.bf16.mxu0 %v6802_v11  ;;  %v2699_v16 = vld [vmem:[%s7506_s8 + $0x1040] sm:$0xff]  ;;  %v2700_v11 = vld [vmem:[%s7506_s8 + $0x1048] sm:$0xff]  ;;  %v2778_v57 = vld [vmem:[%s7506_s8 + $0x12b8] sm:$0xff] }
 0x2c2   : > { %6835 = vmatprep.subr.bf16.mxu1 %v6834_v20  ;;  %v2717_v20 = vld [vmem:[%s7506_s8 + $0x10d0] sm:$0xff] }
 0x2c3   : > { %4238 = vmatmul.mubr.f32.vlgmr.msra.gmra.mrb[14].mxu0 %v3068_v24  ;;  %v6820_v24 = vpack.c.bf16 %v2700_v11, %v2699_v16  ;;  %v6822_v26 = vpack.c.bf16 %v2718_v21, %v2717_v20  ;;  %v6866_v16 = vpack.c.bf16 %v2772_v10, %v2771_v8  ;;  %v2755_v11 = vld [vmem:[%s7506_s8 + $0x1200] sm:$0xff]  ;;  %v2788_v20 = vld [vmem:[%s7506_s8 + $0x1308] sm:$0xff]  ;;  %v2773_v21 = vld [vmem:[%s7506_s8 + $0x1290] sm:$0xff] }
 0x2c4   : > { %6805 = vmatpush3.bf16.msra.mxu0 %v6804_v29  ;;  %4308 = vmatmul.mubr.f32.vlgmr.msra.gmra.mrb[14].mxu1 %v3076_v30  ;;  %v2701_v29 = vld [vmem:[%s7506_s8 + $0x1050] sm:$0xff]  ;;  %v2702_v30 = vld [vmem:[%s7506_s8 + $0x1058] sm:$0xff]  ;;  %v2811_v8 = vld [vmem:[%s7506_s8 + $0x13c0] sm:$0xff] }
 0x2c5   : > { %6837 = vmatpush3.bf16.msra.mxu1 %v6836_v31  ;;  %6807 = vmatprep.subr.bf16.mxu0 %v6806_v32  ;;  %v2733_v31 = vld [vmem:[%s7506_s8 + $0x1150] sm:$0xff]  ;;  %v6854_v32 = vpack.c.bf16 %v2750_v22, %v2749_v42  ;;  %v6824_v40 = vpack.c.bf16 %v2702_v30, %v2701_v29  ;;  %v2774_v42 = vld [vmem:[%s7506_s8 + $0x1298] sm:$0xff]  ;;  %v3084_v22 = vrot.slane %v8851_v28, %v8306_v19  ;;  %v2812_v10 = vld [vmem:[%s7506_s8 + $0x13c8] sm:$0xff] }
 0x2c6   : > { %6839 = vmatprep.subr.bf16.mxu1 %v6838_v38  ;;  %4377 = vmatprep.mubr.f32.mxu0 %v3088_v43  ;;  %v2751_v38 = vld [vmem:[%s7506_s8 + $0x11e0] sm:$0xff]  ;;  %v6856_v41 = vpack.c.bf16 %v2734_v34, %v2733_v31  ;;  %v6826_v43 = vpack.c.bf16 %v2720_v36, %v2719_v35  ;;  %v3092_v29 = vrot.slane %v8851_v28, %v8311_v23  ;;  %v2758_v34 = vld [vmem:[%s7506_s8 + $0x1218] sm:$0xff]  ;;  %v2789_v35 = vld [vmem:[%s7506_s8 + $0x1310] sm:$0xff] }
 0x2c7   : > { %4447 = vmatprep.mubr.f32.mxu1 %v3096_v45  ;;  %v2735_v45 = vld [vmem:[%s7506_s8 + $0x1160] sm:$0xff]  ;;  %v6870_v31 = vpack.c.bf16 %v2774_v42, %v2773_v21  ;;  %v2813_v21 = vld [vmem:[%s7506_s8 + $0x13d0] sm:$0xff]  ;;  %v2814_v42 = vld [vmem:[%s7506_s8 + $0x13d8] sm:$0xff] }
 0x2c8   : > { %6809 = vmatpush3.bf16.msra.mxu0 %v6808_v46 }
 0x2c9   : > { %6841 = vmatpush3.bf16.msra.mxu1 %v6840_v47  ;;  %6811 = vmatprep.subr.bf16.mxu0 %v6810_v48  ;;  %v6858_v47 = vpack.c.bf16 %v2752_v3, %v2751_v38  ;;  %v2736_v48 = vld [vmem:[%s7506_s8 + $0x1168] sm:$0xff]  ;;  %v2790_v38 = vld [vmem:[%s7506_s8 + $0x1318] sm:$0xff]  ;;  %v2775_v3 = vld [vmem:[%s7506_s8 + $0x12a0] sm:$0xff] }
 0x2ca   : > { %6843 = vmatprep.subr.bf16.mxu1 %v6842_v51 }
 0x2cc   : > { %6813 = vmatpush3.bf16.msra.mxu0 %v6812_v61 }
 0x2cd   : > { %6845 = vmatpush3.bf16.msra.mxu1 %v6844_v52  ;;  %6815 = vmatprep.subr.bf16.mxu0 %v6814_v62  ;;  %v6860_v52 = vpack.c.bf16 %v2736_v48, %v2735_v45  ;;  %v6830_v62 = vpack.c.bf16 %v2722_v49, %v2721_v59  ;;  %v2759_v48 = vld [vmem:[%s7506_s8 + $0x1220] sm:$0xff]  ;;  %v2760_v59 = vld [vmem:[%s7506_s8 + $0x1228] sm:$0xff] }
 0x2ce   : > { %6847 = vmatprep.subr.bf16.mxu1 %v6846_v2  ;;  %v2791_v49 = vld [vmem:[%s7506_s8 + $0x1320] sm:$0xff] }
 0x2d0   : > { %6817 = vmatpush3.bf16.msra.mxu0 %v6816_v6  ;;  %v2804_v6 = vld [vmem:[%s7506_s8 + $0x1388] sm:$0xff] }
 0x2d1   : > { %6849 = vmatpush3.bf16.msra.mxu1 %v6848_v14  ;;  %6819 = vmatprep.subr.bf16.mxu0 %v6818_v15  ;;  %v6832_v15 = vpack.c.bf16 %v2706_v0, %v2705_v63  ;;  %v6898_v18 = vpack.c.bf16 %v2804_v6, %v2803_v5  ;;  %v2762_v63 = vld [vmem:[%s7506_s8 + $0x1238] sm:$0xff]  ;;  %v2793_v0 = vld [vmem:[%s7506_s8 + $0x1330] sm:$0xff] }
 0x2d2   : > { %6851 = vmatprep.subr.bf16.mxu1 %v6850_v17  ;;  %v2787_v17 = vld [vmem:[%s7506_s8 + $0x1300] sm:$0xff] }
 0x2d3   : > { %v6900_v30 = vpack.c.bf16 %v2788_v20, %v2787_v17  ;;  %v2796_v17 = vld [vmem:[%s7506_s8 + $0x1348] sm:$0xff]  ;;  %v2782_v20 = vld [vmem:[%s7506_s8 + $0x12d8] sm:$0xff] }
 0x2d4   : > { %6821 = vmatpush3.bf16.msra.mxu0 %v6820_v24  ;;  %v2805_v24 = vld [vmem:[%s7506_s8 + $0x1390] sm:$0xff] }
 0x2d5   : > { %6853 = vmatpush3.bf16.msra.mxu1 %v6852_v25  ;;  %6823 = vmatprep.subr.bf16.mxu0 %v6822_v26  ;;  %v2806_v25 = vld [vmem:[%s7506_s8 + $0x1398] sm:$0xff]  ;;  %v6868_v26 = vpack.c.bf16 %v2756_v27, %v2755_v11  ;;  %v2795_v11 = vld [vmem:[%s7506_s8 + $0x1340] sm:$0xff]  ;;  %v6914_v27 = vpack.c.bf16 %v2812_v10, %v2811_v8  ;;  %v2836_v8 = vld [vmem:[%s7506_s8 + $0x1488] sm:$0xff] }
 0x2d6   : > { %v5312_v46 = vpop.f32.mrb[2].mxu0  ;;  %6855 = vmatprep.subr.bf16.mxu1 %v6854_v32  ;;  %v2757_v32 = vld [vmem:[%s7506_s8 + $0x1210] sm:$0xff]  ;;  %v6902_v36 = vpack.c.bf16 %v2806_v25, %v2805_v24  ;;  %v6916_v24 = vpack.c.bf16 %v2796_v17, %v2795_v11  ;;  %v2867_v10 = vld [vmem:[%s7506_s8 + $0x1580] sm:$0xff]  ;;  %v2820_v11 = vld [vmem:[%s7506_s8 + $0x1408] sm:$0xff] }
 0x2d7   : > { %v5313_v50 = vpop.f32.mrb[3].mxu0  ;;  %v5347_v51 = vpop.f32.mrb[2].mxu1  ;;  %v6872_v45 = vpack.c.bf16 %v2758_v34, %v2757_v32  ;;  %v2798_v32 = vld [vmem:[%s7506_s8 + $0x1358] sm:$0xff]  ;;  %v2783_v34 = vld [vmem:[%s7506_s8 + $0x12e0] sm:$0xff] }
 0x2d8   : > { %v5314_v58 = vadd.f32 %v5313_v50, %v5312_v46  ;;  %6825 = vmatpush3.bf16.msra.mxu0 %v6824_v40  ;;  %v5348_v4 = vpop.f32.mrb[3].mxu1  ;;  %v2776_v40 = vld [vmem:[%s7506_s8 + $0x12a8] sm:$0xff]  ;;  %v6904_v46 = vpack.c.bf16 %v2790_v38, %v2789_v35 }
 0x2d9   : > { %v5349_v61 = vadd.f32 %v5348_v4, %v5347_v51  ;;  %6857 = vmatpush3.bf16.msra.mxu1 %v6856_v41  ;;  %6827 = vmatprep.subr.bf16.mxu0 %v6826_v43  ;;  %v3104_v41 = vrot.slane %v8851_v28, %v8320_v33  ;;  %v2807_v43 = vld [vmem:[%s7506_s8 + $0x13a0] sm:$0xff]  ;;  %v2792_v51 = vld [vmem:[%s7506_s8 + $0x1328] sm:$0xff]  ;;  %v2810_v4 = vld [vmem:[%s7506_s8 + $0x13b8] sm:$0xff] }
 0x2da   : > { %v3400_v2 = vadd.f32 %v5314_v58, %v8836_v12  ;;  %6859 = vmatprep.subr.bf16.mxu1 %v6858_v47  ;;  %v6864_v12 = vpack.c.bf16 %v2738_v7, %v2737_v39  ;;  %v6874_v47 = vpack.c.bf16 %v2776_v40, %v2775_v3  ;;  %v6906_v50 = vpack.c.bf16 %v2808_v44, %v2807_v43  ;;  %v2809_v58 = vld [vmem:[%s7506_s8 + $0x13b0] sm:$0xff]  ;;  %v2780_v7 = vld [vmem:[%s7506_s8 + $0x12c8] sm:$0xff]  ;;  %v2767_v43 = vld [vmem:[%s7506_s8 + $0x1260] sm:$0xff] }
 0x2db   : > { %v6910_v39 = vpack.c.bf16 %v2810_v4, %v2809_v58  ;;  %v2784_v35 = vld [vmem:[%s7506_s8 + $0x12e8] sm:$0xff] }
 0x2dc   : > { %v8916_v14 = vadd.f32 %v5349_v61, %v3400_v2  ;;  %6829 = vmatpush3.bf16.msra.mxu0 %v6828_v60  ;;  %v6876_v60 = vpack.c.bf16 %v2760_v59, %v2759_v48  ;;  %v6908_v61 = vpack.c.bf16 %v2792_v51, %v2791_v49  ;;  %v2794_v2 = vld [vmem:[%s7506_s8 + $0x1338] sm:$0xff]  ;;  %v2816_v38 = vld [vmem:[%s7506_s8 + $0x13e8] sm:$0xff]  ;;  %v2785_v48 = vld [vmem:[%s7506_s8 + $0x12f0] sm:$0xff] }
 0x2dd   : > { %6861 = vmatpush3.bf16.msra.mxu1 %v6860_v52  ;;  %6831 = vmatprep.subr.bf16.mxu0 %v6830_v62  ;;  %v6878_v52 = vpack.c.bf16 %v2778_v57, %v2777_v53  ;;  %v2761_v62 = vld [vmem:[%s7506_s8 + $0x1230] sm:$0xff]  ;;  %v6912_v6 = vpack.c.bf16 %v2794_v2, %v2793_v0  ;;  %v2768_v44 = vld [vmem:[%s7506_s8 + $0x1268] sm:$0xff]  ;;  %v2786_v59 = vld [vmem:[%s7506_s8 + $0x12f8] sm:$0xff] }
 0x2de   : > { %6863 = vmatprep.subr.bf16.mxu1 %v6862_v1  ;;  %v2779_v1 = vld [vmem:[%s7506_s8 + $0x12c0] sm:$0xff]  ;;  %v6880_v5 = vpack.c.bf16 %v2762_v63, %v2761_v62  ;;  %v2817_v51 = vld [vmem:[%s7506_s8 + $0x13f0] sm:$0xff]  ;;  %v2818_v53 = vld [vmem:[%s7506_s8 + $0x13f8] sm:$0xff]  ;;  %v6892_v4 = vpack.c.bf16 %v2768_v44, %v2767_v43 }
 0x2df   : > { %v2769_v62 = vld [vmem:[%s7506_s8 + $0x1270] sm:$0xff]  ;;  %v2770_v63 = vld [vmem:[%s7506_s8 + $0x1278] sm:$0xff]  ;;  %v6926_v2 = vpack.c.bf16 %v2818_v53, %v2817_v51  ;;  %v2872_v43 = vld [vmem:[%s7506_s8 + $0x15a8] sm:$0xff] }
 0x2e0   : > { %6833 = vmatpush3.bf16.msra.mxu0 %v6832_v15  ;;  %v6882_v15 = vpack.c.bf16 %v2780_v7, %v2779_v1  ;;  %v2801_v0 = vld [vmem:[%s7506_s8 + $0x1370] sm:$0xff]  ;;  %v2802_v1 = vld [vmem:[%s7506_s8 + $0x1378] sm:$0xff]  ;;  %v2835_v7 = vld [vmem:[%s7506_s8 + $0x1480] sm:$0xff] }
 0x2e1   : > { %6865 = vmatpush3.bf16.msra.mxu1 %v6864_v12  ;;  %6867 = vmatprep.subr.bf16.mxu0 %v6866_v16  ;;  %v2763_v12 = vld [vmem:[%s7506_s8 + $0x1240] sm:$0xff]  ;;  %v2764_v16 = vld [vmem:[%s7506_s8 + $0x1248] sm:$0xff]  ;;  %v2873_v51 = vld [vmem:[%s7506_s8 + $0x15b0] sm:$0xff] }
 0x2e2   : > { %6899 = vmatprep.subr.bf16.mxu1 %v6898_v18  ;;  %v2781_v18 = vld [vmem:[%s7506_s8 + $0x12d0] sm:$0xff]  ;;  %v2874_v53 = vld [vmem:[%s7506_s8 + $0x15b8] sm:$0xff] }
 0x2e3   : > { %4378 = vmatmul.mubr.f32.vlgmr.msra.gmra.mrb[16].mxu0 %v3084_v22  ;;  %v6884_v22 = vpack.c.bf16 %v2764_v16, %v2763_v12  ;;  %v6886_v25 = vpack.c.bf16 %v2782_v20, %v2781_v18  ;;  %v6930_v12 = vpack.c.bf16 %v2836_v8, %v2835_v7  ;;  %v2819_v16 = vld [vmem:[%s7506_s8 + $0x1400] sm:$0xff]  ;;  %v2852_v18 = vld [vmem:[%s7506_s8 + $0x1508] sm:$0xff]  ;;  %v2837_v20 = vld [vmem:[%s7506_s8 + $0x1490] sm:$0xff] }
 0x2e4   : > { %6869 = vmatpush3.bf16.msra.mxu0 %v6868_v26  ;;  %4448 = vmatmul.mubr.f32.vlgmr.msra.gmra.mrb[16].mxu1 %v3092_v29  ;;  %v2765_v26 = vld [vmem:[%s7506_s8 + $0x1250] sm:$0xff]  ;;  %v2766_v29 = vld [vmem:[%s7506_s8 + $0x1258] sm:$0xff] }
 0x2e5   : > { %6901 = vmatpush3.bf16.msra.mxu1 %v6900_v30  ;;  %6871 = vmatprep.subr.bf16.mxu0 %v6870_v31  ;;  %v2797_v30 = vld [vmem:[%s7506_s8 + $0x1350] sm:$0xff]  ;;  %v6918_v31 = vpack.c.bf16 %v2814_v42, %v2813_v21  ;;  %v6888_v3 = vpack.c.bf16 %v2766_v29, %v2765_v26  ;;  %v2838_v21 = vld [vmem:[%s7506_s8 + $0x1498] sm:$0xff]  ;;  %v3100_v42 = vrot.slane %v8851_v28, %v8390_v9 }
 0x2e6   : > { %6903 = vmatprep.subr.bf16.mxu1 %v6902_v36  ;;  %4517 = vmatprep.mubr.f32.mxu0 %v3104_v41  ;;  %v2815_v36 = vld [vmem:[%s7506_s8 + $0x13e0] sm:$0xff]  ;;  %v6920_v40 = vpack.c.bf16 %v2798_v32, %v2797_v30  ;;  %v6890_v41 = vpack.c.bf16 %v2784_v35, %v2783_v34  ;;  %v6932_v26 = vpack.c.bf16 %v2820_v11, %v2819_v16  ;;  %v2821_v32 = vld [vmem:[%s7506_s8 + $0x1410] sm:$0xff]  ;;  %v2822_v34 = vld [vmem:[%s7506_s8 + $0x1418] sm:$0xff] }
 0x2e7   : > { %4587 = vmatprep.mubr.f32.mxu1 %v3112_v56  ;;  %v2799_v56 = vld [vmem:[%s7506_s8 + $0x1360] sm:$0xff]  ;;  %v3108_v29 = vrot.slane %v8851_v28, %v8395_v13  ;;  %v2853_v35 = vld [vmem:[%s7506_s8 + $0x1510] sm:$0xff]  ;;  %v2860_v16 = vld [vmem:[%s7506_s8 + $0x1548] sm:$0xff] }
 0x2e8   : > { %6873 = vmatpush3.bf16.msra.mxu0 %v6872_v45  ;;  %v2871_v28 = vld [vmem:[%s7506_s8 + $0x15a0] sm:$0xff]  ;;  %v2845_v11 = vld [vmem:[%s7506_s8 + $0x14d0] sm:$0xff] }
 0x2e9   : > { %6905 = vmatpush3.bf16.msra.mxu1 %v6904_v46  ;;  %6875 = vmatprep.subr.bf16.mxu0 %v6874_v47  ;;  %v6922_v46 = vpack.c.bf16 %v2816_v38, %v2815_v36  ;;  %v2800_v47 = vld [vmem:[%s7506_s8 + $0x1368] sm:$0xff]  ;;  %v2854_v38 = vld [vmem:[%s7506_s8 + $0x1518] sm:$0xff] }
 0x2ea   : > { %6907 = vmatprep.subr.bf16.mxu1 %v6906_v50 }
 0x2ec   : > { %6877 = vmatpush3.bf16.msra.mxu0 %v6876_v60 }
 0x2ed   : > { %6909 = vmatpush3.bf16.msra.mxu1 %v6908_v61  ;;  %6879 = vmatprep.subr.bf16.mxu0 %v6878_v52  ;;  %v6924_v61 = vpack.c.bf16 %v2800_v47, %v2799_v56  ;;  %v6894_v52 = vpack.c.bf16 %v2786_v59, %v2785_v48  ;;  %v6936_v56 = vpack.c.bf16 %v2822_v34, %v2821_v32  ;;  %v2823_v47 = vld [vmem:[%s7506_s8 + $0x1420] sm:$0xff]  ;;  %v2848_v32 = vld [vmem:[%s7506_s8 + $0x14e8] sm:$0xff] }
 0x2ee   : > { %6911 = vmatprep.subr.bf16.mxu1 %v6910_v39  ;;  %v2855_v48 = vld [vmem:[%s7506_s8 + $0x1520] sm:$0xff]  ;;  %v6970_v59 = vpack.c.bf16 %v2872_v43, %v2871_v28 }
 0x2ef   : > { %v2879_v34 = vld [vmem:[%s7506_s8 + $0x15e0] sm:$0xff] }
 0x2f0   : > { %6881 = vmatpush3.bf16.msra.mxu0 %v6880_v5  ;;  %v2868_v5 = vld [vmem:[%s7506_s8 + $0x1588] sm:$0xff]  ;;  %v2863_v28 = vld [vmem:[%s7506_s8 + $0x1560] sm:$0xff] }
 0x2f1   : > { %6913 = vmatpush3.bf16.msra.mxu1 %v6912_v6  ;;  %6883 = vmatprep.subr.bf16.mxu0 %v6882_v15  ;;  %v6896_v15 = vpack.c.bf16 %v2770_v63, %v2769_v62  ;;  %v6962_v17 = vpack.c.bf16 %v2868_v5, %v2867_v10  ;;  %v6974_v62 = vpack.c.bf16 %v2874_v53, %v2873_v51  ;;  %v2858_v63 = vld [vmem:[%s7506_s8 + $0x1538] sm:$0xff]  ;;  %v2827_v5 = vld [vmem:[%s7506_s8 + $0x1440] sm:$0xff] }
 0x2f2   : > { %6915 = vmatprep.subr.bf16.mxu1 %v6914_v27  ;;  %v2851_v27 = vld [vmem:[%s7506_s8 + $0x1500] sm:$0xff] }
 0x2f3   : > { %v6964_v30 = vpack.c.bf16 %v2852_v18, %v2851_v27  ;;  %v2846_v27 = vld [vmem:[%s7506_s8 + $0x14d8] sm:$0xff] }
 0x2f4   : > { %6885 = vmatpush3.bf16.msra.mxu0 %v6884_v22  ;;  %v2869_v22 = vld [vmem:[%s7506_s8 + $0x1590] sm:$0xff]  ;;  %v2878_v18 = vld [vmem:[%s7506_s8 + $0x15d8] sm:$0xff] }
 0x2f5   : > { %6917 = vmatpush3.bf16.msra.mxu1 %v6916_v24  ;;  %6887 = vmatprep.subr.bf16.mxu0 %v6886_v25  ;;  %v2870_v24 = vld [vmem:[%s7506_s8 + $0x1598] sm:$0xff]  ;;  %v9004_v25 = vld [vmem:[%s8285_s22 + $0x28] sm:$0xff] }
 0x2f6   : > { %v5382_v45 = vpop.f32.mrb[4].mxu0  ;;  %6919 = vmatprep.subr.bf16.mxu1 %v6918_v31  ;;  %v6934_v31 = vpack.c.bf16 %v2838_v21, %v2837_v20  ;;  %v6966_v36 = vpack.c.bf16 %v2870_v24, %v2869_v22  ;;  %v3128_v44 = vrot.slane %v9004_v25, %v8276_v55  ;;  %v2842_v55 = vld [vmem:[%s7506_s8 + $0x14b8] sm:$0xff]  ;;  %v2829_v22 = vld [vmem:[%s7506_s8 + $0x1450] sm:$0xff] }
 0x2f7   : > { %v5383_v49 = vpop.f32.mrb[5].mxu0  ;;  %v5417_v50 = vpop.f32.mrb[4].mxu1  ;;  %v2830_v24 = vld [vmem:[%s7506_s8 + $0x1458] sm:$0xff] }
 0x2f8   : > { %v5384_v57 = vadd.f32 %v5383_v49, %v5382_v45  ;;  %6889 = vmatpush3.bf16.msra.mxu0 %v6888_v3  ;;  %v5418_v58 = vpop.f32.mrb[5].mxu1  ;;  %v2839_v3 = vld [vmem:[%s7506_s8 + $0x14a0] sm:$0xff]  ;;  %v6968_v45 = vpack.c.bf16 %v2854_v38, %v2853_v35  ;;  %v2856_v49 = vld [vmem:[%s7506_s8 + $0x1528] sm:$0xff] }
 0x2f9   : > { %v5419_v60 = vadd.f32 %v5418_v58, %v5417_v50  ;;  %6921 = vmatpush3.bf16.msra.mxu1 %v6920_v40  ;;  %6891 = vmatprep.subr.bf16.mxu0 %v6890_v41  ;;  %v2840_v40 = vld [vmem:[%s7506_s8 + $0x14a8] sm:$0xff]  ;;  %v3120_v41 = vrot.slane %v9004_v25, %v8273_v54  ;;  %v2841_v50 = vld [vmem:[%s7506_s8 + $0x14b0] sm:$0xff]  ;;  %v6972_v58 = vpack.c.bf16 %v2856_v49, %v2855_v48 }
 0x2fa   : > { %v3540_v39 = vadd.f32 %v5384_v57, %v8916_v14  ;;  %6923 = vmatprep.subr.bf16.mxu1 %v6922_v46  ;;  %v6928_v14 = vpack.c.bf16 %v2802_v1, %v2801_v0  ;;  %v6938_v46 = vpack.c.bf16 %v2840_v40, %v2839_v3  ;;  %v2824_v54 = vld [vmem:[%s7506_s8 + $0x1428] sm:$0xff]  ;;  %v2843_v0 = vld [vmem:[%s7506_s8 + $0x14c0] sm:$0xff]  ;;  %v2881_v48 = vld [vmem:[%s7506_s8 + $0x15f0] sm:$0xff] }
 0x2fb   : > { %v6940_v57 = vpack.c.bf16 %v2824_v54, %v2823_v47  ;;  %v2876_v1 = vld [vmem:[%s7506_s8 + $0x15c8] sm:$0xff]  ;;  %v2831_v40 = vld [vmem:[%s7506_s8 + $0x1460] sm:$0xff] }
 0x2fc   : > { %v8991_v6 = vadd.f32 %v5419_v60, %v3540_v39  ;;  %6893 = vmatpush3.bf16.msra.mxu0 %v6892_v4  ;;  %v6942_v4 = vpack.c.bf16 %v2842_v55, %v2841_v50  ;;  %v2825_v60 = vld [vmem:[%s7506_s8 + $0x1430] sm:$0xff]  ;;  %v2844_v39 = vld [vmem:[%s7506_s8 + $0x14c8] sm:$0xff] }
 0x2fd   : > { %6925 = vmatpush3.bf16.msra.mxu1 %v6924_v61  ;;  %6895 = vmatprep.subr.bf16.mxu0 %v6894_v52  ;;  %v2826_v61 = vld [vmem:[%s7506_s8 + $0x1438] sm:$0xff]  ;;  %v2857_v52 = vld [vmem:[%s7506_s8 + $0x1530] sm:$0xff]  ;;  %v6946_v10 = vpack.c.bf16 %v2844_v39, %v2843_v0  ;;  %v2880_v35 = vld [vmem:[%s7506_s8 + $0x15e8] sm:$0xff] }
 0x2fe   : > { %6927 = vmatprep.subr.bf16.mxu1 %v6926_v2  ;;  %v2875_v2 = vld [vmem:[%s7506_s8 + $0x15c0] sm:$0xff]  ;;  %v6944_v7 = vpack.c.bf16 %v2826_v61, %v2825_v60  ;;  %v6976_v8 = vpack.c.bf16 %v2858_v63, %v2857_v52  ;;  %v2865_v60 = vld [vmem:[%s7506_s8 + $0x1570] sm:$0xff]  ;;  %v2900_v0 = vld [vmem:[%s7506_s8 + $0x1688] sm:$0xff] }
 0x2ff   : > { %v2899_v63 = vld [vmem:[%s7506_s8 + $0x1680] sm:$0xff] }
 0x300   : > { %6897 = vmatpush3.bf16.msra.mxu0 %v6896_v15  ;;  %v2828_v15 = vld [vmem:[%s7506_s8 + $0x1448] sm:$0xff]  ;;  %v2931_v39 = vld [vmem:[%s7506_s8 + $0x1780] sm:$0xff] }
 0x301   : > { %6929 = vmatpush3.bf16.msra.mxu1 %v6928_v14  ;;  %6931 = vmatprep.subr.bf16.mxu0 %v6930_v12  ;;  %v2859_v14 = vld [vmem:[%s7506_s8 + $0x1540] sm:$0xff]  ;;  %v6978_v12 = vpack.c.bf16 %v2876_v1, %v2875_v2  ;;  %v6948_v20 = vpack.c.bf16 %v2828_v15, %v2827_v5  ;;  %v2932_v2 = vld [vmem:[%s7506_s8 + $0x1788] sm:$0xff] }
 0x302   : > { %6963 = vmatprep.subr.bf16.mxu1 %v6962_v17  ;;  %v2877_v17 = vld [vmem:[%s7506_s8 + $0x15d0] sm:$0xff]  ;;  %v6980_v21 = vpack.c.bf16 %v2860_v16, %v2859_v14  ;;  %v2884_v5 = vld [vmem:[%s7506_s8 + $0x1608] sm:$0xff]  ;;  %v2915_v15 = vld [vmem:[%s7506_s8 + $0x1700] sm:$0xff]  ;;  %v7026_v14 = vpack.c.bf16 %v2932_v2, %v2931_v39 }
 0x303   : > { %4518 = vmatmul.mubr.f32.vlgmr.msra.gmra.mrb[18].mxu0 %v3100_v42  ;;  %v6950_v42 = vpack.c.bf16 %v2846_v27, %v2845_v11  ;;  %v2901_v16 = vld [vmem:[%s7506_s8 + $0x1690] sm:$0xff]  ;;  %v2902_v11 = vld [vmem:[%s7506_s8 + $0x1698] sm:$0xff]  ;;  %v3116_v27 = vrot.slane %v9004_v25, %v8306_v19  ;;  %v2924_v2 = vld [vmem:[%s7506_s8 + $0x1748] sm:$0xff] }
 0x304   : > { %6933 = vmatpush3.bf16.msra.mxu0 %v6932_v26  ;;  %4588 = vmatmul.mubr.f32.vlgmr.msra.gmra.mrb[18].mxu1 %v3108_v29  ;;  %v2861_v26 = vld [vmem:[%s7506_s8 + $0x1550] sm:$0xff]  ;;  %v6982_v29 = vpack.c.bf16 %v2878_v18, %v2877_v17  ;;  %v2934_v18 = vld [vmem:[%s7506_s8 + $0x1798] sm:$0xff] }
 0x305   : > { %6965 = vmatpush3.bf16.msra.mxu1 %v6964_v30  ;;  %6935 = vmatprep.subr.bf16.mxu0 %v6934_v31  ;;  %v2862_v30 = vld [vmem:[%s7506_s8 + $0x1558] sm:$0xff]  ;;  %v2847_v31 = vld [vmem:[%s7506_s8 + $0x14e0] sm:$0xff]  ;;  %v2933_v17 = vld [vmem:[%s7506_s8 + $0x1790] sm:$0xff] }
 0x306   : > { %6967 = vmatprep.subr.bf16.mxu1 %v6966_v36  ;;  %4657 = vmatprep.mubr.f32.mxu0 %v3120_v41  ;;  %v6952_v36 = vpack.c.bf16 %v2830_v24, %v2829_v22  ;;  %v6984_v38 = vpack.c.bf16 %v2862_v30, %v2861_v26  ;;  %v6954_v3 = vpack.c.bf16 %v2848_v32, %v2847_v31  ;;  %v2832_v41 = vld [vmem:[%s7506_s8 + $0x1468] sm:$0xff]  ;;  %v2885_v24 = vld [vmem:[%s7506_s8 + $0x1610] sm:$0xff]  ;;  %v2886_v26 = vld [vmem:[%s7506_s8 + $0x1618] sm:$0xff] }
 0x307   : > { %4727 = vmatprep.mubr.f32.mxu1 %v3128_v44  ;;  %v6986_v44 = vpack.c.bf16 %v2880_v35, %v2879_v34  ;;  %v6956_v55 = vpack.c.bf16 %v2832_v41, %v2831_v40  ;;  %v6998_v22 = vpack.c.bf16 %v2902_v11, %v2901_v16  ;;  %v7030_v19 = vpack.c.bf16 %v2934_v18, %v2933_v17  ;;  %v2918_v30 = vld [vmem:[%s7506_s8 + $0x1718] sm:$0xff]  ;;  %v2903_v31 = vld [vmem:[%s7506_s8 + $0x16a0] sm:$0xff]  ;;  %v2904_v32 = vld [vmem:[%s7506_s8 + $0x16a8] sm:$0xff] }
 0x308   : > { %6937 = vmatpush3.bf16.msra.mxu0 %v6936_v56  ;;  %v2864_v56 = vld [vmem:[%s7506_s8 + $0x1568] sm:$0xff]  ;;  %v3136_v34 = vrot.slane %v9004_v25, %v8320_v33  ;;  %v7002_v40 = vpack.c.bf16 %v2904_v32, %v2903_v31  ;;  %v2887_v41 = vld [vmem:[%s7506_s8 + $0x1620] sm:$0xff]  ;;  %v2894_v16 = vld [vmem:[%s7506_s8 + $0x1658] sm:$0xff] }
 0x309   : > { %6969 = vmatpush3.bf16.msra.mxu1 %v6968_v45  ;;  %6939 = vmatprep.subr.bf16.mxu0 %v6938_v46  ;;  %v2849_v45 = vld [vmem:[%s7506_s8 + $0x14f0] sm:$0xff]  ;;  %v2850_v46 = vld [vmem:[%s7506_s8 + $0x14f8] sm:$0xff]  ;;  %v6988_v53 = vpack.c.bf16 %v2864_v56, %v2863_v28  ;;  %v2936_v35 = vld [vmem:[%s7506_s8 + $0x17a8] sm:$0xff] }
 0x30a   : > { %6971 = vmatprep.subr.bf16.mxu1 %v6970_v59  ;;  %v2882_v59 = vld [vmem:[%s7506_s8 + $0x15f8] sm:$0xff]  ;;  %v2888_v33 = vld [vmem:[%s7506_s8 + $0x1628] sm:$0xff]  ;;  %v2919_v28 = vld [vmem:[%s7506_s8 + $0x1720] sm:$0xff] }
 0x30b   : > { %v6990_v52 = vpack.c.bf16 %v2882_v59, %v2881_v48  ;;  %v2905_v56 = vld [vmem:[%s7506_s8 + $0x16b0] sm:$0xff]  ;;  %v2926_v17 = vld [vmem:[%s7506_s8 + $0x1758] sm:$0xff]  ;;  %v2911_v18 = vld [vmem:[%s7506_s8 + $0x16e0] sm:$0xff] }
 0x30c   : > { %6941 = vmatpush3.bf16.msra.mxu0 %v6940_v57  ;;  %v6958_v57 = vpack.c.bf16 %v2850_v46, %v2849_v45  ;;  %v2937_v45 = vld [vmem:[%s7506_s8 + $0x17b0] sm:$0xff]  ;;  %v2938_v46 = vld [vmem:[%s7506_s8 + $0x17b8] sm:$0xff] }
 0x30d   : > { %6973 = vmatpush3.bf16.msra.mxu1 %v6972_v58  ;;  %6943 = vmatprep.subr.bf16.mxu0 %v6942_v4  ;;  %v2833_v58 = vld [vmem:[%s7506_s8 + $0x1470] sm:$0xff]  ;;  %v2834_v4 = vld [vmem:[%s7506_s8 + $0x1478] sm:$0xff] }
 0x30e   : > { %6975 = vmatprep.subr.bf16.mxu1 %v6974_v62  ;;  %v2866_v62 = vld [vmem:[%s7506_s8 + $0x1578] sm:$0xff]  ;;  %v2889_v59 = vld [vmem:[%s7506_s8 + $0x1630] sm:$0xff] }
 0x30f   : > { %v2925_v11 = vld [vmem:[%s7506_s8 + $0x1750] sm:$0xff] }
 0x310   : > { %6945 = vmatpush3.bf16.msra.mxu0 %v6944_v7  ;;  %v6960_v7 = vpack.c.bf16 %v2834_v4, %v2833_v58  ;;  %v2939_v58 = vld [vmem:[%s7506_s8 + $0x17c0] sm:$0xff]  ;;  %v2940_v4 = vld [vmem:[%s7506_s8 + $0x17c8] sm:$0xff] }
 0x311   : > { %6977 = vmatpush3.bf16.msra.mxu1 %v6976_v8  ;;  %6947 = vmatprep.subr.bf16.mxu0 %v6946_v10  ;;  %v6994_v8 = vpack.c.bf16 %v2900_v0, %v2899_v63  ;;  %v2883_v10 = vld [vmem:[%s7506_s8 + $0x1600] sm:$0xff]  ;;  %v2892_v63 = vld [vmem:[%s7506_s8 + $0x1648] sm:$0xff]  ;;  %v7042_v39 = vpack.c.bf16 %v2940_v4, %v2939_v58 }
 0x312   : > { %6979 = vmatprep.subr.bf16.mxu1 %v6978_v12  ;;  %v2916_v12 = vld [vmem:[%s7506_s8 + $0x1708] sm:$0xff]  ;;  %v2923_v0 = vld [vmem:[%s7506_s8 + $0x1740] sm:$0xff] }
 0x314   : > { %6949 = vmatpush3.bf16.msra.mxu0 %v6948_v20  ;;  %v6996_v20 = vpack.c.bf16 %v2884_v5, %v2883_v10  ;;  %v2942_v10 = vld [vmem:[%s7506_s8 + $0x17d8] sm:$0xff] }
 0x315   : > { %6981 = vmatpush3.bf16.msra.mxu1 %v6980_v21  ;;  %6951 = vmatprep.subr.bf16.mxu0 %v6950_v42  ;;  %v3124_v21 = vrot.slane %v9004_v25, %v8311_v23  ;;  %v7028_v42 = vpack.c.bf16 %v2916_v12, %v2915_v15  ;;  %v2935_v23 = vld [vmem:[%s7506_s8 + $0x17a0] sm:$0xff]  ;;  %v7044_v15 = vpack.c.bf16 %v2924_v2, %v2923_v0  ;;  %v2893_v12 = vld [vmem:[%s7506_s8 + $0x1650] sm:$0xff] }
 0x316   : > { %v5452_v43 = vpop.f32.mrb[6].mxu0  ;;  %6983 = vmatprep.subr.bf16.mxu1 %v6982_v29  ;;  %v2917_v29 = vld [vmem:[%s7506_s8 + $0x1710] sm:$0xff] }
 0x317   : > { %v5453_v47 = vpop.f32.mrb[7].mxu0  ;;  %v5487_v54 = vpop.f32.mrb[6].mxu1 }
 0x318   : > { %v5454_v49 = vadd.f32 %v5453_v47, %v5452_v43  ;;  %6953 = vmatpush3.bf16.msra.mxu0 %v6952_v36  ;;  %v5488_v50 = vpop.f32.mrb[7].mxu1  ;;  %v3144_v36 = vrot.slane %v9004_v25, %v8327_v37  ;;  %v7034_v43 = vpack.c.bf16 %v2936_v35, %v2935_v23  ;;  %v2906_v37 = vld [vmem:[%s7506_s8 + $0x16b8] sm:$0xff]  ;;  %v7004_v47 = vpack.c.bf16 %v2888_v33, %v2887_v41  ;;  %v2913_v23 = vld [vmem:[%s7506_s8 + $0x16f0] sm:$0xff] }
 0x319   : > { %v5489_v51 = vadd.f32 %v5488_v50, %v5487_v54  ;;  %6985 = vmatpush3.bf16.msra.mxu1 %v6984_v38  ;;  %6955 = vmatprep.subr.bf16.mxu0 %v6954_v3  ;;  %v7000_v38 = vpack.c.bf16 %v2886_v26, %v2885_v24  ;;  %v7032_v3 = vpack.c.bf16 %v2918_v30, %v2917_v29  ;;  %v2921_v50 = vld [vmem:[%s7506_s8 + $0x1730] sm:$0xff]  ;;  %v2895_v29 = vld [vmem:[%s7506_s8 + $0x1660] sm:$0xff]  ;;  %v2914_v35 = vld [vmem:[%s7506_s8 + $0x16f8] sm:$0xff] }
 0x31a   : > { %v3680_v61 = vadd.f32 %v5454_v49, %v8991_v6  ;;  %6987 = vmatprep.subr.bf16.mxu1 %v6986_v44  ;;  %v6992_v6 = vpack.c.bf16 %v2866_v62, %v2865_v60  ;;  %v2920_v44 = vld [vmem:[%s7506_s8 + $0x1728] sm:$0xff]  ;;  %v7006_v48 = vpack.c.bf16 %v2906_v37, %v2905_v56  ;;  %v2890_v49 = vld [vmem:[%s7506_s8 + $0x1638] sm:$0xff]  ;;  %v2891_v62 = vld [vmem:[%s7506_s8 + $0x1640] sm:$0xff]  ;;  %v7048_v24 = vpack.c.bf16 %v2926_v17, %v2925_v11 }
 0x31b   : > { %v7036_v54 = vpack.c.bf16 %v2920_v44, %v2919_v28  ;;  %v7008_v60 = vpack.c.bf16 %v2890_v49, %v2889_v59  ;;  %v7012_v5 = vpack.c.bf16 %v2892_v63, %v2891_v62  ;;  %v2927_v30 = vld [vmem:[%s7506_s8 + $0x1760] sm:$0xff]  ;;  %v7022_v56 = vpack.c.bf16 %v2914_v35, %v2913_v23  ;;  %v2897_v37 = vld [vmem:[%s7506_s8 + $0x1670] sm:$0xff] }
 0x31c   : > { %v9069_v1 = vadd.f32 %v5489_v51, %v3680_v61  ;;  %6957 = vmatpush3.bf16.msra.mxu0 %v6956_v55  ;;  %v7038_v55 = vpack.c.bf16 %v2938_v46, %v2937_v45  ;;  %v2922_v51 = vld [vmem:[%s7506_s8 + $0x1738] sm:$0xff] }
 0x31d   : > { %6989 = vmatpush3.bf16.msra.mxu1 %v6988_v53  ;;  %6959 = vmatprep.subr.bf16.mxu0 %v6958_v57  ;;  %v2907_v53 = vld [vmem:[%s7506_s8 + $0x16c0] sm:$0xff]  ;;  %v2908_v57 = vld [vmem:[%s7506_s8 + $0x16c8] sm:$0xff]  ;;  %v7040_v61 = vpack.c.bf16 %v2922_v51, %v2921_v50  ;;  %v2898_v45 = vld [vmem:[%s7506_s8 + $0x1678] sm:$0xff]  ;;  %v3140_v51 = vrot.slane %v9004_v25, %v8395_v13 }
 0x31e   : > { %6991 = vmatprep.subr.bf16.mxu1 %v6990_v52  ;;  %v7010_v52 = vpack.c.bf16 %v2908_v57, %v2907_v53  ;;  %v7024_v49 = vpack.c.bf16 %v2898_v45, %v2897_v37 }
 0x320   : > { %6961 = vmatpush3.bf16.msra.mxu0 %v6960_v7  ;;  %v2909_v7 = vld [vmem:[%s7506_s8 + $0x16d0] sm:$0xff] }
 0x321   : > { %6993 = vmatpush3.bf16.msra.mxu1 %v6992_v6  ;;  %6995 = vmatprep.subr.bf16.mxu0 %v6994_v8  ;;  %v2910_v6 = vld [vmem:[%s7506_s8 + $0x16d8] sm:$0xff]  ;;  %v2941_v8 = vld [vmem:[%s7506_s8 + $0x17d0] sm:$0xff] }
 0x322   : > { %7027 = vmatprep.subr.bf16.mxu1 %v7026_v14  ;;  %v7014_v14 = vpack.c.bf16 %v2910_v6, %v2909_v7 }
 0x323   : > { %4658 = vmatmul.mubr.f32.vlgmr.msra.gmra.mrb[20].mxu0 %v3116_v27  ;;  %v7046_v27 = vpack.c.bf16 %v2942_v10, %v2941_v8 }
 0x324   : > { %6997 = vmatpush3.bf16.msra.mxu0 %v6996_v20  ;;  %4728 = vmatmul.mubr.f32.vlgmr.msra.gmra.mrb[20].mxu1 %v3124_v21  ;;  %v2912_v20 = vld [vmem:[%s7506_s8 + $0x16e8] sm:$0xff]  ;;  %v2943_v21 = vld [vmem:[%s7506_s8 + $0x17e0] sm:$0xff] }
 0x325   : > { %7029 = vmatpush3.bf16.msra.mxu1 %v7028_v42  ;;  %6999 = vmatprep.subr.bf16.mxu0 %v6998_v22  ;;  %v2944_v42 = vld [vmem:[%s7506_s8 + $0x17e8] sm:$0xff]  ;;  %v7016_v22 = vpack.c.bf16 %v2894_v16, %v2893_v12  ;;  %v7018_v26 = vpack.c.bf16 %v2912_v20, %v2911_v18 }
 0x326   : > { %7031 = vmatprep.subr.bf16.mxu1 %v7030_v19  ;;  %4797 = vmatprep.mubr.f32.mxu0 %v3136_v34  ;;  %v2896_v19 = vld [vmem:[%s7506_s8 + $0x1668] sm:$0xff]  ;;  %v7050_v32 = vpack.c.bf16 %v2944_v42, %v2943_v21 }
 0x327   : > { %4867 = vmatprep.mubr.f32.mxu1 %v3144_v36  ;;  %v2928_v34 = vld [vmem:[%s7506_s8 + $0x1768] sm:$0xff]  ;;  %v7020_v28 = vpack.c.bf16 %v2896_v19, %v2895_v29 }
 0x328   : > { %7001 = vmatpush3.bf16.msra.mxu0 %v7000_v38  ;;  %v7052_v44 = vpack.c.bf16 %v2928_v34, %v2927_v30 }
 0x329   : > { %7033 = vmatpush3.bf16.msra.mxu1 %v7032_v3  ;;  %7003 = vmatprep.subr.bf16.mxu0 %v7002_v40  ;;  %v2945_v3 = vld [vmem:[%s7506_s8 + $0x17f0] sm:$0xff]  ;;  %v2946_v40 = vld [vmem:[%s7506_s8 + $0x17f8] sm:$0xff] }
 0x32a   : > { %7035 = vmatprep.subr.bf16.mxu1 %v7034_v43 }
 0x32c   : > { %7005 = vmatpush3.bf16.msra.mxu0 %v7004_v47  ;;  %v7054_v47 = vpack.c.bf16 %v2946_v40, %v2945_v3 }
 0x32d   : > { %7037 = vmatpush3.bf16.msra.mxu1 %v7036_v54  ;;  %7007 = vmatprep.subr.bf16.mxu0 %v7006_v48  ;;  %v2929_v54 = vld [vmem:[%s7506_s8 + $0x1770] sm:$0xff]  ;;  %v2930_v48 = vld [vmem:[%s7506_s8 + $0x1778] sm:$0xff] }
 0x32e   : > { %7039 = vmatprep.subr.bf16.mxu1 %v7038_v55  ;;  %v7056_v50 = vpack.c.bf16 %v2930_v48, %v2929_v54  ;;  %v3132_v55 = vrot.slane %v9004_v25, %v8390_v9 }
 0x330   : > { %7009 = vmatpush3.bf16.msra.mxu0 %v7008_v60 }
 0x331   : > { %7041 = vmatpush3.bf16.msra.mxu1 %v7040_v61  ;;  %7011 = vmatprep.subr.bf16.mxu0 %v7010_v52 }
 0x332   : > { %7043 = vmatprep.subr.bf16.mxu1 %v7042_v39 }
 0x334   : > { %7013 = vmatpush3.bf16.msra.mxu0 %v7012_v5 }
 0x335   : > { %7045 = vmatpush3.bf16.msra.mxu1 %v7044_v15  ;;  %7015 = vmatprep.subr.bf16.mxu0 %v7014_v14 }
 0x336   : > { %v5522_v31 = vpop.f32.mrb[8].mxu0  ;;  %7047 = vmatprep.subr.bf16.mxu1 %v7046_v27 }
 0x337   : > { %v5523_v36 = vpop.f32.mrb[9].mxu0  ;;  %v5557_v38 = vpop.f32.mrb[8].mxu1 }
 0x338   : > { %v5524_v41 = vadd.f32 %v5523_v36, %v5522_v31  ;;  %7017 = vmatpush3.bf16.msra.mxu0 %v7016_v22  ;;  %v5558_v33 = vpop.f32.mrb[9].mxu1 }
 0x339   : > { %v5559_v43 = vadd.f32 %v5558_v33, %v5557_v38  ;;  %7049 = vmatpush3.bf16.msra.mxu1 %v7048_v24  ;;  %7019 = vmatprep.subr.bf16.mxu0 %v7018_v26 }
 0x33a   : > { %v3820_v46 = vadd.f32 %v5524_v41, %v9069_v1  ;;  %7051 = vmatprep.subr.bf16.mxu1 %v7050_v32 }
 0x33c   : > { %v3890_v59 = vadd.f32 %v5559_v43, %v3820_v46  ;;  %7021 = vmatpush3.bf16.msra.mxu0 %v7020_v28  ;;  %v2170_v46 = vld [vmem:[#allocation3] sm:$0x1] }
 0x33d   : > { %7053 = vmatpush3.bf16.msra.mxu1 %v7052_v44  ;;  %7023 = vmatprep.subr.bf16.mxu0 %v7022_v56 }
 0x33e   : > { %7055 = vmatprep.subr.bf16.mxu1 %v7054_v47 }
 0x340   : > { %7025 = vmatpush3.bf16.msra.mxu0 %v7024_v49 }
 0x341   : > { %7057 = vmatpush3.bf16.msra.mxu1 %v7056_v50  ;;  %v4883_v50 = vld [vmem:[#allocation10] sm:$0x1] (!%p5084_p4) }
 0x343   : > { %4798 = vmatmul.mubr.f32.vlgmr.msra.gmra.mrb[22].mxu0 %v3132_v55 }
 0x344   : > { %4868 = vmatmul.mubr.f32.vlgmr.msra.gmra.mrb[22].mxu1 %v3140_v51 }
 0x356   : > { %v5592_v1 = vpop.f32.mrb[10].mxu0 }
 0x357   : > { %v5593_v53 = vpop.f32.mrb[11].mxu0  ;;  %v5627_v57 = vpop.f32.mrb[10].mxu1 }
 0x358   : > { %v5594_v58 = vadd.f32 %v5593_v53, %v5592_v1  ;;  %v5628_v4 = vpop.f32.mrb[11].mxu1  ;;  %v4889_v53 = vld [vmem:[#allocation4] sm:$0x1] (!%p5084_p4) }
 0x359   : > { %v5629_v60 = vadd.f32 %v5628_v4, %v5627_v57 }
 0x35a   : > { %v3960_v61 = vadd.f32 %v5594_v58, %v3890_v59  ;;  %v4880_v59 = vld [vmem:[#allocation8] sm:$0x1] (!%p5084_p4) }
 0x35c   : > { %v4030_v52 = vadd.f32 %v5629_v60, %v3960_v61 }
 0x376   : > { %v5662_v62 = vpop.f32.mrb[12].mxu0 }
 0x377   : > { %v5663_v63 = vpop.f32.mrb[13].mxu0  ;;  %v5697_v0 = vpop.f32.mrb[12].mxu1 }
 0x378   : > { %v5664_v39 = vadd.f32 %v5663_v63, %v5662_v62  ;;  %v5698_v9 = vpop.f32.mrb[13].mxu1 }
 0x379   : > { %v5699_v2 = vadd.f32 %v5698_v9, %v5697_v0 }
 0x37a   : > { %v4100_v7 = vadd.f32 %v5664_v39, %v4030_v52 }
 0x37c   : > { %v4170_v6 = vadd.f32 %v5699_v2, %v4100_v7 }
 0x396   : > { %v5732_v13 = vpop.f32.mrb[14].mxu0 }
 0x397   : > { %v5733_v25 = vpop.f32.mrb[15].mxu0  ;;  %v5767_v8 = vpop.f32.mrb[14].mxu1 }
 0x398   : > { %v5734_v10 = vadd.f32 %v5733_v25, %v5732_v13  ;;  %v5768_v5 = vpop.f32.mrb[15].mxu1 }
 0x399   : > { %v5769_v15 = vadd.f32 %v5768_v5, %v5767_v8 }
 0x39a   : > { %v4240_v14 = vadd.f32 %v5734_v10, %v4170_v6 }
 0x39c   : > { %v4310_v12 = vadd.f32 %v5769_v15, %v4240_v14 }
 0x3b6   : > { %v5802_v16 = vpop.f32.mrb[16].mxu0 }
 0x3b7   : > { %v5803_v11 = vpop.f32.mrb[17].mxu0  ;;  %v5837_v27 = vpop.f32.mrb[16].mxu1 }
 0x3b8   : > { %v5804_v17 = vadd.f32 %v5803_v11, %v5802_v16  ;;  %v5838_v18 = vpop.f32.mrb[17].mxu1 }
 0x3b9   : > { %v5839_v20 = vadd.f32 %v5838_v18, %v5837_v27 }
 0x3ba   : > { %v4380_v21 = vadd.f32 %v5804_v17, %v4310_v12 }
 0x3bc   : > { %v4450_v42 = vadd.f32 %v5839_v20, %v4380_v21 }
 0x3d6   : > { %v5872_v22 = vpop.f32.mrb[18].mxu0 }
 0x3d7   : > { %v5873_v24 = vpop.f32.mrb[19].mxu0  ;;  %v5907_v26 = vpop.f32.mrb[18].mxu1 }
 0x3d8   : > { %v5874_v29 = vadd.f32 %v5873_v24, %v5872_v22  ;;  %v5908_v19 = vpop.f32.mrb[19].mxu1 }
 0x3d9   : > { %v5909_v30 = vadd.f32 %v5908_v19, %v5907_v26 }
 0x3da   : > { %v4520_v31 = vadd.f32 %v5874_v29, %v4450_v42 }
 0x3dc   : > { %v4590_v32 = vadd.f32 %v5909_v30, %v4520_v31 }
 0x3f6   : > { %v5942_v34 = vpop.f32.mrb[20].mxu0 }
 0x3f7   : > { %v5943_v23 = vpop.f32.mrb[21].mxu0  ;;  %v5977_v35 = vpop.f32.mrb[20].mxu1 }
 0x3f8   : > { %v5944_v36 = vadd.f32 %v5943_v23, %v5942_v34  ;;  %v5978_v38 = vpop.f32.mrb[21].mxu1 }
 0x3f9   : > { %v5979_v3 = vadd.f32 %v5978_v38, %v5977_v35 }
 0x3fa   : > { %v4660_v40 = vadd.f32 %v5944_v36, %v4590_v32 }
 0x3fc   : > { %v4730_v41 = vadd.f32 %v5979_v3, %v4660_v40 }
 0x416   : > { %v6012_v33 = vpop.f32.mrb[22].mxu0 }
 0x417   : > { %v6013_v28 = vpop.f32.mrb[23].mxu0  ;;  %v6047_v43 = vpop.f32.mrb[22].mxu1 }
 0x418   : > { %v6014_v44 = vadd.f32 %v6013_v28, %v6012_v33  ;;  %v6048_v56 = vpop.f32.mrb[23].mxu1 }
 0x419   : > { %v6049_v37 = vadd.f32 %v6048_v56, %v6047_v43 }
 0x41a   : > { %v4800_v45 = vadd.f32 %v6014_v44, %v4730_v41  ;;  %4878 = sbr.rel (%p5084_p4) target bundleno = 1246 (0x4de), region = 68 }
 0x41c   : > { %v4870_v47 = vadd.f32 %v6049_v37, %v4800_v45 }
 0x41e   : > { %v4873_v54 = vadd.f32 %v4870_v47, %v2170_v46 }
 0x420   : > { %4874 = vst [vmem:[#allocation3] sm:$0x1] %v4873_v54 }
 0x427   : > { %v4879_v48 = vld [vmem:[#allocation3] sm:$0x1] }
 0x428   : > { %v4881_v49 = vadd.f32 %v4880_v59, %v4879_v48 }
 0x42a   : > { %v4882_v55 = vmax.f32 %v4881_v49, 0.0 }
 0x42c   : > { %v4884_v51 = vmul.f32 %v4883_v50, %v4882_v55 }
 0x42e   : > { %v4886_v1 = vsel %vm4885_vm2, %v4884_v51, 0.0 }
 0x42f   : > { %4887 = vadd.xlane.f32.xlu0 %v4886_v1 }
 0x4bc   : > { %v4888_v57 = vpop.xlane.xlu0 %4887 }
 0x4bd   : > { %v4890_v58 = vadd.f32 %v4889_v53, %v4888_v57 }
 0x4bf   : > { %v4891_v4 = vmax.f32 %v4890_v58, 0.0 }
 0x4c1   : > { %v4892_v60 = vsub.f32 0.0, %v4891_v4 }
 0x4c3   : > { %v4893_v61 = vmul.f32 1.442695, %v4892_v60 }
 0x4c5   : > { %7133 = vpow2.f32 %v4893_v61 }
 0x4cf   : > { %v7134_v52 = vpop.eup %7133 }
 0x4d0   : > { %v4895_v62 = vadd.f32 1.0, %v7134_v52 }
 0x4d2   : > { %7135 = vrcp.f32 %v4895_v62 }
 0x4dc   : > { %v7136_v63 = vpop.eup %7135 }
 0x4dd   : > { %4899 = vst.msk [vmem:[#allocation11] sm:$0x1] %vm4898_vm3, %v7136_v63 }
 0x4de PF: > { %p7090_p6 = scmp.eq.s32.totalorder %s7364_s6, 1  ;;  %s7301_s8 = smov [#allocation11]  }
 0x4df   : > { %s4907_s23 = sshll.u32 %s7301_s8, 4  ;;  %s4908_s23 = int_to_ptr.vmem [resolvable:$true] %s4907_s23 }
 0x4e0   : > { %s7223_s16 = scalar_lea.vmem %s4908_s23, 16  ;;  %s7229_s18 = scalar_lea.vmem %s4908_s23, 32 }
 0x4e1   : > { %p7224_p7 = scmp.ne.s32.totalorder %s4908_s23, %s7223_s16  ;;  %p7230_p13 = scmp.lt.s32.totalorder %s4908_s23, %s4908_s23 }
 0x4e2   : > { %p7231_p5 = scmp.lt.s32.totalorder %s7229_s18, %s7223_s16 }
 0x4e3   : > { %p7225_p11 = pnand %p7224_p7, %p7090_p6 }
 0x4e4   : > { %p7232_p9 = por %p7231_p5, %p7230_p13 }
 0x4e5   : > { %p7226_p12 = pneg %p7225_p11 }
 0x4e7   : > { %p7233_p10 = pnand %p7232_p9, %p7226_p12 }
 0x4e9   : > { %7236 = shalt.err (!%p7233_p10)
}
 0x4ea   : > { %s7237_s19 = scalar_lea.hbm %s9188_s7, 16 }
 0x4eb   : > { %p7238_p1 = scmp.ne.s32.totalorder %s9188_s7, %s7237_s19  ;;  %p7243_p2 = scmp.lt.u32.totalorder %s7237_s19, %s9188_s7 }
 0x4ed   : > { %p7239_p8 = pnand %p7238_p1, %p7090_p6 }
 0x4ef   : > { %p7240_p0 = pneg %p7239_p8 }
 0x4f1   : > { %p7245_p3 = pnand %p7243_p2, %p7240_p0 }
 0x4f3   : > { %7248 = shalt.err (!%p7245_p3)
}
 0x4f4   : > { %7071 = dma.vmem_to_hbm [thread:$0]  (%p7090_p6), %s4908_s23, 16, %s9188_s7, [#allocation7]  }
 0x4f5   : > { %7274 = dma.done.wait (%p7090_p6), [#allocation7], 16  }
 0x4f6   : > { %7276 = vsyncadd (%p7090_p6), [#allocation7], 4294967280 }
 0x4f7 PF: > { %p21_p4 = scmp.ge.s32.totalorder %s7367_s30, 4   ;;  %s9206_s26 = smov %s7283_s27 }
 0x4f8   : > { %s9207_s27 = smov %s7287_s28  ;;  %s9208_s28 = smov %s7377_s10 }
 0x4f9   : > { %s9209_s29 = smov %s7367_s30  ;;  %23 = sbr.rel (!%p21_p4) target bundleno = 8 (0x8), region = 103 }
 0x500   :  { %4920 = vsyncpa [#allocation6], 1 }
 0x501   :  { %4922 = vsyncpa [#allocation6 + $0x1], 1 }
 0x502   :  { %4923 = vsyncpa [#allocation9], 1 }
 0x503   :  { %4924 = vsyncpa [#allocation7], 1 }
 0x504   :  { %4926 = vsyncpa [#allocation7 + $0x1], 1 }

</bundles_post_ra>
